<compile_context>
chip_gen: v6e
topology: v6e:2x2x1
jax: 0.10.0
libtpu: 0.0.40
codegen_flags: <defaults>
</compile_context>

<pallas_src>
import functools

import jax
import jax.numpy as jnp
from jax.experimental import pallas as pl
from jax.experimental.pallas import tpu as pltpu


# ----------------------------------------------------------------------------
# 3x3 conv + folded BN (+ optional ReLU) with NO im2col materialization.
#
# grid = (B, num_channel_tiles).  Each step DMAs one (1, H+2, W+2, Ct) window
# of the zero-padded bf16 feature map plus the matching (3, 3, Ct, N) weight
# slice, performs the 9 shifted-tap matmuls on the MXU, and accumulates into a
# (H*W, N) f32 VMEM scratch.  BN scale/shift (+ReLU) are applied in the final
# channel-tile step and the bf16/f32 output tile is written once per batch.
# ----------------------------------------------------------------------------
def _conv3x3_kernel(x_ref, w_ref, s_ref, b_ref, o_ref, acc_ref, *, relu, H, W):
    kc = pl.program_id(1)

    @pl.when(kc == 0)
    def _init():
        acc_ref[...] = jnp.zeros_like(acc_ref)

    acc = acc_ref[...]
    for dh in range(3):
        for dw in range(3):
            a = x_ref[0, dh:dh + H, dw:dw + W, :]          # (H, W, Ct) bf16
            a2 = a.reshape(H * W, a.shape[-1])
            acc = acc + jnp.dot(a2, w_ref[dh, dw],
                                preferred_element_type=jnp.float32)
    acc_ref[...] = acc

    @pl.when(kc == pl.num_programs(1) - 1)
    def _finalize():
        y = acc_ref[...] * s_ref[...] + b_ref[...]
        if relu:
            y = jnp.maximum(y, 0.0)
        o_ref[0] = y.astype(o_ref.dtype)


def conv3x3_bn_pallas(x_nhwc, w9, scale, shift, *, relu,
                      out_dtype=jnp.bfloat16, kc_tile=128):
    """x_nhwc: (B,H,W,C); w9: (9*C, N) in (dh, dw, c) order; scale/shift: (N,)."""
    B, H, W, C = x_nhwc.shape
    N = w9.shape[1]
    assert W % 8 == 0 and (H * W) % 8 == 0
    ct = kc_tile if (C % kc_tile == 0) else C        # channel-reduction tile
    nk = C // ct
    xp = jnp.pad(x_nhwc.astype(jnp.bfloat16), ((0, 0), (1, 1), (1, 1), (0, 0)))
    w4 = w9.reshape(3, 3, C, N).astype(jnp.bfloat16)

    out = pl.pallas_call(
        functools.partial(_conv3x3_kernel, relu=relu, H=H, W=W),
        out_shape=jax.ShapeDtypeStruct((B, H * W, N), out_dtype),
        grid_spec=pltpu.PrefetchScalarGridSpec(
            num_scalar_prefetch=0,
            grid=(B, nk),
            in_specs=[
                pl.BlockSpec((1, H + 2, W + 2, ct), lambda b, kc: (b, 0, 0, kc)),
                pl.BlockSpec((3, 3, ct, N), lambda b, kc: (0, 0, kc, 0)),
                pl.BlockSpec((1, N), lambda b, kc: (0, 0)),
                pl.BlockSpec((1, N), lambda b, kc: (0, 0)),
            ],
            out_specs=pl.BlockSpec((1, H * W, N), lambda b, kc: (b, 0, 0)),
            scratch_shapes=[pltpu.VMEM((H * W, N), jnp.float32)],
        ),
        compiler_params=pltpu.CompilerParams(
            dimension_semantics=("parallel", "arbitrary"),
            vmem_limit_bytes=64 * 1024 * 1024),
    )(xp, w4,
      scale.reshape(1, N).astype(jnp.float32),
      shift.reshape(1, N).astype(jnp.float32))
    return out.reshape(B, H, W, N)


# ----------------------------------------------------------------------------
# Fused 1x1-conv matmul:  out = [relu]( (A @ W) * scale + shift )
# bf16 operands, f32 accumulation, large M tiles chosen to divide M (no pad).
# ----------------------------------------------------------------------------
def _mm_kernel(a_ref, w_ref, s_ref, b_ref, o_ref, *, relu):
    acc = jnp.dot(a_ref[...], w_ref[...], preferred_element_type=jnp.float32)
    acc = acc * s_ref[...] + b_ref[...]
    if relu:
        acc = jnp.maximum(acc, 0.0)
    o_ref[...] = acc.astype(o_ref.dtype)


def _pick_tm(M, want):
    for t in (want, 1024, 512, 256, 128, 64, 32, 16, 8):
        if t <= M and M % t == 0:
            return t
    return 128  # fallback -> padded path


def fused_matmul(a, w, scale, shift, *, relu=False, out_dtype=jnp.float32, tm=512):
    """a: (M, K), w: (K, N), scale/shift: (N,) -> (M, N) in out_dtype."""
    M, K = a.shape
    N = w.shape[1]
    tm = _pick_tm(M, tm)
    Mp = pl.cdiv(M, tm) * tm
    a_in = a if Mp == M else jnp.pad(a, ((0, Mp - M), (0, 0)))

    out = pl.pallas_call(
        functools.partial(_mm_kernel, relu=relu),
        out_shape=jax.ShapeDtypeStruct((Mp, N), out_dtype),
        grid_spec=pltpu.PrefetchScalarGridSpec(
            num_scalar_prefetch=0,
            grid=(Mp // tm,),
            in_specs=[
                pl.BlockSpec((tm, K), lambda i: (i, 0)),
                pl.BlockSpec((K, N), lambda i: (0, 0)),
                pl.BlockSpec((1, N), lambda i: (0, 0)),
                pl.BlockSpec((1, N), lambda i: (0, 0)),
            ],
            out_specs=pl.BlockSpec((tm, N), lambda i: (i, 0)),
        ),
        compiler_params=pltpu.CompilerParams(
            dimension_semantics=("parallel",),
            vmem_limit_bytes=64 * 1024 * 1024),
    )(a_in.astype(jnp.bfloat16), w.astype(jnp.bfloat16),
      scale.reshape(1, N).astype(jnp.float32),
      shift.reshape(1, N).astype(jnp.float32))
    return out if Mp == M else out[:M]


# ----------------------------------------------------------------------------
# Criss-cross attention kernel (one batch element per grid step).
#
#   e_H[i,j,h] = <q[i,j,:], k[h,j,:]>  (diagonal h==i masked to -inf)
#   e_W[i,j,w] = <q[i,j,:], k[i,w,:]>
#   a = softmax over the concatenated (H + W) axis
#   out[i,j,:] = sum_h a_H v[h,j,:] + sum_w a_W v[i,w,:] + x[i,j,:]
#     (gamma is pre-folded into the value projection, so no gamma here)
#
# The H-direction is computed in a (W, H, ...) layout on pre-transposed copies
# so every contraction is a batch-leading MXU matmul.
# TODO(synk): the 3-D (H,W) operand/output transposes stay as JAX glue because
# Mosaic does not reliably lower non-minor 3-D transposes in-kernel; only the
# 2-D softmax-stat transposes are done inside the kernel.
# ----------------------------------------------------------------------------
def _cca_kernel(q_ref, k_ref, v_ref, x_ref, qt_ref, kt_ref, vt_ref,
                o1_ref, o2_ref):
    q = q_ref[0]          # (H, W, Cq) bf16
    k = k_ref[0]
    v = v_ref[0]          # (H, W, Cv) bf16, gamma already folded in
    x = x_ref[0]
    qt = qt_ref[0]        # (W, H, Cq) bf16
    kt = kt_ref[0]
    vt = vt_ref[0]        # (W, H, Cv) bf16
    H, W, _ = q.shape
    NEG = jnp.float32(-1e30)

    # W-direction energies: e_w[i, j, w]   (bf16 operands -> MXU, f32 acc)
    e_w = jnp.einsum('bqc,bkc->bqk', q, k, preferred_element_type=jnp.float32)
    # H-direction energies in transposed layout: e_ht[j, i, h]
    e_ht = jnp.einsum('bqc,bkc->bqk', qt, kt, preferred_element_type=jnp.float32)
    # mask h == i (CCNet's -inf diagonal term)
    i_idx = jax.lax.broadcasted_iota(jnp.int32, (W, H, H), 1)
    h_idx = jax.lax.broadcasted_iota(jnp.int32, (W, H, H), 2)
    e_ht = jnp.where(i_idx == h_idx, NEG, e_ht)

    # joint softmax over the concatenated (H + W) axis
    m_w = jnp.max(e_w, axis=-1)            # (H, W)
    m_h = jnp.max(e_ht, axis=-1)           # (W, H)
    m_hw = jnp.maximum(m_w, m_h.T)         # (H, W)
    m_wh = m_hw.T                          # (W, H)
    p_w = jnp.exp(e_w - m_hw[:, :, None])
    p_ht = jnp.exp(e_ht - m_wh[:, :, None])
    d_hw = jnp.sum(p_w, axis=-1) + jnp.sum(p_ht, axis=-1).T   # (H, W)
    inv_hw = pl.reciprocal(d_hw, approx=True)                 # EUP slot
    inv_wh = inv_hw.T
    a_w = (p_w * inv_hw[:, :, None]).astype(v.dtype)
    a_ht = (p_ht * inv_wh[:, :, None]).astype(vt.dtype)

    out_w = jnp.einsum('bqk,bkc->bqc', a_w, v, preferred_element_type=jnp.float32)
    out_ht = jnp.einsum('bqk,bkc->bqc', a_ht, vt, preferred_element_type=jnp.float32)

    o1_ref[0] = (out_w + x.astype(jnp.float32)).astype(o1_ref.dtype)   # (H, W, Cv)
    o2_ref[0] = out_ht.astype(o2_ref.dtype)                            # (W, H, Cv)


def cca_pallas(q, k, v, x):
    B, H, W, Cq = q.shape
    Cv = v.shape[-1]
    qt = jnp.transpose(q, (0, 2, 1, 3))
    kt = jnp.transpose(k, (0, 2, 1, 3))
    vt = jnp.transpose(v, (0, 2, 1, 3))

    def spec_hw(c):
        return pl.BlockSpec((1, H, W, c), lambda b: (b, 0, 0, 0))

    def spec_wh(c):
        return pl.BlockSpec((1, W, H, c), lambda b: (b, 0, 0, 0))

    o1, o2 = pl.pallas_call(
        _cca_kernel,
        out_shape=(jax.ShapeDtypeStruct((B, H, W, Cv), jnp.bfloat16),
                   jax.ShapeDtypeStruct((B, W, H, Cv), jnp.bfloat16)),
        grid_spec=pltpu.PrefetchScalarGridSpec(
            num_scalar_prefetch=0,
            grid=(B,),
            in_specs=[spec_hw(Cq), spec_hw(Cq), spec_hw(Cv), spec_hw(Cv),
                      spec_wh(Cq), spec_wh(Cq), spec_wh(Cv)],
            out_specs=[spec_hw(Cv), spec_wh(Cv)],
        ),
        compiler_params=pltpu.CompilerParams(dimension_semantics=("parallel",)),
    )(q, k, v, x, qt, kt, vt)
    return o1 + jnp.transpose(o2, (0, 2, 1, 3))


# ----------------------------------------------------------------------------
# Glue: im2col (reference only), parameter init, Pallas forward, JAX reference.
# ----------------------------------------------------------------------------
def _conv3x3_inputs(x_nhwc):
    """im2col used only by the pure-JAX reference path."""
    B, H, W, C = x_nhwc.shape
    xp = jnp.pad(x_nhwc, ((0, 0), (1, 1), (1, 1), (0, 0)))
    cols = [xp[:, dh:dh + H, dw:dw + W, :] for dh in range(3) for dw in range(3)]
    return jnp.concatenate(cols, axis=-1).reshape(B * H * W, 9 * C)


def init_params(key, in_ch, nclass, eps=1e-5):
    inter = in_ch // 4
    out_ch = in_ch // 4          # mirrors the 2048 -> 512 ratio of the original head
    cq = inter // 8
    keys = jax.random.split(key, 20)

    def conv_w(k, kin, kout):
        return jax.random.normal(k, (kin, kout), jnp.float32) / float(kin) ** 0.5

    def bn(k, c):
        k1, k2, k3, k4 = jax.random.split(k, 4)
        g = jax.random.uniform(k1, (c,), jnp.float32, 0.5, 1.5)
        b = 0.1 * jax.random.normal(k2, (c,), jnp.float32)
        mean = 0.1 * jax.random.normal(k3, (c,), jnp.float32)
        var = jax.random.uniform(k4, (c,), jnp.float32, 0.5, 1.5)
        scale = g / jnp.sqrt(var + eps)
        shift = b - mean * scale
        return scale, shift

    p = {}
    p['conva_w'] = conv_w(keys[0], 9 * in_ch, inter)
    p['conva_scale'], p['conva_shift'] = bn(keys[1], inter)
    p['wq'] = conv_w(keys[2], inter, cq)
    p['bq'] = 0.1 * jax.random.normal(keys[3], (cq,), jnp.float32)
    p['wk'] = conv_w(keys[4], inter, cq)
    p['bk'] = 0.1 * jax.random.normal(keys[5], (cq,), jnp.float32)
    p['wv'] = conv_w(keys[6], inter, inter)
    p['bv'] = 0.1 * jax.random.normal(keys[7], (inter,), jnp.float32)
    p['gamma'] = 0.5   # CCNet inits this to 0; nonzero here so the attention path is exercised
    p['convb_w'] = conv_w(keys[8], 9 * inter, inter)
    p['convb_scale'], p['convb_shift'] = bn(keys[9], inter)
    p['bott_w'] = conv_w(keys[10], 9 * (in_ch + inter), out_ch)
    p['bott_scale'], p['bott_shift'] = bn(keys[11], out_ch)
    p['out_w'] = conv_w(keys[12], out_ch, nclass)
    p['out_b'] = 0.1 * jax.random.normal(keys[13], (nclass,), jnp.float32)
    return p


def forward_pallas(params, x_nchw, recurrence=1):
    B, C, H, W = x_nchw.shape
    x = jnp.transpose(x_nchw, (0, 2, 3, 1)).astype(jnp.bfloat16)   # NCHW -> NHWC, bf16 maps

    def conv1x1(xin, w, b, out_dtype=jnp.bfloat16):
        rows = xin.reshape(-1, xin.shape[-1])
        ones = jnp.ones((w.shape[1],), jnp.float32)
        y = fused_matmul(rows, w, ones, b, relu=False, out_dtype=out_dtype)
        return y.reshape(B, H, W, -1)

    out = conv3x3_bn_pallas(x, params['conva_w'], params['conva_scale'],
                            params['conva_shift'], relu=True)

    # fused q/k/v 1x1 projection, gamma folded into the value branch
    gamma = params['gamma']
    cq = params['wq'].shape[1]
    w_qkv = jnp.concatenate([params['wq'], params['wk'], gamma * params['wv']], axis=1)
    b_qkv = jnp.concatenate([params['bq'], params['bk'], gamma * params['bv']])
    for _ in range(recurrence):
        qkv = conv1x1(out, w_qkv, b_qkv)
        q, k, v = qkv[..., :cq], qkv[..., cq:2 * cq], qkv[..., 2 * cq:]
        out = cca_pallas(q, k, v, out)

    out = conv3x3_bn_pallas(out, params['convb_w'], params['convb_scale'],
                            params['convb_shift'], relu=True)
    cat = jnp.concatenate([x, out], axis=-1)
    out = conv3x3_bn_pallas(cat, params['bott_w'], params['bott_scale'],
                            params['bott_shift'], relu=False)
    # TODO(synk): Dropout2d(0.1) treated as identity (inference mode).
    logits = conv1x1(out, params['out_w'], params['out_b'], out_dtype=jnp.float32)
    return jnp.transpose(logits, (0, 3, 1, 2))   # NHWC -> NCHW


def forward_ref(params, x_nchw, recurrence=1):
    HI = jax.lax.Precision.HIGHEST
    B, C, H, W = x_nchw.shape
    x = jnp.transpose(x_nchw, (0, 2, 3, 1)).astype(jnp.float32)

    def conv3x3_bn(xin, w, scale, shift, relu):
        y = jnp.dot(_conv3x3_inputs(xin), w, precision=HI) * scale + shift
        if relu:
            y = jnp.maximum(y, 0.0)
        return y.reshape(B, H, W, -1)

    def conv1x1(xin, w, b):
        y = jnp.dot(xin.reshape(-1, xin.shape[-1]), w, precision=HI) + b
        return y.reshape(B, H, W, -1)

    def cca(q, k, v, xr, gamma):
        Hd = q.shape[1]
        e_h = jnp.einsum('bijc,bhjc->bijh', q, k, precision=HI)
        e_w = jnp.einsum('bijc,biwc->bijw', q, k, precision=HI)
        mask = jnp.eye(Hd, dtype=bool)[None, :, None, :]
        e_h = jnp.where(mask, -1e30, e_h)
        att = jax.nn.softmax(jnp.concatenate([e_h, e_w], axis=-1), axis=-1)
        a_h, a_w = att[..., :Hd], att[..., Hd:]
        out_h = jnp.einsum('bijh,bhjc->bijc', a_h, v, precision=HI)
        out_w = jnp.einsum('bijw,biwc->bijc', a_w, v, precision=HI)
        return gamma * (out_h + out_w) + xr

    out = conv3x3_bn(x, params['conva_w'], params['conva_scale'], params['conva_shift'], True)
    for _ in range(recurrence):
        q = conv1x1(out, params['wq'], params['bq'])
        k = conv1x1(out, params['wk'], params['bk'])
        v = conv1x1(out, params['wv'], params['bv'])
        out = cca(q, k, v, out, params['gamma'])
    out = conv3x3_bn(out, params['convb_w'], params['convb_scale'], params['convb_shift'], True)
    cat = jnp.concatenate([x, out], axis=-1)
    out = conv3x3_bn(cat, params['bott_w'], params['bott_scale'], params['bott_shift'], False)
    out = conv1x1(out, params['out_w'], params['out_b'])
    return jnp.transpose(out, (0, 3, 1, 2))


if __name__ == "__main__":
    # Small, structure-preserving sizes (original head uses C=2048 -> 512).
    B, C, Hs, Ws, NCLASS = 2, 256, 16, 16, 8
    key = jax.random.PRNGKey(0)
    kx, kp = jax.random.split(key)
    x = jax.random.normal(kx, (B, C, Hs, Ws), jnp.float32)
    params = init_params(kp, C, NCLASS)

    out = jax.block_until_ready(forward_pallas(params, x))
    ref = jax.block_until_ready(forward_ref(params, x))

    assert out.shape == (B, NCLASS, Hs, Ws), out.shape
    assert bool(jnp.all(jnp.isfinite(out)))
    # bf16 MXU operands + bf16 intermediate maps vs. an f32 HIGHEST-precision
    # reference: allow a slightly wider (still tight) tolerance than pure f32.
    rel_err = float(jnp.max(jnp.abs(out - ref)) / (jnp.max(jnp.abs(ref)) + 1e-6))
    assert rel_err < 3e-2, f"Pallas vs reference mismatch, rel_err={rel_err}"
    print("KERNEL_OK")
</pallas_src>

<mosaic_0001>
module attributes {stable_mosaic.version = 11 : i64} {
  func.func @_conv3x3_kernel(%arg0: i32, %arg1: i32, %arg2: memref<1x18x18x128xbf16, #tpu.memory_space<vmem>>, %arg3: memref<3x3x128x64xbf16, #tpu.memory_space<vmem>>, %arg4: memref<1x64xf32, #tpu.memory_space<vmem>>, %arg5: memref<1x64xf32, #tpu.memory_space<vmem>>, %arg6: memref<1x256x64xbf16, #tpu.memory_space<vmem>>, %arg7: memref<256x64xf32, #tpu.memory_space<vmem>>) attributes {dimension_semantics = [#tpu.dimension_semantics<parallel>, #tpu.dimension_semantics<arbitrary>], iteration_bounds = array<i64: 2, 2>, scalar_prefetch = 0 : i64, scratch_operands = 1 : i64, tpu.core_type = #tpu.core_type<tc>, window_params = [{transform_indices = @transform_0, window_bounds = array<i64: 1, 18, 18, 128>}, {transform_indices = @transform_1, window_bounds = array<i64: 3, 3, 128, 64>}, {pipeline_mode = #tpu.pipeline_mode<synchronous>, transform_indices = @transform_2, window_bounds = array<i64: 1, 64>}, {pipeline_mode = #tpu.pipeline_mode<synchronous>, transform_indices = @transform_3, window_bounds = array<i64: 1, 64>}, {transform_indices = @transform_4, window_bounds = array<i64: 1, 256, 64>}]} {
    %c0_i32 = arith.constant 0 : i32
    %0 = arith.cmpi eq, %arg1, %c0_i32 : i32
    %1 = arith.extui %0 : i1 to i32
    %c0_i32_0 = arith.constant 0 : i32
    %2 = arith.cmpi ne, %1, %c0_i32_0 : i32
    scf.if %2 {
      %cst_83 = arith.constant 0.000000e+00 : f32
      %71 = vector.broadcast %cst_83 : f32 to vector<256x64xf32>
      %c0_84 = arith.constant 0 : index
      %c0_85 = arith.constant 0 : index
      %72 = vector.load %arg7[%c0_84, %c0_85] : memref<256x64xf32, #tpu.memory_space<vmem>>, vector<256x64xf32>
      tpu.vector_store %arg7[%c0_84, %c0_85], %71 {strides = array<i32>} : memref<256x64xf32, #tpu.memory_space<vmem>>, vector<256x64xf32>,
    } else {
    }
    %c0 = arith.constant 0 : index
    %c0_1 = arith.constant 0 : index
    %3 = vector.load %arg7[%c0, %c0_1] : memref<256x64xf32, #tpu.memory_space<vmem>>, vector<256x64xf32>
    %c0_2 = arith.constant 0 : index
    %c0_3 = arith.constant 0 : index
    %c0_4 = arith.constant 0 : index
    %c0_5 = arith.constant 0 : index
    %4 = vector.load %arg2[%c0_2, %c0_3, %c0_4, %c0_5] : memref<1x18x18x128xbf16, #tpu.memory_space<vmem>>, vector<1x16x16x128xbf16>
    %5 = vector.shape_cast %4 : vector<1x16x16x128xbf16> to vector<16x16x128xbf16>
    %6 = vector.shape_cast %5 : vector<16x16x128xbf16> to vector<256x128xbf16>
    %c0_6 = arith.constant 0 : index
    %c0_7 = arith.constant 0 : index
    %c0_8 = arith.constant 0 : index
    %c0_9 = arith.constant 0 : index
    %7 = vector.load %arg3[%c0_6, %c0_7, %c0_8, %c0_9] : memref<3x3x128x64xbf16, #tpu.memory_space<vmem>>, vector<1x1x128x64xbf16>
    %8 = vector.shape_cast %7 : vector<1x1x128x64xbf16> to vector<128x64xbf16>
    %cst = arith.constant dense<0.000000e+00> : vector<256x64xf32>
    %9 = tpu.matmul %6, %8, %cst {dimension_numbers = #tpu.dot_dimension_numbers<[1], [0], [0], [1], [0, 0, 1, 1], [], []>} : vector<256x128xbf16>, vector<128x64xbf16>, vector<256x64xf32> -> vector<256x64xf32>
    %10 = arith.addf %3, %9 : vector<256x64xf32>
    %c0_10 = arith.constant 0 : index
    %c0_11 = arith.constant 0 : index
    %c1 = arith.constant 1 : index
    %c0_12 = arith.constant 0 : index
    %11 = vector.load %arg2[%c0_10, %c0_11, %c1, %c0_12] : memref<1x18x18x128xbf16, #tpu.memory_space<vmem>>, vector<1x16x16x128xbf16>
    %12 = vector.shape_cast %11 : vector<1x16x16x128xbf16> to vector<16x16x128xbf16>
    %13 = vector.shape_cast %12 : vector<16x16x128xbf16> to vector<256x128xbf16>
    %c0_13 = arith.constant 0 : index
    %c1_14 = arith.constant 1 : index
    %c0_15 = arith.constant 0 : index
    %c0_16 = arith.constant 0 : index
    %14 = vector.load %arg3[%c0_13, %c1_14, %c0_15, %c0_16] : memref<3x3x128x64xbf16, #tpu.memory_space<vmem>>, vector<1x1x128x64xbf16>
    %15 = vector.shape_cast %14 : vector<1x1x128x64xbf16> to vector<128x64xbf16>
    %cst_17 = arith.constant dense<0.000000e+00> : vector<256x64xf32>
    %16 = tpu.matmul %13, %15, %cst_17 {dimension_numbers = #tpu.dot_dimension_numbers<[1], [0], [0], [1], [0, 0, 1, 1], [], []>} : vector<256x128xbf16>, vector<128x64xbf16>, vector<256x64xf32> -> vector<256x64xf32>
    %17 = arith.addf %10, %16 : vector<256x64xf32>
    %c0_18 = arith.constant 0 : index
    %c0_19 = arith.constant 0 : index
    %c2 = arith.constant 2 : index
    %c0_20 = arith.constant 0 : index
    %18 = vector.load %arg2[%c0_18, %c0_19, %c2, %c0_20] : memref<1x18x18x128xbf16, #tpu.memory_space<vmem>>, vector<1x16x16x128xbf16>
    %19 = vector.shape_cast %18 : vector<1x16x16x128xbf16> to vector<16x16x128xbf16>
    %20 = vector.shape_cast %19 : vector<16x16x128xbf16> to vector<256x128xbf16>
    %c0_21 = arith.constant 0 : index
    %c2_22 = arith.constant 2 : index
    %c0_23 = arith.constant 0 : index
    %c0_24 = arith.constant 0 : index
    %21 = vector.load %arg3[%c0_21, %c2_22, %c0_23, %c0_24] : memref<3x3x128x64xbf16, #tpu.memory_space<vmem>>, vector<1x1x128x64xbf16>
    %22 = vector.shape_cast %21 : vector<1x1x128x64xbf16> to vector<128x64xbf16>
    %cst_25 = arith.constant dense<0.000000e+00> : vector<256x64xf32>
    %23 = tpu.matmul %20, %22, %cst_25 {dimension_numbers = #tpu.dot_dimension_numbers<[1], [0], [0], [1], [0, 0, 1, 1], [], []>} : vector<256x128xbf16>, vector<128x64xbf16>, vector<256x64xf32> -> vector<256x64xf32>
    %24 = arith.addf %17, %23 : vector<256x64xf32>
    %c0_26 = arith.constant 0 : index
    %c1_27 = arith.constant 1 : index
    %c0_28 = arith.constant 0 : index
    %c0_29 = arith.constant 0 : index
    %25 = vector.load %arg2[%c0_26, %c1_27, %c0_28, %c0_29] : memref<1x18x18x128xbf16, #tpu.memory_space<vmem>>, vector<1x16x16x128xbf16>
    %26 = vector.shape_cast %25 : vector<1x16x16x128xbf16> to vector<16x16x128xbf16>
    %27 = vector.shape_cast %26 : vector<16x16x128xbf16> to vector<256x128xbf16>
    %c1_30 = arith.constant 1 : index
    %c0_31 = arith.constant 0 : index
    %c0_32 = arith.constant 0 : index
    %c0_33 = arith.constant 0 : index
    %28 = vector.load %arg3[%c1_30, %c0_31, %c0_32, %c0_33] : memref<3x3x128x64xbf16, #tpu.memory_space<vmem>>, vector<1x1x128x64xbf16>
    %29 = vector.shape_cast %28 : vector<1x1x128x64xbf16> to vector<128x64xbf16>
    %cst_34 = arith.constant dense<0.000000e+00> : vector<256x64xf32>
    %30 = tpu.matmul %27, %29, %cst_34 {dimension_numbers = #tpu.dot_dimension_numbers<[1], [0], [0], [1], [0, 0, 1, 1], [], []>} : vector<256x128xbf16>, vector<128x64xbf16>, vector<256x64xf32> -> vector<256x64xf32>
    %31 = arith.addf %24, %30 : vector<256x64xf32>
    %c0_35 = arith.constant 0 : index
    %c1_36 = arith.constant 1 : index
    %c1_37 = arith.constant 1 : index
    %c0_38 = arith.constant 0 : index
    %32 = vector.load %arg2[%c0_35, %c1_36, %c1_37, %c0_38] : memref<1x18x18x128xbf16, #tpu.memory_space<vmem>>, vector<1x16x16x128xbf16>
    %33 = vector.shape_cast %32 : vector<1x16x16x128xbf16> to vector<16x16x128xbf16>
    %34 = vector.shape_cast %33 : vector<16x16x128xbf16> to vector<256x128xbf16>
    %c1_39 = arith.constant 1 : index
    %c1_40 = arith.constant 1 : index
    %c0_41 = arith.constant 0 : index
    %c0_42 = arith.constant 0 : index
    %35 = vector.load %arg3[%c1_39, %c1_40, %c0_41, %c0_42] : memref<3x3x128x64xbf16, #tpu.memory_space<vmem>>, vector<1x1x128x64xbf16>
    %36 = vector.shape_cast %35 : vector<1x1x128x64xbf16> to vector<128x64xbf16>
    %cst_43 = arith.constant dense<0.000000e+00> : vector<256x64xf32>
    %37 = tpu.matmul %34, %36, %cst_43 {dimension_numbers = #tpu.dot_dimension_numbers<[1], [0], [0], [1], [0, 0, 1, 1], [], []>} : vector<256x128xbf16>, vector<128x64xbf16>, vector<256x64xf32> -> vector<256x64xf32>
    %38 = arith.addf %31, %37 : vector<256x64xf32>
    %c0_44 = arith.constant 0 : index
    %c1_45 = arith.constant 1 : index
    %c2_46 = arith.constant 2 : index
    %c0_47 = arith.constant 0 : index
    %39 = vector.load %arg2[%c0_44, %c1_45, %c2_46, %c0_47] : memref<1x18x18x128xbf16, #tpu.memory_space<vmem>>, vector<1x16x16x128xbf16>
    %40 = vector.shape_cast %39 : vector<1x16x16x128xbf16> to vector<16x16x128xbf16>
    %41 = vector.shape_cast %40 : vector<16x16x128xbf16> to vector<256x128xbf16>
    %c1_48 = arith.constant 1 : index
    %c2_49 = arith.constant 2 : index
    %c0_50 = arith.constant 0 : index
    %c0_51 = arith.constant 0 : index
    %42 = vector.load %arg3[%c1_48, %c2_49, %c0_50, %c0_51] : memref<3x3x128x64xbf16, #tpu.memory_space<vmem>>, vector<1x1x128x64xbf16>
    %43 = vector.shape_cast %42 : vector<1x1x128x64xbf16> to vector<128x64xbf16>
    %cst_52 = arith.constant dense<0.000000e+00> : vector<256x64xf32>
    %44 = tpu.matmul %41, %43, %cst_52 {dimension_numbers = #tpu.dot_dimension_numbers<[1], [0], [0], [1], [0, 0, 1, 1], [], []>} : vector<256x128xbf16>, vector<128x64xbf16>, vector<256x64xf32> -> vector<256x64xf32>
    %45 = arith.addf %38, %44 : vector<256x64xf32>
    %c0_53 = arith.constant 0 : index
    %c2_54 = arith.constant 2 : index
    %c0_55 = arith.constant 0 : index
    %c0_56 = arith.constant 0 : index
    %46 = vector.load %arg2[%c0_53, %c2_54, %c0_55, %c0_56] : memref<1x18x18x128xbf16, #tpu.memory_space<vmem>>, vector<1x16x16x128xbf16>
    %47 = vector.shape_cast %46 : vector<1x16x16x128xbf16> to vector<16x16x128xbf16>
    %48 = vector.shape_cast %47 : vector<16x16x128xbf16> to vector<256x128xbf16>
    %c2_57 = arith.constant 2 : index
    %c0_58 = arith.constant 0 : index
    %c0_59 = arith.constant 0 : index
    %c0_60 = arith.constant 0 : index
    %49 = vector.load %arg3[%c2_57, %c0_58, %c0_59, %c0_60] : memref<3x3x128x64xbf16, #tpu.memory_space<vmem>>, vector<1x1x128x64xbf16>
    %50 = vector.shape_cast %49 : vector<1x1x128x64xbf16> to vector<128x64xbf16>
    %cst_61 = arith.constant dense<0.000000e+00> : vector<256x64xf32>
    %51 = tpu.matmul %48, %50, %cst_61 {dimension_numbers = #tpu.dot_dimension_numbers<[1], [0], [0], [1], [0, 0, 1, 1], [], []>} : vector<256x128xbf16>, vector<128x64xbf16>, vector<256x64xf32> -> vector<256x64xf32>
    %52 = arith.addf %45, %51 : vector<256x64xf32>
    %c0_62 = arith.constant 0 : index
    %c2_63 = arith.constant 2 : index
    %c1_64 = arith.constant 1 : index
    %c0_65 = arith.constant 0 : index
    %53 = vector.load %arg2[%c0_62, %c2_63, %c1_64, %c0_65] : memref<1x18x18x128xbf16, #tpu.memory_space<vmem>>, vector<1x16x16x128xbf16>
    %54 = vector.shape_cast %53 : vector<1x16x16x128xbf16> to vector<16x16x128xbf16>
    %55 = vector.shape_cast %54 : vector<16x16x128xbf16> to vector<256x128xbf16>
    %c2_66 = arith.constant 2 : index
    %c1_67 = arith.constant 1 : index
    %c0_68 = arith.constant 0 : index
    %c0_69 = arith.constant 0 : index
    %56 = vector.load %arg3[%c2_66, %c1_67, %c0_68, %c0_69] : memref<3x3x128x64xbf16, #tpu.memory_space<vmem>>, vector<1x1x128x64xbf16>
    %57 = vector.shape_cast %56 : vector<1x1x128x64xbf16> to vector<128x64xbf16>
    %cst_70 = arith.constant dense<0.000000e+00> : vector<256x64xf32>
    %58 = tpu.matmul %55, %57, %cst_70 {dimension_numbers = #tpu.dot_dimension_numbers<[1], [0], [0], [1], [0, 0, 1, 1], [], []>} : vector<256x128xbf16>, vector<128x64xbf16>, vector<256x64xf32> -> vector<256x64xf32>
    %59 = arith.addf %52, %58 : vector<256x64xf32>
    %c0_71 = arith.constant 0 : index
    %c2_72 = arith.constant 2 : index
    %c2_73 = arith.constant 2 : index
    %c0_74 = arith.constant 0 : index
    %60 = vector.load %arg2[%c0_71, %c2_72, %c2_73, %c0_74] : memref<1x18x18x128xbf16, #tpu.memory_space<vmem>>, vector<1x16x16x128xbf16>
    %61 = vector.shape_cast %60 : vector<1x16x16x128xbf16> to vector<16x16x128xbf16>
    %62 = vector.shape_cast %61 : vector<16x16x128xbf16> to vector<256x128xbf16>
    %c2_75 = arith.constant 2 : index
    %c2_76 = arith.constant 2 : index
    %c0_77 = arith.constant 0 : index
    %c0_78 = arith.constant 0 : index
    %63 = vector.load %arg3[%c2_75, %c2_76, %c0_77, %c0_78] : memref<3x3x128x64xbf16, #tpu.memory_space<vmem>>, vector<1x1x128x64xbf16>
    %64 = vector.shape_cast %63 : vector<1x1x128x64xbf16> to vector<128x64xbf16>
    %cst_79 = arith.constant dense<0.000000e+00> : vector<256x64xf32>
    %65 = tpu.matmul %62, %64, %cst_79 {dimension_numbers = #tpu.dot_dimension_numbers<[1], [0], [0], [1], [0, 0, 1, 1], [], []>} : vector<256x128xbf16>, vector<128x64xbf16>, vector<256x64xf32> -> vector<256x64xf32>
    %66 = arith.addf %59, %65 : vector<256x64xf32>
    %c0_80 = arith.constant 0 : index
    %c0_81 = arith.constant 0 : index
    %67 = vector.load %arg7[%c0_80, %c0_81] : memref<256x64xf32, #tpu.memory_space<vmem>>, vector<256x64xf32>
    tpu.vector_store %arg7[%c0_80, %c0_81], %66 {strides = array<i32>} : memref<256x64xf32, #tpu.memory_space<vmem>>, vector<256x64xf32>,
    %c1_i32 = arith.constant 1 : i32
    %68 = arith.cmpi eq, %arg1, %c1_i32 : i32
    %69 = arith.extui %68 : i1 to i32
    %c0_i32_82 = arith.constant 0 : i32
    %70 = arith.cmpi ne, %69, %c0_i32_82 : i32
    scf.if %70 {
      %c0_83 = arith.constant 0 : index
      %c0_84 = arith.constant 0 : index
      %71 = vector.load %arg7[%c0_83, %c0_84] : memref<256x64xf32, #tpu.memory_space<vmem>>, vector<256x64xf32>
      %c0_85 = arith.constant 0 : index
      %c0_86 = arith.constant 0 : index
      %72 = vector.load %arg4[%c0_85, %c0_86] : memref<1x64xf32, #tpu.memory_space<vmem>>, vector<1x64xf32>
      %73 = vector.broadcast %72 : vector<1x64xf32> to vector<256x64xf32>
      %74 = arith.mulf %71, %73 : vector<256x64xf32>
      %c0_87 = arith.constant 0 : index
      %c0_88 = arith.constant 0 : index
      %75 = vector.load %arg5[%c0_87, %c0_88] : memref<1x64xf32, #tpu.memory_space<vmem>>, vector<1x64xf32>
      %76 = vector.broadcast %75 : vector<1x64xf32> to vector<256x64xf32>
      %77 = arith.addf %74, %76 : vector<256x64xf32>
      %cst_89 = arith.constant 0.000000e+00 : f32
      %78 = vector.broadcast %cst_89 : f32 to vector<256x64xf32>
      %79 = arith.maximumf %77, %78 : vector<256x64xf32>
      %80 = arith.truncf %79 : vector<256x64xf32> to vector<256x64xbf16>
      %c0_90 = arith.constant 0 : index
      %c0_91 = arith.constant 0 : index
      %c0_92 = arith.constant 0 : index
      %81 = vector.load %arg6[%c0_90, %c0_91, %c0_92] : memref<1x256x64xbf16, #tpu.memory_space<vmem>>, vector<1x256x64xbf16>
      %82 = vector.shape_cast %81 : vector<1x256x64xbf16> to vector<256x64xbf16>
      %83 = vector.shape_cast %80 : vector<256x64xbf16> to vector<1x256x64xbf16>
      tpu.vector_store %arg6[%c0_90, %c0_91, %c0_92], %83 {strides = array<i32>} : memref<1x256x64xbf16, #tpu.memory_space<vmem>>, vector<1x256x64xbf16>,
    } else {
    }
    return
  }
  func.func @transform_0(%arg0: i32, %arg1: i32) -> (i32, i32, i32, i32) {
    %c0_i32 = arith.constant 0 : i32
    %c0_i32_0 = arith.constant 0 : i32
    %c0_i32_1 = arith.constant 0 : i32
    return %arg0, %c0_i32, %c0_i32_0, %arg1 : i32, i32, i32, i32
  }
  func.func @transform_1(%arg0: i32, %arg1: i32) -> (i32, i32, i32, i32) {
    %c0_i32 = arith.constant 0 : i32
    %c0_i32_0 = arith.constant 0 : i32
    %c0_i32_1 = arith.constant 0 : i32
    %c0_i32_2 = arith.constant 0 : i32
    return %c0_i32, %c0_i32_0, %arg1, %c0_i32_1 : i32, i32, i32, i32
  }
  func.func @transform_2(%arg0: i32, %arg1: i32) -> (i32, i32) {
    %c0_i32 = arith.constant 0 : i32
    %c0_i32_0 = arith.constant 0 : i32
    %c0_i32_1 = arith.constant 0 : i32
    return %c0_i32, %c0_i32_0 : i32, i32
  }
  func.func @transform_3(%arg0: i32, %arg1: i32) -> (i32, i32) {
    %c0_i32 = arith.constant 0 : i32
    %c0_i32_0 = arith.constant 0 : i32
    %c0_i32_1 = arith.constant 0 : i32
    return %c0_i32, %c0_i32_0 : i32, i32
  }
  func.func @transform_4(%arg0: i32, %arg1: i32) -> (i32, i32, i32) {
    %c0_i32 = arith.constant 0 : i32
    %c0_i32_0 = arith.constant 0 : i32
    %c0_i32_1 = arith.constant 0 : i32
    return %arg0, %c0_i32, %c0_i32_0 : i32, i32, i32
  }
}

</mosaic_0001>

<bundles_post_ra>
// kernel: tpu_custom_call.1
= control target key start
LH: loop header
LB: loop body
LE: loop exit
PB: predicated region body
PF: predicated region fallthrough
CT: control target
= control target key end

     0   :  { %s8155_s15 = smov 0   ;;  %s8157_s16 = smov 0   ;;  %s10412_s0 = inlined_call_operand.vmem [shape: bf16[2,18,18,256], index: 0, kind: input, shape index: {}]   ;;  %s10413_s1 = inlined_call_operand.vmem [shape: bf16[3,3,256,64], index: 1, kind: input, shape index: {}]   ;;  %s10414_s2 = inlined_call_operand.vmem [shape: f32[1,64], index: 2, kind: input, shape index: {}]   ;;  %s10415_s3 = inlined_call_operand.vmem [shape: f32[1,64], index: 3, kind: input, shape index: {}]   ;;  %s10416_s4 = inlined_call_operand.vmem [shape: bf16[2,256,64], index: 4, kind: output, shape index: {}]  }
   0x1   :  { %s8159_s17 = smov 0   ;;  %s8161_s18 = smov 0  }
   0x2   :  { %s8163_s19 = smov 0   ;;  %s8165_s20 = smov 0  }
   0x3   :  { %s8167_s21 = smov 0   ;;  %s8169_s22 = smov 0  }
   0x4   :  { %s8171_s23 = smov 0  }
   0x5 LB: > { %s23_s24 = sadd.s32 1, %s8119_s21  ;;  %s26_s25 = sadd.s32 1, %s8123_s22  ;;  %s8127_s23 = sphi %s8171_s23, %s14_s23   ;;  %s8123_s22 = sphi %s8169_s22, %s10508_s22   ;;  %s8119_s21 = sphi %s8167_s21, %s10507_s21   ;;  %s8115_s20 = sphi %s8165_s20, %s10506_s20   ;;  %s8111_s19 = sphi %s8163_s19, %s10505_s19   ;;  %s8107_s18 = sphi %s8161_s18, %s10504_s18   ;;  %s8103_s17 = sphi %s8159_s17, %s10503_s17   ;;  %s8099_s16 = sphi %s8157_s16, %s10502_s16   ;;  %s8095_s15 = sphi %s8155_s15, %s10501_s15  }
   0x6   : > { %p24_p0 = scmp.ge.s32.totalorder %s23_s24, 2  ;;  %p42_p1 = scmp.ne.s32.totalorder %s8107_s18, %s8103_s17 }
   0x7   : > { %p43_p2 = scmp.eq.s32.totalorder %s8127_s23, 0  ;;  %s61_s28 = sadd.s32 1, %s8099_s16 }
   0x8   : > { %s10510_s24 = smov (%p24_p0, %s23_s24), 0  ;;  %s10512_s25 = smov (!%p24_p0, %s26_s25), %s8123_s22 }
   0x9   : > { %s31_s26 = ssub.s32 %s8119_s21, %s10510_s24  ;;  %p8210_p3 = por %p43_p2, %p42_p1 }
   0xa   : > { %p28_p4 = scmp.ge.s32.totalorder %s10512_s25, 2  ;;  %p59_p5 = scmp.eq.s32.totalorder %s31_s26, 0 }
   0xb   : > { %p68_p6 = scmp.ne.s32.totalorder %s8099_s16, %s8095_s15  ;;  %s35_s7 = sadd.s32 1, %s8107_s18 }
   0xc   : > { %s10514_s25 = smov (%p28_p4, %s10512_s25), 0  ;;  %p6532_p9 = scmp.ge.s32.totalorder %s8127_s23, 4 }
   0xd   : > { %s8220_s29 = scalar_select %p59_p5, %s8099_s16, %s61_s28  }
   0xe   : > { %s30_s30 = ssub.s32 %s8123_s22, %s10514_s25  ;;  %p8224_p7 = por %p68_p6, %p43_p2 }
   0xf   : > { %s32_s6 = sor.u32 %s31_s26, %s30_s30  ;;  %168 = sbr.rel (%p6532_p9) target bundleno = 104 (0x68), region = 24 }
  0x10   : > { %p33_p8 = scmp.eq.s32.totalorder %s32_s6, 0 }
  0x12   : > { %s8230_s8 = scalar_select %p33_p8, %s8107_s18, %s35_s7  }
  0x14   : > { %171 = sbr.rel (!%p8210_p3) target bundleno = 63 (0x3f), region = 28  ;;  %s173_s9 = sand.u32 (%p8210_p3), 1, %s8107_s18  }
  0x15   : > { %s7860_s10 = smul.u32 (%p8210_p3), 108, %s8123_s22 }
  0x16   : > { %s7859_s11 = smul.u32 (%p8210_p3), 216, %s173_s9 }
  0x17   : > { %s177_s12 = sadd.s32 (%p8210_p3), %s8119_s21, %s7860_s10 }
  0x18   : > { %s6533_s13 = sshll.u32 (%p8210_p3), %s177_s12, 2  ;;  %s8246_s27 = scalar_lea.vmem (%p8210_p3), [#allocation3], %s7859_s11 }
  0x19   : > { %s8241_s28 = scalar_lea.vmem %s10412_s0, %s6533_s13 }
  0x1a   : > { %v196_v0 = vld [vmem:[%s8241_s28] sm:$0xf]  ;;  %v198_v1 = vld [vmem:[%s8241_s28 + $0x8] sm:$0xf]  ;;  %v200_v2 = vld [vmem:[%s8241_s28 + $0x10] sm:$0xf] }
  0x1b   : > { %197 = vst [vmem:[%s8246_s27] sm:$0xf] %v196_v0  ;;  %199 = vst [vmem:[%s8246_s27 + $0x4] sm:$0xf] %v198_v1  ;;  %v202_v3 = vld [vmem:[%s8241_s28 + $0x18] sm:$0xf] }
  0x1c   : > { %201 = vst [vmem:[%s8246_s27 + $0x8] sm:$0xf] %v200_v2  ;;  %v204_v4 = vld [vmem:[%s8241_s28 + $0x20] sm:$0xf]  ;;  %v206_v5 = vld [vmem:[%s8241_s28 + $0x28] sm:$0xf] }
  0x1d   : > { %203 = vst [vmem:[%s8246_s27 + $0xc] sm:$0xf] %v202_v3  ;;  %205 = vst [vmem:[%s8246_s27 + $0x10] sm:$0xf] %v204_v4  ;;  %v208_v6 = vld [vmem:[%s8241_s28 + $0x30] sm:$0xf] }
  0x1e   : > { %207 = vst [vmem:[%s8246_s27 + $0x14] sm:$0xf] %v206_v5  ;;  %v210_v7 = vld [vmem:[%s8241_s28 + $0x38] sm:$0xf]  ;;  %v212_v8 = vld [vmem:[%s8241_s28 + $0x40] sm:$0xf] }
  0x1f   : > { %209 = vst [vmem:[%s8246_s27 + $0x18] sm:$0xf] %v208_v6  ;;  %211 = vst [vmem:[%s8246_s27 + $0x1c] sm:$0xf] %v210_v7  ;;  %v214_v9 = vld [vmem:[%s8241_s28 + $0x48] sm:$0xf] }
  0x20   : > { %213 = vst [vmem:[%s8246_s27 + $0x20] sm:$0xf] %v212_v8  ;;  %v216_v10 = vld [vmem:[%s8241_s28 + $0x50] sm:$0xf]  ;;  %v218_v11 = vld [vmem:[%s8241_s28 + $0x58] sm:$0xf] }
  0x21   : > { %215 = vst [vmem:[%s8246_s27 + $0x24] sm:$0xf] %v214_v9  ;;  %217 = vst [vmem:[%s8246_s27 + $0x28] sm:$0xf] %v216_v10  ;;  %v220_v12 = vld [vmem:[%s8241_s28 + $0x60] sm:$0xf] }
  0x22   : > { %219 = vst [vmem:[%s8246_s27 + $0x2c] sm:$0xf] %v218_v11  ;;  %v222_v13 = vld [vmem:[%s8241_s28 + $0x68] sm:$0xf]  ;;  %v224_v14 = vld [vmem:[%s8241_s28 + $0x70] sm:$0xf] }
  0x23   : > { %221 = vst [vmem:[%s8246_s27 + $0x30] sm:$0xf] %v220_v12  ;;  %223 = vst [vmem:[%s8246_s27 + $0x34] sm:$0xf] %v222_v13  ;;  %v226_v15 = vld [vmem:[%s8241_s28 + $0x78] sm:$0xf] }
  0x24   : > { %225 = vst [vmem:[%s8246_s27 + $0x38] sm:$0xf] %v224_v14  ;;  %v228_v16 = vld [vmem:[%s8241_s28 + $0x80] sm:$0xf]  ;;  %v230_v17 = vld [vmem:[%s8241_s28 + $0x88] sm:$0xf] }
  0x25   : > { %227 = vst [vmem:[%s8246_s27 + $0x3c] sm:$0xf] %v226_v15  ;;  %229 = vst [vmem:[%s8246_s27 + $0x40] sm:$0xf] %v228_v16  ;;  %v232_v18 = vld [vmem:[%s8241_s28 + $0x90] sm:$0xf] }
  0x26   : > { %231 = vst [vmem:[%s8246_s27 + $0x44] sm:$0xf] %v230_v17  ;;  %v234_v19 = vld [vmem:[%s8241_s28 + $0x98] sm:$0xf]  ;;  %v236_v20 = vld [vmem:[%s8241_s28 + $0xa0] sm:$0xf] }
  0x27   : > { %233 = vst [vmem:[%s8246_s27 + $0x48] sm:$0xf] %v232_v18  ;;  %235 = vst [vmem:[%s8246_s27 + $0x4c] sm:$0xf] %v234_v19  ;;  %v238_v21 = vld [vmem:[%s8241_s28 + $0xa8] sm:$0xf] }
  0x28   : > { %237 = vst [vmem:[%s8246_s27 + $0x50] sm:$0xf] %v236_v20  ;;  %v240_v22 = vld [vmem:[%s8241_s28 + $0xb0] sm:$0xf]  ;;  %v242_v23 = vld [vmem:[%s8241_s28 + $0xb8] sm:$0xf] }
  0x29   : > { %239 = vst [vmem:[%s8246_s27 + $0x54] sm:$0xf] %v238_v21  ;;  %241 = vst [vmem:[%s8246_s27 + $0x58] sm:$0xf] %v240_v22  ;;  %v244_v24 = vld [vmem:[%s8241_s28 + $0xc0] sm:$0xf] }
  0x2a   : > { %243 = vst [vmem:[%s8246_s27 + $0x5c] sm:$0xf] %v242_v23  ;;  %v246_v25 = vld [vmem:[%s8241_s28 + $0xc8] sm:$0xf]  ;;  %v248_v26 = vld [vmem:[%s8241_s28 + $0xd0] sm:$0xf] }
  0x2b   : > { %245 = vst [vmem:[%s8246_s27 + $0x60] sm:$0xf] %v244_v24  ;;  %247 = vst [vmem:[%s8246_s27 + $0x64] sm:$0xf] %v246_v25  ;;  %v250_v27 = vld [vmem:[%s8241_s28 + $0xd8] sm:$0xf] }
  0x2c   : > { %249 = vst [vmem:[%s8246_s27 + $0x68] sm:$0xf] %v248_v26  ;;  %v252_v28 = vld [vmem:[%s8241_s28 + $0xe0] sm:$0xf]  ;;  %v254_v29 = vld [vmem:[%s8241_s28 + $0xe8] sm:$0xf] }
  0x2d   : > { %251 = vst [vmem:[%s8246_s27 + $0x6c] sm:$0xf] %v250_v27  ;;  %253 = vst [vmem:[%s8246_s27 + $0x70] sm:$0xf] %v252_v28  ;;  %v256_v30 = vld [vmem:[%s8241_s28 + $0xf0] sm:$0xf] }
  0x2e   : > { %255 = vst [vmem:[%s8246_s27 + $0x74] sm:$0xf] %v254_v29  ;;  %v258_v31 = vld [vmem:[%s8241_s28 + $0xf8] sm:$0xf]  ;;  %v260_v32 = vld [vmem:[%s8241_s28 + $0x100] sm:$0xf] }
  0x2f   : > { %257 = vst [vmem:[%s8246_s27 + $0x78] sm:$0xf] %v256_v30  ;;  %259 = vst [vmem:[%s8246_s27 + $0x7c] sm:$0xf] %v258_v31  ;;  %v262_v33 = vld [vmem:[%s8241_s28 + $0x108] sm:$0xf] }
  0x30   : > { %261 = vst [vmem:[%s8246_s27 + $0x80] sm:$0xf] %v260_v32  ;;  %v264_v34 = vld [vmem:[%s8241_s28 + $0x110] sm:$0xf]  ;;  %v266_v35 = vld [vmem:[%s8241_s28 + $0x118] sm:$0xf] }
  0x31   : > { %263 = vst [vmem:[%s8246_s27 + $0x84] sm:$0xf] %v262_v33  ;;  %265 = vst [vmem:[%s8246_s27 + $0x88] sm:$0xf] %v264_v34  ;;  %v268_v36 = vld [vmem:[%s8241_s28 + $0x120] sm:$0xf] }
  0x32   : > { %267 = vst [vmem:[%s8246_s27 + $0x8c] sm:$0xf] %v266_v35  ;;  %v270_v37 = vld [vmem:[%s8241_s28 + $0x128] sm:$0xf]  ;;  %v272_v38 = vld [vmem:[%s8241_s28 + $0x130] sm:$0xf] }
  0x33   : > { %269 = vst [vmem:[%s8246_s27 + $0x90] sm:$0xf] %v268_v36  ;;  %271 = vst [vmem:[%s8246_s27 + $0x94] sm:$0xf] %v270_v37  ;;  %v274_v39 = vld [vmem:[%s8241_s28 + $0x138] sm:$0xf] }
  0x34   : > { %273 = vst [vmem:[%s8246_s27 + $0x98] sm:$0xf] %v272_v38  ;;  %v276_v40 = vld [vmem:[%s8241_s28 + $0x140] sm:$0xf]  ;;  %v278_v41 = vld [vmem:[%s8241_s28 + $0x148] sm:$0xf] }
  0x35   : > { %275 = vst [vmem:[%s8246_s27 + $0x9c] sm:$0xf] %v274_v39  ;;  %277 = vst [vmem:[%s8246_s27 + $0xa0] sm:$0xf] %v276_v40  ;;  %v280_v42 = vld [vmem:[%s8241_s28 + $0x150] sm:$0xf] }
  0x36   : > { %279 = vst [vmem:[%s8246_s27 + $0xa4] sm:$0xf] %v278_v41  ;;  %v282_v43 = vld [vmem:[%s8241_s28 + $0x158] sm:$0xf]  ;;  %v284_v44 = vld [vmem:[%s8241_s28 + $0x160] sm:$0xf] }
  0x37   : > { %281 = vst [vmem:[%s8246_s27 + $0xa8] sm:$0xf] %v280_v42  ;;  %283 = vst [vmem:[%s8246_s27 + $0xac] sm:$0xf] %v282_v43  ;;  %v286_v45 = vld [vmem:[%s8241_s28 + $0x168] sm:$0xf] }
  0x38   : > { %285 = vst [vmem:[%s8246_s27 + $0xb0] sm:$0xf] %v284_v44  ;;  %v288_v46 = vld [vmem:[%s8241_s28 + $0x170] sm:$0xf]  ;;  %v290_v47 = vld [vmem:[%s8241_s28 + $0x178] sm:$0xf] }
  0x39   : > { %287 = vst [vmem:[%s8246_s27 + $0xb4] sm:$0xf] %v286_v45  ;;  %289 = vst [vmem:[%s8246_s27 + $0xb8] sm:$0xf] %v288_v46  ;;  %v292_v48 = vld [vmem:[%s8241_s28 + $0x180] sm:$0xf] }
  0x3a   : > { %291 = vst [vmem:[%s8246_s27 + $0xbc] sm:$0xf] %v290_v47  ;;  %v294_v49 = vld [vmem:[%s8241_s28 + $0x188] sm:$0xf]  ;;  %v296_v50 = vld [vmem:[%s8241_s28 + $0x190] sm:$0xf] }
  0x3b   : > { %293 = vst [vmem:[%s8246_s27 + $0xc0] sm:$0xf] %v292_v48  ;;  %295 = vst [vmem:[%s8246_s27 + $0xc4] sm:$0xf] %v294_v49  ;;  %v298_v51 = vld [vmem:[%s8241_s28 + $0x198] sm:$0xf] }
  0x3c   : > { %297 = vst [vmem:[%s8246_s27 + $0xc8] sm:$0xf] %v296_v50  ;;  %v300_v52 = vld [vmem:[%s8241_s28 + $0x1a0] sm:$0xf]  ;;  %v302_v53 = vld [vmem:[%s8241_s28 + $0x1a8] sm:$0xf] }
  0x3d   : > { %299 = vst [vmem:[%s8246_s27 + $0xcc] sm:$0xf] %v298_v51  ;;  %301 = vst [vmem:[%s8246_s27 + $0xd0] sm:$0xf] %v300_v52 }
  0x3e   : > { %303 = vst [vmem:[%s8246_s27 + $0xd4] sm:$0xf] %v302_v53 }
  0x3f PF: > { %435 = sbr.rel (!%p8224_p7) target bundleno = 104 (0x68), region = 69  ;;  %s437_s30 = sand.u32 (%p8224_p7), 1, %s8099_s16  }
  0x40   : > { %s7161_s6 = sshll.u32 (%p8224_p7), %s8119_s21, 6  ;;  %s7861_s7 = smul.u32 (%p8224_p7), 576, %s437_s30 }
  0x41   : > { %s8360_s11 = scalar_lea.vmem (%p8224_p7), %s10413_s1, %s7161_s6 }
  0x42   : > { %v459_v54 = vld [vmem:[%s8360_s11] sm:$0xff] (%p8224_p7)   ;;  %v463_v55 = vld [vmem:[%s8360_s11 + $0x8] sm:$0xff] (%p8224_p7)   ;;  %v467_v56 = vld [vmem:[%s8360_s11 + $0x10] sm:$0xff] (%p8224_p7)   ;;  %s8368_s5 = scalar_lea.vmem (%p8224_p7), [#allocation4], %s7861_s7 }
  0x43   : > { %v471_v57 = vld [vmem:[%s8360_s11 + $0x18] sm:$0xff] (%p8224_p7)   ;;  %v475_v58 = vld [vmem:[%s8360_s11 + $0x20] sm:$0xff] (%p8224_p7)   ;;  %v479_v59 = vld [vmem:[%s8360_s11 + $0x28] sm:$0xff] (%p8224_p7)   ;;  %460 = vst [vmem:[%s8368_s5] sm:$0xff] (%p8224_p7), %v459_v54  }
  0x44   : > { %464 = vst [vmem:[%s8368_s5 + $0x8] sm:$0xff] %v463_v55   ;;  %468 = vst [vmem:[%s8368_s5 + $0x10] sm:$0xff] %v467_v56   ;;  %v483_v60 = vld [vmem:[%s8360_s11 + $0x30] sm:$0xff]   ;;  %v487_v61 = vld [vmem:[%s8360_s11 + $0x38] sm:$0xff]  }
  0x45   : > { %472 = vst [vmem:[%s8368_s5 + $0x18] sm:$0xff] %v471_v57   ;;  %476 = vst [vmem:[%s8368_s5 + $0x20] sm:$0xff] %v475_v58   ;;  %v491_v62 = vld [vmem:[%s8360_s11 + $0x80] sm:$0xff]   ;;  %v495_v63 = vld [vmem:[%s8360_s11 + $0x88] sm:$0xff]  }
  0x46   : > { %480 = vst [vmem:[%s8368_s5 + $0x28] sm:$0xff] %v479_v59   ;;  %484 = vst [vmem:[%s8368_s5 + $0x30] sm:$0xff] %v483_v60   ;;  %v499_v0 = vld [vmem:[%s8360_s11 + $0x90] sm:$0xff]   ;;  %v503_v1 = vld [vmem:[%s8360_s11 + $0x98] sm:$0xff]  }
  0x47   : > { %488 = vst [vmem:[%s8368_s5 + $0x38] sm:$0xff] %v487_v61   ;;  %492 = vst [vmem:[%s8368_s5 + $0x40] sm:$0xff] %v491_v62   ;;  %v507_v2 = vld [vmem:[%s8360_s11 + $0xa0] sm:$0xff]   ;;  %v511_v3 = vld [vmem:[%s8360_s11 + $0xa8] sm:$0xff]  }
  0x48   : > { %496 = vst [vmem:[%s8368_s5 + $0x48] sm:$0xff] %v495_v63   ;;  %500 = vst [vmem:[%s8368_s5 + $0x50] sm:$0xff] %v499_v0   ;;  %v515_v4 = vld [vmem:[%s8360_s11 + $0xb0] sm:$0xff]   ;;  %v519_v5 = vld [vmem:[%s8360_s11 + $0xb8] sm:$0xff]  }
  0x49   : > { %504 = vst [vmem:[%s8368_s5 + $0x58] sm:$0xff] %v503_v1   ;;  %508 = vst [vmem:[%s8368_s5 + $0x60] sm:$0xff] %v507_v2   ;;  %v523_v6 = vld [vmem:[%s8360_s11 + $0x100] sm:$0xff]   ;;  %v527_v7 = vld [vmem:[%s8360_s11 + $0x108] sm:$0xff]  }
  0x4a   : > { %512 = vst [vmem:[%s8368_s5 + $0x68] sm:$0xff] %v511_v3   ;;  %516 = vst [vmem:[%s8368_s5 + $0x70] sm:$0xff] %v515_v4   ;;  %v531_v8 = vld [vmem:[%s8360_s11 + $0x110] sm:$0xff]   ;;  %v535_v9 = vld [vmem:[%s8360_s11 + $0x118] sm:$0xff]  }
  0x4b   : > { %520 = vst [vmem:[%s8368_s5 + $0x78] sm:$0xff] %v519_v5   ;;  %524 = vst [vmem:[%s8368_s5 + $0x80] sm:$0xff] %v523_v6   ;;  %v539_v10 = vld [vmem:[%s8360_s11 + $0x120] sm:$0xff]   ;;  %v543_v11 = vld [vmem:[%s8360_s11 + $0x128] sm:$0xff]  }
  0x4c   : > { %528 = vst [vmem:[%s8368_s5 + $0x88] sm:$0xff] %v527_v7   ;;  %532 = vst [vmem:[%s8368_s5 + $0x90] sm:$0xff] %v531_v8   ;;  %v547_v12 = vld [vmem:[%s8360_s11 + $0x130] sm:$0xff]   ;;  %v551_v13 = vld [vmem:[%s8360_s11 + $0x138] sm:$0xff]  }
  0x4d   : > { %536 = vst [vmem:[%s8368_s5 + $0x98] sm:$0xff] %v535_v9   ;;  %540 = vst [vmem:[%s8368_s5 + $0xa0] sm:$0xff] %v539_v10   ;;  %v555_v14 = vld [vmem:[%s8360_s11 + $0x180] sm:$0xff]   ;;  %v559_v15 = vld [vmem:[%s8360_s11 + $0x188] sm:$0xff]  }
  0x4e   : > { %544 = vst [vmem:[%s8368_s5 + $0xa8] sm:$0xff] %v543_v11   ;;  %548 = vst [vmem:[%s8368_s5 + $0xb0] sm:$0xff] %v547_v12   ;;  %v563_v16 = vld [vmem:[%s8360_s11 + $0x190] sm:$0xff]   ;;  %v567_v17 = vld [vmem:[%s8360_s11 + $0x198] sm:$0xff]  }
  0x4f   : > { %552 = vst [vmem:[%s8368_s5 + $0xb8] sm:$0xff] %v551_v13   ;;  %556 = vst [vmem:[%s8368_s5 + $0xc0] sm:$0xff] %v555_v14   ;;  %v571_v18 = vld [vmem:[%s8360_s11 + $0x1a0] sm:$0xff]   ;;  %v575_v19 = vld [vmem:[%s8360_s11 + $0x1a8] sm:$0xff]  }
  0x50   : > { %560 = vst [vmem:[%s8368_s5 + $0xc8] sm:$0xff] %v559_v15   ;;  %564 = vst [vmem:[%s8368_s5 + $0xd0] sm:$0xff] %v563_v16   ;;  %v579_v20 = vld [vmem:[%s8360_s11 + $0x1b0] sm:$0xff]   ;;  %v583_v21 = vld [vmem:[%s8360_s11 + $0x1b8] sm:$0xff]  }
  0x51   : > { %568 = vst [vmem:[%s8368_s5 + $0xd8] sm:$0xff] %v567_v17   ;;  %572 = vst [vmem:[%s8368_s5 + $0xe0] sm:$0xff] %v571_v18   ;;  %v587_v22 = vld [vmem:[%s8360_s11 + $0x200] sm:$0xff]   ;;  %v591_v23 = vld [vmem:[%s8360_s11 + $0x208] sm:$0xff]  }
  0x52   : > { %576 = vst [vmem:[%s8368_s5 + $0xe8] sm:$0xff] %v575_v19   ;;  %580 = vst [vmem:[%s8368_s5 + $0xf0] sm:$0xff] %v579_v20   ;;  %v595_v24 = vld [vmem:[%s8360_s11 + $0x210] sm:$0xff]   ;;  %v599_v25 = vld [vmem:[%s8360_s11 + $0x218] sm:$0xff]  }
  0x53   : > { %584 = vst [vmem:[%s8368_s5 + $0xf8] sm:$0xff] %v583_v21   ;;  %588 = vst [vmem:[%s8368_s5 + $0x100] sm:$0xff] %v587_v22   ;;  %v603_v26 = vld [vmem:[%s8360_s11 + $0x220] sm:$0xff]   ;;  %v607_v27 = vld [vmem:[%s8360_s11 + $0x228] sm:$0xff]  }
  0x54   : > { %592 = vst [vmem:[%s8368_s5 + $0x108] sm:$0xff] %v591_v23   ;;  %596 = vst [vmem:[%s8368_s5 + $0x110] sm:$0xff] %v595_v24   ;;  %v611_v28 = vld [vmem:[%s8360_s11 + $0x230] sm:$0xff]   ;;  %v615_v29 = vld [vmem:[%s8360_s11 + $0x238] sm:$0xff]  }
  0x55   : > { %600 = vst [vmem:[%s8368_s5 + $0x118] sm:$0xff] %v599_v25   ;;  %604 = vst [vmem:[%s8368_s5 + $0x120] sm:$0xff] %v603_v26   ;;  %v619_v30 = vld [vmem:[%s8360_s11 + $0x280] sm:$0xff]   ;;  %v623_v31 = vld [vmem:[%s8360_s11 + $0x288] sm:$0xff]  }
  0x56   : > { %608 = vst [vmem:[%s8368_s5 + $0x128] sm:$0xff] %v607_v27   ;;  %612 = vst [vmem:[%s8368_s5 + $0x130] sm:$0xff] %v611_v28   ;;  %v627_v32 = vld [vmem:[%s8360_s11 + $0x290] sm:$0xff]   ;;  %v631_v33 = vld [vmem:[%s8360_s11 + $0x298] sm:$0xff]  }
  0x57   : > { %616 = vst [vmem:[%s8368_s5 + $0x138] sm:$0xff] %v615_v29   ;;  %620 = vst [vmem:[%s8368_s5 + $0x140] sm:$0xff] %v619_v30   ;;  %v635_v34 = vld [vmem:[%s8360_s11 + $0x2a0] sm:$0xff]   ;;  %v639_v35 = vld [vmem:[%s8360_s11 + $0x2a8] sm:$0xff]  }
  0x58   : > { %624 = vst [vmem:[%s8368_s5 + $0x148] sm:$0xff] %v623_v31   ;;  %628 = vst [vmem:[%s8368_s5 + $0x150] sm:$0xff] %v627_v32   ;;  %v643_v36 = vld [vmem:[%s8360_s11 + $0x2b0] sm:$0xff]   ;;  %v647_v37 = vld [vmem:[%s8360_s11 + $0x2b8] sm:$0xff]  }
  0x59   : > { %632 = vst [vmem:[%s8368_s5 + $0x158] sm:$0xff] %v631_v33   ;;  %636 = vst [vmem:[%s8368_s5 + $0x160] sm:$0xff] %v635_v34   ;;  %v651_v38 = vld [vmem:[%s8360_s11 + $0x300] sm:$0xff]   ;;  %v655_v39 = vld [vmem:[%s8360_s11 + $0x308] sm:$0xff]  }
  0x5a   : > { %640 = vst [vmem:[%s8368_s5 + $0x168] sm:$0xff] %v639_v35   ;;  %644 = vst [vmem:[%s8368_s5 + $0x170] sm:$0xff] %v643_v36   ;;  %v659_v40 = vld [vmem:[%s8360_s11 + $0x310] sm:$0xff]   ;;  %v663_v41 = vld [vmem:[%s8360_s11 + $0x318] sm:$0xff]  }
  0x5b   : > { %648 = vst [vmem:[%s8368_s5 + $0x178] sm:$0xff] %v647_v37   ;;  %652 = vst [vmem:[%s8368_s5 + $0x180] sm:$0xff] %v651_v38   ;;  %v667_v42 = vld [vmem:[%s8360_s11 + $0x320] sm:$0xff]   ;;  %v671_v43 = vld [vmem:[%s8360_s11 + $0x328] sm:$0xff]  }
  0x5c   : > { %656 = vst [vmem:[%s8368_s5 + $0x188] sm:$0xff] %v655_v39   ;;  %660 = vst [vmem:[%s8368_s5 + $0x190] sm:$0xff] %v659_v40   ;;  %v675_v44 = vld [vmem:[%s8360_s11 + $0x330] sm:$0xff]   ;;  %v679_v45 = vld [vmem:[%s8360_s11 + $0x338] sm:$0xff]  }
  0x5d   : > { %664 = vst [vmem:[%s8368_s5 + $0x198] sm:$0xff] %v663_v41   ;;  %668 = vst [vmem:[%s8368_s5 + $0x1a0] sm:$0xff] %v667_v42   ;;  %v683_v46 = vld [vmem:[%s8360_s11 + $0x380] sm:$0xff]   ;;  %v687_v47 = vld [vmem:[%s8360_s11 + $0x388] sm:$0xff]  }
  0x5e   : > { %672 = vst [vmem:[%s8368_s5 + $0x1a8] sm:$0xff] %v671_v43   ;;  %676 = vst [vmem:[%s8368_s5 + $0x1b0] sm:$0xff] %v675_v44   ;;  %v691_v48 = vld [vmem:[%s8360_s11 + $0x390] sm:$0xff]   ;;  %v695_v49 = vld [vmem:[%s8360_s11 + $0x398] sm:$0xff]  }
  0x5f   : > { %680 = vst [vmem:[%s8368_s5 + $0x1b8] sm:$0xff] %v679_v45   ;;  %684 = vst [vmem:[%s8368_s5 + $0x1c0] sm:$0xff] %v683_v46   ;;  %v699_v50 = vld [vmem:[%s8360_s11 + $0x3a0] sm:$0xff]   ;;  %v703_v51 = vld [vmem:[%s8360_s11 + $0x3a8] sm:$0xff]  }
  0x60   : > { %688 = vst [vmem:[%s8368_s5 + $0x1c8] sm:$0xff] %v687_v47   ;;  %692 = vst [vmem:[%s8368_s5 + $0x1d0] sm:$0xff] %v691_v48   ;;  %v707_v52 = vld [vmem:[%s8360_s11 + $0x3b0] sm:$0xff]   ;;  %v711_v53 = vld [vmem:[%s8360_s11 + $0x3b8] sm:$0xff]  }
  0x61   : > { %696 = vst [vmem:[%s8368_s5 + $0x1d8] sm:$0xff] %v695_v49   ;;  %700 = vst [vmem:[%s8368_s5 + $0x1e0] sm:$0xff] %v699_v50   ;;  %v715_v54 = vld [vmem:[%s8360_s11 + $0x400] sm:$0xff]   ;;  %v719_v55 = vld [vmem:[%s8360_s11 + $0x408] sm:$0xff]  }
  0x62   : > { %704 = vst [vmem:[%s8368_s5 + $0x1e8] sm:$0xff] %v703_v51   ;;  %708 = vst [vmem:[%s8368_s5 + $0x1f0] sm:$0xff] %v707_v52   ;;  %v723_v56 = vld [vmem:[%s8360_s11 + $0x410] sm:$0xff]   ;;  %v727_v57 = vld [vmem:[%s8360_s11 + $0x418] sm:$0xff]  }
  0x63   : > { %712 = vst [vmem:[%s8368_s5 + $0x1f8] sm:$0xff] %v711_v53   ;;  %716 = vst [vmem:[%s8368_s5 + $0x200] sm:$0xff] %v715_v54   ;;  %v731_v58 = vld [vmem:[%s8360_s11 + $0x420] sm:$0xff]   ;;  %v735_v59 = vld [vmem:[%s8360_s11 + $0x428] sm:$0xff]  }
  0x64   : > { %720 = vst [vmem:[%s8368_s5 + $0x208] sm:$0xff] %v719_v55   ;;  %724 = vst [vmem:[%s8368_s5 + $0x210] sm:$0xff] %v723_v56   ;;  %v739_v60 = vld [vmem:[%s8360_s11 + $0x430] sm:$0xff]   ;;  %v743_v61 = vld [vmem:[%s8360_s11 + $0x438] sm:$0xff]  }
  0x65   : > { %728 = vst [vmem:[%s8368_s5 + $0x218] sm:$0xff] %v727_v57   ;;  %732 = vst [vmem:[%s8368_s5 + $0x220] sm:$0xff] %v731_v58  }
  0x66   : > { %736 = vst [vmem:[%s8368_s5 + $0x228] sm:$0xff] %v735_v59   ;;  %740 = vst [vmem:[%s8368_s5 + $0x230] sm:$0xff] %v739_v60  }
  0x67   : > { %744 = vst [vmem:[%s8368_s5 + $0x238] sm:$0xff] %v743_v61  }
  0x68 PF: > { %p6536_p10 = scmp.ge.s32.totalorder %s8127_s23, 1  ;;  %p1057_p11 = scmp.lt.s32.totalorder %s8127_s23, 5 }
  0x6a   : > { %p1058_p12 = pnand %p6536_p10, %p1057_p11 }
  0x6c   : > { %1061 = sbr.rel (%p1058_p12) target bundleno = 744 (0x2e8), region = 110 }
  0x71   : > { %s1064_s12 = sand.u32 1, %s8103_s17   ;;  %s1071_s13 = sand.u32 1, %s8095_s15  }
  0x72   : > { %s7862_s14 = smul.u32 216, %s1064_s12  ;;  %p1101_p13 = scmp.lt.s32.totalorder %s8115_s20, 1 }
  0x73   : > { %s7863_s26 = smul.u32 576, %s1071_s13  ;;  %p6539_p0 = scmp.ne.s32.totalorder %s8111_s19, 0 }
  0x74   : > { %s10516_s20 = smov (!%p1101_p13, %s8115_s20), 1  ;;  %s8519_s7 = scalar_lea.vmem [#allocation3], %s7862_s14 }
  0x75   : > { %s7162_s28 = sshll.u32 %s10516_s20, 7  ;;  %s8521_s9 = scalar_lea.vmem [#allocation4], %s7863_s26 }
  0x76   : > { %s8517_s6 = scalar_lea.vmem %s10416_s4, %s7162_s28  ;;  %1110 = sbr.rel (%p6539_p0) target bundleno = 140 (0x8c), region = 122 }
  0x7b   : > { %vm1111_vm0 = vcmask 523264   ;;  %v8129_v62 = vmov 0.0  }
  0x7c   : > { %1112 = vst.msk [vmem:[#allocation2] sm:$0xff] %vm1111_vm0, %v8129_v62  ;;  %1113 = vst.msk [vmem:[#allocation2 + $0x8] sm:$0xff] %vm1111_vm0, %v8129_v62 }
  0x7d   : > { %1114 = vst.msk [vmem:[#allocation2 + $0x10] sm:$0xff] %vm1111_vm0, %v8129_v62  ;;  %1115 = vst.msk [vmem:[#allocation2 + $0x18] sm:$0xff] %vm1111_vm0, %v8129_v62 }
  0x7e   : > { %1116 = vst.msk [vmem:[#allocation2 + $0x20] sm:$0xff] %vm1111_vm0, %v8129_v62  ;;  %1117 = vst.msk [vmem:[#allocation2 + $0x28] sm:$0xff] %vm1111_vm0, %v8129_v62 }
  0x7f   : > { %1118 = vst.msk [vmem:[#allocation2 + $0x30] sm:$0xff] %vm1111_vm0, %v8129_v62  ;;  %1119 = vst.msk [vmem:[#allocation2 + $0x38] sm:$0xff] %vm1111_vm0, %v8129_v62 }
  0x80   : > { %1120 = vst.msk [vmem:[#allocation2 + $0x40] sm:$0xff] %vm1111_vm0, %v8129_v62  ;;  %1121 = vst.msk [vmem:[#allocation2 + $0x48] sm:$0xff] %vm1111_vm0, %v8129_v62 }
  0x81   : > { %1122 = vst.msk [vmem:[#allocation2 + $0x50] sm:$0xff] %vm1111_vm0, %v8129_v62  ;;  %1123 = vst.msk [vmem:[#allocation2 + $0x58] sm:$0xff] %vm1111_vm0, %v8129_v62 }
  0x82   : > { %1124 = vst.msk [vmem:[#allocation2 + $0x60] sm:$0xff] %vm1111_vm0, %v8129_v62  ;;  %1125 = vst.msk [vmem:[#allocation2 + $0x68] sm:$0xff] %vm1111_vm0, %v8129_v62 }
  0x83   : > { %1126 = vst.msk [vmem:[#allocation2 + $0x70] sm:$0xff] %vm1111_vm0, %v8129_v62  ;;  %1127 = vst.msk [vmem:[#allocation2 + $0x78] sm:$0xff] %vm1111_vm0, %v8129_v62 }
  0x84   : > { %1128 = vst.msk [vmem:[#allocation2 + $0x80] sm:$0xff] %vm1111_vm0, %v8129_v62  ;;  %1129 = vst.msk [vmem:[#allocation2 + $0x88] sm:$0xff] %vm1111_vm0, %v8129_v62 }
  0x85   : > { %1130 = vst.msk [vmem:[#allocation2 + $0x90] sm:$0xff] %vm1111_vm0, %v8129_v62  ;;  %1131 = vst.msk [vmem:[#allocation2 + $0x98] sm:$0xff] %vm1111_vm0, %v8129_v62 }
  0x86   : > { %1132 = vst.msk [vmem:[#allocation2 + $0xa0] sm:$0xff] %vm1111_vm0, %v8129_v62  ;;  %1133 = vst.msk [vmem:[#allocation2 + $0xa8] sm:$0xff] %vm1111_vm0, %v8129_v62 }
  0x87   : > { %1134 = vst.msk [vmem:[#allocation2 + $0xb0] sm:$0xff] %vm1111_vm0, %v8129_v62  ;;  %1135 = vst.msk [vmem:[#allocation2 + $0xb8] sm:$0xff] %vm1111_vm0, %v8129_v62 }
  0x88   : > { %1136 = vst.msk [vmem:[#allocation2 + $0xc0] sm:$0xff] %vm1111_vm0, %v8129_v62  ;;  %1137 = vst.msk [vmem:[#allocation2 + $0xc8] sm:$0xff] %vm1111_vm0, %v8129_v62 }
  0x89   : > { %1138 = vst.msk [vmem:[#allocation2 + $0xd0] sm:$0xff] %vm1111_vm0, %v8129_v62  ;;  %1139 = vst.msk [vmem:[#allocation2 + $0xd8] sm:$0xff] %vm1111_vm0, %v8129_v62 }
  0x8a   : > { %1140 = vst.msk [vmem:[#allocation2 + $0xe0] sm:$0xff] %vm1111_vm0, %v8129_v62  ;;  %1141 = vst.msk [vmem:[#allocation2 + $0xe8] sm:$0xff] %vm1111_vm0, %v8129_v62 }
  0x8b   : > { %1142 = vst.msk [vmem:[#allocation2 + $0xf0] sm:$0xff] %vm1111_vm0, %v8129_v62  ;;  %1143 = vst.msk [vmem:[#allocation2 + $0xf8] sm:$0xff] %vm1111_vm0, %v8129_v62 }
  0x8c PF: > { %v7937_v63 = vld [vmem:[%s8521_s9 + $0x38] sm:$0xff]   ;;  %v7938_v0 = vld [vmem:[%s8521_s9 + $0x30] sm:$0xff]   ;;  %v7939_v1 = vld [vmem:[%s8521_s9 + $0x28] sm:$0xff]   ;;  %vm2382_vm1 = vcmask 1042432   ;;  %vm2383_vm2 = vcmask 1046532   ;;  %vm6097_vm7 = vcmask 523264  }
  0x8d   : > { %7411 = vmatprep.subr.bf16.mxu0 %v7937_v63  ;;  %7843 = vmatprep.subr.bf16.mxu1 %v7937_v63  ;;  %v7940_v2 = vld [vmem:[%s8521_s9 + $0x20] sm:$0xff]   ;;  %v7945_v3 = vld [vmem:[%s8519_s7] sm:$0xff]   ;;  %v7941_v5 = vld [vmem:[%s8521_s9 + $0x18] sm:$0xff]   ;;  %vm1609_vm3 = vsmask.f32 3328  ;;  %p7124_p1 = scmp.ne.s32.totalorder %s8111_s19, 1 }
  0x8e   : > { %7412 = vmatpush3.bf16.msra.mxu0 %v7937_v63  ;;  %7851 = vmatpush3.bf16.msra.mxu1 %v7937_v63  ;;  %v7946_v4 = vld [vmem:[%s8519_s7 + $0x60] sm:$0xff]   ;;  %v7944_v8 = vld [vmem:[%s8521_s9] sm:$0xff]   ;;  %v7949_v9 = vld [vmem:[%s8521_s9 + $0x78] sm:$0xff]   ;;  %vm1610_vm4 = vsmask.f32 7440 }
  0x8f   : > { %7413 = vmatprep.subr.bf16.mxu0 %v7938_v0  ;;  %7844 = vmatprep.subr.bf16.mxu1 %v7938_v0  ;;  %v7942_v6 = vld [vmem:[%s8521_s9 + $0x10] sm:$0xff]   ;;  %v7943_v7 = vld [vmem:[%s8521_s9 + $0x8] sm:$0xff]   ;;  %v7950_v11 = vld [vmem:[%s8521_s9 + $0xb8] sm:$0xff]  }
  0x90   : > { %7427 = vmatprep.mubr.bf16.mxu0 %v7945_v3  ;;  %7443 = vmatprep.mubr.bf16.mxu1 %v7946_v4  ;;  %v7947_v10 = vld [vmem:[%s8519_s7 + $0xc] sm:$0xff]   ;;  %v7953_v15 = vld [vmem:[%s8519_s7 + $0x18] sm:$0xff]   ;;  %v7955_v18 = vld [vmem:[%s8519_s7 + $0x24] sm:$0xff]  }
  0x91   : > { %v7948_v12 = vld [vmem:[%s8519_s7 + $0x6c] sm:$0xff]   ;;  %v7954_v16 = vld [vmem:[%s8519_s7 + $0x78] sm:$0xff]   ;;  %v7956_v20 = vld [vmem:[%s8519_s7 + $0x84] sm:$0xff]  }
  0x92   : > { %7414 = vmatpush3.bf16.msra.mxu0 %v7938_v0  ;;  %7852 = vmatpush3.bf16.msra.mxu1 %v7938_v0  ;;  %v7951_v13 = vld [vmem:[%s8521_s9 + $0x70] sm:$0xff]   ;;  %v7957_v17 = vld [vmem:[%s8521_s9 + $0x68] sm:$0xff]   ;;  %v7959_v21 = vld [vmem:[%s8521_s9 + $0x60] sm:$0xff]  }
  0x93   : > { %7415 = vmatprep.subr.bf16.mxu0 %v7939_v1  ;;  %7845 = vmatprep.subr.bf16.mxu1 %v7939_v1  ;;  %v7952_v14 = vld [vmem:[%s8521_s9 + $0xb0] sm:$0xff]   ;;  %v7958_v19 = vld [vmem:[%s8521_s9 + $0xa8] sm:$0xff]   ;;  %v7960_v22 = vld [vmem:[%s8521_s9 + $0xa0] sm:$0xff]  }
  0x94   : > { %v7961_v23 = vld [vmem:[%s8519_s7 + $0x30] sm:$0xff]   ;;  %v1561_v25 = vld [vmem:[%s8519_s7] sm:$0xf]  ;;  %v1562_v26 = vld [vmem:[%s8519_s7 + $0x4] sm:$0xf] }
  0x95   : > { %v7962_v24 = vld [vmem:[%s8519_s7 + $0x90] sm:$0xff]   ;;  %v1563_v27 = vld [vmem:[%s8519_s7 + $0x8] sm:$0x1]  ;;  %v1613_v28 = vshrl.u32 %v1561_v25, 16  ;;  %v1616_v29 = vshll.u32 %v1561_v25, 16  ;;  %v1622_v32 = vshll.u32 %v1562_v26, 16  ;;  %vm8594_vm5 = vmor %vm2382_vm1, %vm2383_vm2 }
  0x96   : > { %7416 = vmatpush3.bf16.msra.mxu0 %v7939_v1  ;;  %7853 = vmatpush3.bf16.msra.mxu1 %v7939_v1  ;;  %v8586_v30 = vld [vmem:[%s8521_s9 + $0x58] sm:$0xff]   ;;  %v1626_v33 = vshrl.u32 %v1562_v26, 16  ;;  %v1632_v34 = vshll.u32 %v1563_v27, 16  ;;  %v2318_v35 = vld [vmem:[%s8519_s7] sm:$0xe]  ;;  %v2387_v37 = vrot.slane %v1562_v26, 5  ;;  %vm8611_vm6 = vmor %vm1609_vm3, %vm1610_vm4 }
  0x97   : > { %7417 = vmatprep.subr.bf16.mxu0 %v7940_v2  ;;  %7846 = vmatprep.subr.bf16.mxu1 %v7940_v2  ;;  %v8589_v31 = vld [vmem:[%s8521_s9 + $0x98] sm:$0xff]   ;;  %v1615_v38 = vrot.slane %v1613_v28, 4  ;;  %v1618_v39 = vrot.slane %v1616_v29, 5  ;;  %v6604_v40 = vrot.slane %v2318_v35, 9  ;;  %v2390_v41 = vrot.slane %v1563_v27, 5  ;;  %v7963_v43 = vld [vmem:[%s8519_s7 + $0x3c] sm:$0xff]  }
  0x98   : > { %v1564_v42 = vld [vmem:[%s8519_s7 + $0xc] sm:$0xf]  ;;  %v7964_v44 = vld [vmem:[%s8519_s7 + $0x9c] sm:$0xff]   ;;  %v1624_v45 = vrot.slane %v1622_v32, 5  ;;  %v1628_v46 = vrot.slane %v1626_v33, 4  ;;  %v1634_v47 = vrot.slane %v1632_v34, 5 }
  0x99   : > { %v2389_v48 = vrot.slane %v2387_v37, 4  ;;  %v1565_v49 = vld [vmem:[%s8519_s7 + $0x10] sm:$0xf]  ;;  %v1619_v50 = vor.u32 %v1618_v39, %v1615_v38  ;;  %v8604_v51 = vsel %vm8594_vm5, %v6604_v40, %v2387_v37  ;;  %v1566_v52 = vld [vmem:[%s8519_s7 + $0x14] sm:$0x1]  ;;  %v1637_v53 = vshrl.u32 %v1564_v42, 16 }
  0x9a   : > { %7418 = vmatpush3.bf16.msra.mxu0 %v7940_v2  ;;  %7854 = vmatpush3.bf16.msra.mxu1 %v7940_v2  ;;  %v1640_v54 = vshll.u32 %v1564_v42, 16  ;;  %v2319_v55 = vld [vmem:[%s8519_s7 + $0xc] sm:$0xe]  ;;  %v1629_v58 = vor.u32 %v1628_v46, %v1624_v45  ;;  %v1646_v60 = vshll.u32 %v1565_v49, 16  ;;  %v1650_v61 = vshrl.u32 %v1565_v49, 16  ;;  %v7971_v26 = vld [vmem:[%s8519_s7 + $0x54] sm:$0xff]  }
  0x9b   : > { %7419 = vmatprep.subr.bf16.mxu0 %v7941_v5  ;;  %7847 = vmatprep.subr.bf16.mxu1 %v7941_v5  ;;  %v7967_v56 = vld [vmem:[%s8521_s9 + $0x50] sm:$0xff]   ;;  %v8617_v59 = vsel %vm8594_vm5, %v2389_v48, %v2390_v41  ;;  %v1620_v63 = vrot.slane %v1619_v50, 4  ;;  %v1639_v1 = vrot.slane %v1637_v53, 4  ;;  %v7972_v27 = vld [vmem:[%s8519_s7 + $0xb4] sm:$0xff]  }
  0x9c   : > { %v7968_v62 = vld [vmem:[%s8521_s9 + $0x90] sm:$0xff]   ;;  %v6636_v0 = vcombine.low %v8604_v51, %v8617_v59  ;;  %v1642_v2 = vrot.slane %v1640_v54, 5  ;;  %v1630_v3 = vrot.slane %v1629_v58, 4  ;;  %v1648_v4 = vrot.slane %v1646_v60, 5  ;;  %v2320_v32 = vld [vmem:[%s8519_s7 + $0x18] sm:$0xe] }
  0x9d   : > { %v1570_v38 = vld [vmem:[%s8519_s7 + $0x24] sm:$0xf]  ;;  %v8657_v39 = vld [vmem:[%s8519_s7 + $0x28] sm:$0xf]  ;;  %v1572_v58 = vld [vmem:[%s8519_s7 + $0x2c] sm:$0x1] }
  0x9e   : > { %7420 = vmatpush3.bf16.msra.mxu0 %v7941_v5  ;;  %7855 = vmatpush3.bf16.msra.mxu1 %v7941_v5  ;;  %v1652_v5 = vrot.slane %v1650_v61, 4  ;;  %v1685_v60 = vshrl.u32 %v1570_v38, 16  ;;  %v1694_v61 = vshll.u32 %v8657_v39, 16  ;;  %v2411_v59 = vrot.slane %v1572_v58, 5 }
  0x9f   : > { %7421 = vmatprep.subr.bf16.mxu0 %v7942_v6  ;;  %7848 = vmatprep.subr.bf16.mxu1 %v7942_v6 }
  0xa2   : > { %7422 = vmatpush3.bf16.msra.mxu0 %v7942_v6  ;;  %7856 = vmatpush3.bf16.msra.mxu1 %v7942_v6  ;;  %v1656_v6 = vshll.u32 %v1566_v52, 16 }
  0xa3   : > { %7423 = vmatprep.subr.bf16.mxu0 %v7943_v7  ;;  %7849 = vmatprep.subr.bf16.mxu1 %v7943_v7 }
  0xa6   : > { %7424 = vmatpush3.bf16.msra.mxu0 %v7943_v7  ;;  %7857 = vmatpush3.bf16.msra.mxu1 %v7943_v7  ;;  %v7969_v7 = vld [vmem:[%s8519_s7 + $0x48] sm:$0xff]  }
  0xa7   : > { %7425 = vmatprep.subr.bf16.mxu0 %v7944_v8  ;;  %7850 = vmatprep.subr.bf16.mxu1 %v7944_v8 }
  0xaa   : > { %7426 = vmatpush3.bf16.msra.mxu0 %v7944_v8  ;;  %7858 = vmatpush3.bf16.msra.mxu1 %v7944_v8  ;;  %v7970_v8 = vld [vmem:[%s8519_s7 + $0xa8] sm:$0xff]  }
  0xab   : > { %7459 = vmatprep.subr.bf16.mxu1 %v7949_v9  ;;  %7507 = vmatprep.subr.bf16.mxu0 %v7950_v11 }
  0xad   : > { %7428 = vmatmul.mubr.bf16.vlgmr.msra.gmra.mxu0 %v7947_v10  ;;  %7444 = vmatmul.mubr.bf16.vlgmr.msra.gmra.mxu1 %v7948_v12  ;;  %v1643_v10 = vor.u32 %v1642_v2, %v1639_v1  ;;  %v2394_v12 = vrot.slane %v1565_v49, 5  ;;  %v7976_v49 = vld [vmem:[%s8521_s9 + $0x80] sm:$0xff]   ;;  %v1698_v2 = vshrl.u32 %v8657_v39, 16 }
  0xae   : > { %7460 = vmatpush3.bf16.msra.mxu1 %v7949_v9  ;;  %7508 = vmatpush3.bf16.msra.mxu0 %v7950_v11  ;;  %v1625_v9 = vsel %vm8611_vm6, %v1620_v63, %v1624_v45  ;;  %v6605_v11 = vrot.slane %v2319_v55, 9 }
  0xaf   : > { %7461 = vmatprep.subr.bf16.mxu1 %v7951_v13  ;;  %7509 = vmatprep.subr.bf16.mxu0 %v7952_v14  ;;  %v2396_v25 = vrot.slane %v2394_v12, 4 }
  0xb0   : > { %7431 = vmatprep.mubr.bf16.mxu0 %v7953_v15  ;;  %7447 = vmatprep.mubr.bf16.mxu1 %v7954_v16  ;;  %v1653_v15 = vor.u32 %v1652_v5, %v1648_v4  ;;  %v1658_v16 = vrot.slane %v1656_v6, 5  ;;  %v1687_v5 = vrot.slane %v1685_v60, 4 }
  0xb2   : > { %7462 = vmatpush3.bf16.msra.mxu1 %v7951_v13  ;;  %7510 = vmatpush3.bf16.msra.mxu0 %v7952_v14  ;;  %v1567_v13 = vld [vmem:[%s8519_s7 + $0x18] sm:$0xf]  ;;  %v1635_v14 = vsel %vm8611_vm6, %v1630_v3, %v1634_v47  ;;  %v1654_v28 = vrot.slane %v1653_v15, 4  ;;  %v2321_v3 = vld [vmem:[%s8519_s7 + $0x24] sm:$0xe] }
  0xb3   : > { %7463 = vmatprep.subr.bf16.mxu1 %v7957_v17  ;;  %7511 = vmatprep.subr.bf16.mxu0 %v7958_v19  ;;  %v1661_v29 = vshrl.u32 %v1567_v13, 16 }
  0xb4   : > { %v1659_v40 = vsel %vm8611_vm6, %v1654_v28, %v1658_v16 }
  0xb5   : > { %7432 = vmatmul.mubr.bf16.gmra.mxu0 %v7955_v18  ;;  %7448 = vmatmul.mubr.bf16.gmra.mxu1 %v7956_v20  ;;  %v1568_v18 = vld [vmem:[%s8519_s7 + $0x1c] sm:$0xf]  ;;  %v1663_v42 = vrot.slane %v1661_v29, 4 }
  0xb6   : > { %7464 = vmatpush3.bf16.msra.mxu1 %v7957_v17  ;;  %7512 = vmatpush3.bf16.msra.mxu0 %v7958_v19  ;;  %v2397_v17 = vrot.slane %v1566_v52, 5  ;;  %v8633_v19 = vld [vmem:[%s8519_s7 + $0x20] sm:$0x1]  ;;  %v1674_v35 = vshrl.u32 %v1568_v18, 16  ;;  %v6606_v52 = vrot.slane %v2320_v32, 9  ;;  %v2401_v53 = vrot.slane %v1568_v18, 5 }
  0xb7   : > { %7465 = vmatprep.subr.bf16.mxu1 %v7959_v21  ;;  %7513 = vmatprep.subr.bf16.mxu0 %v7960_v22  ;;  %v7973_v20 = vld [vmem:[%s8521_s9 + $0x48] sm:$0xff]   ;;  %v1680_v37 = vshll.u32 %v8633_v19, 16  ;;  %v2404_v54 = vrot.slane %v8633_v19, 5  ;;  %v1574_v19 = vld [vmem:[%s8519_s7 + $0x34] sm:$0xf] }
  0xb8   : > { %7435 = vmatprep.mubr.bf16.mxu0 %v7961_v23  ;;  %7451 = vmatprep.mubr.bf16.mxu1 %v7962_v24  ;;  %v1644_v23 = vrot.slane %v1643_v10, 4  ;;  %v8643_v24 = vsel %vm8594_vm5, %v6605_v11, %v2394_v12  ;;  %v8652_v34 = vsel %vm8594_vm5, %v2396_v25, %v2397_v17  ;;  %v1676_v47 = vrot.slane %v1674_v35, 4  ;;  %v7980_v35 = vld [vmem:[%s8521_s9 + $0x130] sm:$0xff]  }
  0xb9   : > { %v6637_v41 = vcombine.low %v8643_v24, %v8652_v34  ;;  %v1682_v48 = vrot.slane %v1680_v37, 5  ;;  %v8672_v63 = vsel %vm8594_vm5, %v6606_v52, %v2401_v53  ;;  %v2403_v1 = vrot.slane %v2401_v53, 4  ;;  %v1577_v24 = vld [vmem:[%s8519_s7 + $0x40] sm:$0xf] }
  0xba   : > { %7466 = vmatpush3.bf16.msra.mxu1 %v7959_v21  ;;  %7514 = vmatpush3.bf16.msra.mxu0 %v7960_v22  ;;  %v7974_v21 = vld [vmem:[%s8521_s9 + $0x88] sm:$0xff]   ;;  %v8639_v22 = vcombine.low %v1625_v9, %v1635_v14  ;;  %v1649_v33 = vsel %vm8611_vm6, %v1644_v23, %v1648_v4  ;;  %v7978_v9 = vld [vmem:[%s8521_s9 + $0x138] sm:$0xff]   ;;  %v1700_v12 = vrot.slane %v1698_v2, 4  ;;  %v2408_v25 = vrot.slane %v8657_v39, 5 }
  0xbb   : > { %7467 = vmatprep.subr.bf16.mxu1 %v8586_v30  ;;  %7515 = vmatprep.subr.bf16.mxu0 %v8589_v31  ;;  %v8664_v45 = vcombine.low %v1649_v33, %v1659_v40  ;;  %v2405_v11 = vsel %vm8594_vm5, %v2403_v1, %v2404_v54  ;;  %v1573_v14 = vld [vmem:[%s8519_s7 + $0x30] sm:$0xf]  ;;  %v1718_v32 = vshll.u32 %v1574_v19, 16  ;;  %v1722_v39 = vshrl.u32 %v1574_v19, 16  ;;  %v7981_v34 = vld [vmem:[%s8521_s9 + $0xe8] sm:$0xff]  }
  0xbc   : > { %v6638_v16 = vcombine.low %v8672_v63, %v2405_v11  ;;  %v2415_v53 = vrot.slane %v1574_v19, 5  ;;  %v1742_v2 = vshll.u32 %v1577_v24, 16  ;;  %v7984_v19 = vld [vmem:[%s8521_s9 + $0x120] sm:$0xff]  }
  0xbd   : > { %7436 = vmatmul.mubr.bf16.gmra.mxu0 %v7963_v43  ;;  %7452 = vmatmul.mubr.bf16.gmra.mxu1 %v7964_v44  ;;  %v7975_v44 = vld [vmem:[%s8521_s9 + $0x40] sm:$0xff]  }
  0xbe   : > { %7468 = vmatpush3.bf16.msra.mxu1 %v8586_v30  ;;  %7516 = vmatpush3.bf16.msra.mxu0 %v8589_v31  ;;  %v1664_v30 = vshll.u32 %v1567_v13, 16  ;;  %v1670_v31 = vshll.u32 %v1568_v18, 16  ;;  %v1704_v13 = vshll.u32 %v1572_v58, 16  ;;  %v6607_v18 = vrot.slane %v2321_v3, 9 }
  0xbf   : > { %7469 = vmatprep.subr.bf16.mxu1 %v7967_v56  ;;  %7517 = vmatprep.subr.bf16.mxu0 %v7968_v62  ;;  %v2417_v1 = vrot.slane %v2415_v53, 4  ;;  %v1746_v3 = vshrl.u32 %v1577_v24, 16  ;;  %v1744_v11 = vrot.slane %v1742_v2, 5 }
  0xc0   : > { %7439 = vmatprep.mubr.bf16.mxu0 %v7969_v7  ;;  %7455 = vmatprep.mubr.bf16.mxu1 %v7970_v8  ;;  %v1666_v43 = vrot.slane %v1664_v30, 5  ;;  %v1672_v46 = vrot.slane %v1670_v31, 5  ;;  %v1696_v7 = vrot.slane %v1694_v61, 5  ;;  %v7977_v8 = vld [vmem:[%s8521_s9 + $0xf8] sm:$0xff]   ;;  %v1706_v23 = vrot.slane %v1704_v13, 5  ;;  %v7979_v31 = vld [vmem:[%s8521_s9 + $0xf0] sm:$0xff]  }
  0xc1   : > { %v8698_v29 = vsel %vm8594_vm5, %v6607_v18, %v2408_v25  ;;  %v2410_v30 = vrot.slane %v2408_v25, 4  ;;  %v2422_v25 = vrot.slane %v1577_v24, 5  ;;  %v1583_v24 = vld [vmem:[%s8519_s7 + $0x58] sm:$0xf] }
  0xc2   : > { %7470 = vmatpush3.bf16.msra.mxu1 %v7967_v56  ;;  %7518 = vmatpush3.bf16.msra.mxu0 %v7968_v62  ;;  %v1667_v50 = vor.u32 %v1666_v43, %v1663_v42  ;;  %v1677_v55 = vor.u32 %v1676_v47, %v1672_v46  ;;  %v1688_v56 = vshll.u32 %v1570_v38, 16  ;;  %v1720_v43 = vrot.slane %v1718_v32, 5 }
  0xc3   : > { %7471 = vmatprep.subr.bf16.mxu1 %v7973_v20  ;;  %7519 = vmatprep.subr.bf16.mxu0 %v7974_v21  ;;  %v2412_v42 = vsel %vm8594_vm5, %v2410_v30, %v2411_v59  ;;  %v1581_v59 = vld [vmem:[%s8519_s7 + $0x50] sm:$0x1]  ;;  %v1790_v2 = vshll.u32 %v1583_v24, 16 }
  0xc4   : > { %v1668_v62 = vrot.slane %v1667_v50, 4  ;;  %v1678_v4 = vrot.slane %v1677_v55, 4  ;;  %v1690_v6 = vrot.slane %v1688_v56, 5  ;;  %v8720_v55 = vld [vmem:[%s8519_s7 + $0x44] sm:$0x1] }
  0xc5   : > { %7440 = vmatmul.mubr.bf16.gmra.mxu0 %v7971_v26  ;;  %7456 = vmatmul.mubr.bf16.gmra.mxu1 %v7972_v27  ;;  %v1712_v26 = vshll.u32 %v1573_v14, 16  ;;  %v2322_v27 = vld [vmem:[%s8519_s7 + $0x30] sm:$0xe]  ;;  %v1752_v13 = vshll.u32 %v8720_v55, 16 }
  0xc6   : > { %7472 = vmatpush3.bf16.msra.mxu1 %v7973_v20  ;;  %7520 = vmatpush3.bf16.msra.mxu0 %v7974_v21  ;;  %v1673_v10 = vsel %vm8611_vm6, %v1668_v62, %v1672_v46  ;;  %v1683_v15 = vsel %vm8611_vm6, %v1678_v4, %v1682_v48  ;;  %v1691_v17 = vor.u32 %v1690_v6, %v1687_v5  ;;  %v1576_v46 = vld [vmem:[%s8519_s7 + $0x3c] sm:$0xf]  ;;  %v6608_v52 = vrot.slane %v2322_v27, 9  ;;  %v1579_v4 = vld [vmem:[%s8519_s7 + $0x48] sm:$0xf] }
  0xc7   : > { %7473 = vmatprep.subr.bf16.mxu1 %v7975_v44  ;;  %7521 = vmatprep.subr.bf16.mxu0 %v7976_v49  ;;  %v6582_v20 = vcombine.low %v1673_v10, %v1683_v15  ;;  %v1701_v21 = vor.u32 %v1700_v12, %v1696_v7  ;;  %v1714_v38 = vrot.slane %v1712_v26, 5  ;;  %v1733_v56 = vshrl.u32 %v1576_v46, 16  ;;  %v2323_v62 = vld [vmem:[%s8519_s7 + $0x3c] sm:$0xe] }
  0xc8   : > { %7475 = vmatprep.mubr.bf16.mxu1 %v8639_v22  ;;  %7523 = vmatprep.mubr.bf16.mxu0 %v6636_v0  ;;  %v8693_v22 = vld [vmem:[%s8519_s7 + $0x38] sm:$0x1]  ;;  %v1692_v51 = vrot.slane %v1691_v17, 4  ;;  %v1709_v0 = vshrl.u32 %v1573_v14, 16  ;;  %v1736_v61 = vshll.u32 %v1576_v46, 16  ;;  %v2416_v63 = vsel %vm8594_vm5, %v6608_v52, %v2415_v53 }
  0xc9   : > { %v1702_v28 = vrot.slane %v1701_v21, 4  ;;  %v2418_v54 = vrot.slane %v8693_v22, 5  ;;  %v1748_v12 = vrot.slane %v1746_v3, 4  ;;  %v7983_v14 = vld [vmem:[%s8521_s9 + $0xe0] sm:$0xff]   ;;  %v6609_v18 = vrot.slane %v2323_v62, 9  ;;  %v7988_v62 = vld [vmem:[%s8521_s9 + $0x110] sm:$0xff]  }
  0xca   : > { %7474 = vmatpush3.bf16.msra.mxu1 %v7975_v44  ;;  %7522 = vmatpush3.bf16.msra.mxu0 %v7976_v49  ;;  %v1697_v33 = vsel %vm8611_vm6, %v1692_v51, %v1696_v7  ;;  %v1711_v37 = vrot.slane %v1709_v0, 4  ;;  %v1728_v44 = vshll.u32 %v8693_v22, 16  ;;  %v1724_v49 = vrot.slane %v1722_v39, 4  ;;  %v7986_v39 = vld [vmem:[%s8521_s9 + $0x118] sm:$0xff]  }
  0xcb   : > { %7555 = vmatprep.subr.bf16.mxu1 %v7977_v8  ;;  %7603 = vmatprep.subr.bf16.mxu0 %v7978_v9  ;;  %v1707_v40 = vsel %vm8611_vm6, %v1702_v28, %v1706_v23  ;;  %v1735_v7 = vrot.slane %v1733_v56, 4  ;;  %v2419_v10 = vsel %vm8594_vm5, %v2417_v1, %v2418_v54  ;;  %v1749_v21 = vor.u32 %v1748_v12, %v1744_v11  ;;  %v1582_v46 = vld [vmem:[%s8519_s7 + $0x54] sm:$0xf]  ;;  %v1585_v12 = vld [vmem:[%s8519_s7 + $0x60] sm:$0xf] }
  0xcc   : > { %v6583_v47 = vcombine.low %v1697_v33, %v1707_v40  ;;  %v1715_v48 = vor.u32 %v1714_v38, %v1711_v37  ;;  %v1730_v50 = vrot.slane %v1728_v44, 5  ;;  %v1725_v60 = vor.u32 %v1724_v49, %v1720_v43  ;;  %v2324_v38 = vld [vmem:[%s8519_s7 + $0x48] sm:$0xe] }
  0xcd   : > { %7476 = vmatmul.mubr.bf16.vlgmr.msra.gmra.mxu1 %v8664_v45  ;;  %7524 = vmatmul.mubr.bf16.vlgmr.msra.gmra.mxu0 %v6637_v41  ;;  %v6639_v45 = vcombine.low %v8698_v29, %v2412_v42  ;;  %v7982_v41 = vld [vmem:[%s8521_s9 + $0x128] sm:$0xff]   ;;  %v1754_v23 = vrot.slane %v1752_v13, 5  ;;  %v2425_v51 = vrot.slane %v8720_v55, 5  ;;  %v1757_v0 = vshrl.u32 %v1579_v4, 16  ;;  %v2325_v55 = vld [vmem:[%s8519_s7 + $0x54] sm:$0xe] }
  0xce   : > { %7556 = vmatpush3.bf16.msra.mxu1 %v7977_v8  ;;  %7604 = vmatpush3.bf16.msra.mxu0 %v7978_v9  ;;  %v1716_v58 = vrot.slane %v1715_v48, 4  ;;  %v1726_v6 = vrot.slane %v1725_v60, 4  ;;  %v1738_v8 = vrot.slane %v1736_v61, 5  ;;  %v8729_v9 = vld [vmem:[%s8519_s7 + $0x4c] sm:$0xf]  ;;  %v1760_v26 = vshll.u32 %v1579_v4, 16 }
  0xcf   : > { %7479 = vmatprep.mubr.bf16.mxu1 %v6582_v20  ;;  %7527 = vmatprep.mubr.bf16.mxu0 %v6638_v16  ;;  %v6640_v16 = vcombine.low %v2416_v63, %v2419_v10  ;;  %v1750_v27 = vrot.slane %v1749_v21, 4  ;;  %v2423_v28 = vsel %vm8594_vm5, %v6609_v18, %v2422_v25  ;;  %v2424_v29 = vrot.slane %v2422_v25, 4  ;;  %v7989_v18 = vld [vmem:[%s8521_s9 + $0xc8] sm:$0xff]  }
  0xd0   : > { %7557 = vmatprep.subr.bf16.mxu1 %v7979_v31  ;;  %7605 = vmatprep.subr.bf16.mxu0 %v7980_v35  ;;  %v1721_v5 = vsel %vm8611_vm6, %v1716_v58, %v1720_v43  ;;  %v1731_v15 = vsel %vm8611_vm6, %v1726_v6, %v1730_v50  ;;  %v1739_v17 = vor.u32 %v1738_v8, %v1735_v7  ;;  %v1766_v30 = vshll.u32 %v8729_v9, 16 }
  0xd1   : > { %v6584_v20 = vcombine.low %v1721_v5, %v1731_v15  ;;  %v1759_v33 = vrot.slane %v1757_v0, 4  ;;  %v1770_v37 = vshrl.u32 %v8729_v9, 16  ;;  %v1755_v40 = vsel %vm8611_vm6, %v1750_v27, %v1754_v23  ;;  %v2326_v27 = vld [vmem:[%s8519_s7 + $0x60] sm:$0xe] }
  0xd2   : > { %7558 = vmatpush3.bf16.msra.mxu1 %v7979_v31  ;;  %7606 = vmatpush3.bf16.msra.mxu0 %v7980_v35  ;;  %v1740_v22 = vrot.slane %v1739_v17, 4  ;;  %v7985_v31 = vld [vmem:[%s8521_s9 + $0xd8] sm:$0xff]   ;;  %v1762_v35 = vrot.slane %v1760_v26, 5  ;;  %v2426_v42 = vsel %vm8594_vm5, %v2424_v29, %v2425_v51  ;;  %v1768_v43 = vrot.slane %v1766_v30, 5  ;;  %v1586_v17 = vld [vmem:[%s8519_s7 + $0x64] sm:$0xf] }
  0xd3   : > { %7559 = vmatprep.subr.bf16.mxu1 %v7981_v34  ;;  %7607 = vmatprep.subr.bf16.mxu0 %v7982_v41  ;;  %v1776_v44 = vshll.u32 %v1581_v59, 16  ;;  %v1772_v49 = vrot.slane %v1770_v37, 4  ;;  %v6610_v52 = vrot.slane %v2324_v38, 9  ;;  %v2429_v53 = vrot.slane %v8729_v9, 5 }
  0xd4   : > { %v1745_v32 = vsel %vm8611_vm6, %v1740_v22, %v1744_v11  ;;  %v1763_v48 = vor.u32 %v1762_v35, %v1759_v33  ;;  %v2432_v54 = vrot.slane %v1581_v59, 5  ;;  %v1781_v56 = vshrl.u32 %v1582_v46, 16  ;;  %v1587_v22 = vld [vmem:[%s8519_s7 + $0x68] sm:$0x1]  ;;  %v7991_v33 = vld [vmem:[%s8521_s9 + $0xc0] sm:$0xff]  }
  0xd5   : > { %7480 = vmatmul.mubr.bf16.gmra.mxu1 %v6583_v47  ;;  %7528 = vmatmul.mubr.bf16.gmra.mxu0 %v6639_v45  ;;  %v6585_v47 = vcombine.low %v1745_v32, %v1755_v40  ;;  %v6641_v45 = vcombine.low %v2423_v28, %v2426_v42  ;;  %v1778_v50 = vrot.slane %v1776_v44, 5  ;;  %v1773_v60 = vor.u32 %v1772_v49, %v1768_v43  ;;  %v1588_v32 = vld [vmem:[%s8519_s7 + $0x6c] sm:$0xf]  ;;  %v8785_v40 = vld [vmem:[%s8519_s7 + $0x70] sm:$0xf] }
  0xd6   : > { %7531 = vmatprep.mubr.bf16.mxu0 %v6640_v16  ;;  %7560 = vmatpush3.bf16.msra.mxu1 %v7981_v34  ;;  %v8756_v34 = vld [vmem:[%s8519_s7 + $0x5c] sm:$0x1]  ;;  %v1764_v58 = vrot.slane %v1763_v48, 4  ;;  %v1784_v61 = vshll.u32 %v1582_v46, 16  ;;  %v2430_v63 = vsel %vm8594_vm5, %v6610_v52, %v2429_v53  ;;  %v2431_v1 = vrot.slane %v2429_v53, 4  ;;  %v8793_v53 = vld [vmem:[%s8521_s9 + $0x178] sm:$0xff]  }
  0xd7   : > { %7483 = vmatprep.mubr.bf16.mxu1 %v6584_v20  ;;  %7608 = vmatpush3.bf16.msra.mxu0 %v7982_v41  ;;  %v7987_v41 = vld [vmem:[%s8521_s9 + $0xd0] sm:$0xff]   ;;  %v1794_v3 = vshrl.u32 %v1583_v24, 16  ;;  %v1774_v5 = vrot.slane %v1773_v60, 4  ;;  %v1783_v6 = vrot.slane %v1781_v56, 4  ;;  %v1792_v9 = vrot.slane %v1790_v2, 5  ;;  %v7992_v42 = vld [vmem:[%s8521_s9 + $0x100] sm:$0xff]  }
  0xd8   : > { %7561 = vmatprep.subr.bf16.mxu1 %v7983_v14  ;;  %7609 = vmatprep.subr.bf16.mxu0 %v7984_v19  ;;  %v1769_v4 = vsel %vm8611_vm6, %v1764_v58, %v1768_v43  ;;  %v1786_v7 = vrot.slane %v1784_v61, 5  ;;  %v2433_v8 = vsel %vm8594_vm5, %v2431_v1, %v2432_v54  ;;  %v1800_v11 = vshll.u32 %v8756_v34, 16  ;;  %v1590_v58 = vld [vmem:[%s8519_s7 + $0x74] sm:$0x1] }
  0xd9   : > { %v1796_v10 = vrot.slane %v1794_v3, 4  ;;  %v1779_v13 = vsel %vm8611_vm6, %v1774_v5, %v1778_v50  ;;  %v6611_v16 = vrot.slane %v2325_v55, 9  ;;  %v2436_v25 = vrot.slane %v1583_v24, 5  ;;  %v8797_v61 = vld [vmem:[%s8521_s9 + $0x1b8] sm:$0xff]  }
  0xda   : > { %7562 = vmatpush3.bf16.msra.mxu1 %v7983_v14  ;;  %v6642_v14 = vcombine.low %v2430_v63, %v2433_v8  ;;  %v1787_v15 = vor.u32 %v1786_v7, %v1783_v6  ;;  %v6586_v20 = vcombine.low %v1769_v4, %v1779_v13  ;;  %v1802_v23 = vrot.slane %v1800_v11, 5  ;;  %v2327_v3 = vld [vmem:[%s8519_s7 + $0x6c] sm:$0xe] }
  0xdb   : > { %7610 = vmatpush3.bf16.msra.mxu0 %v7984_v19  ;;  %7563 = vmatprep.subr.bf16.mxu1 %v7985_v31  ;;  %v7990_v19 = vld [vmem:[%s8521_s9 + $0x108] sm:$0xff]   ;;  %v1797_v21 = vor.u32 %v1796_v10, %v1792_v9  ;;  %v2439_v59 = vrot.slane %v8756_v34, 5  ;;  %v1805_v0 = vshrl.u32 %v1585_v12, 16  ;;  %v1808_v26 = vshll.u32 %v1585_v12, 16 }
  0xdc   : > { %7611 = vmatprep.subr.bf16.mxu0 %v7986_v39  ;;  %v1788_v51 = vrot.slane %v1787_v15, 4  ;;  %v2437_v29 = vsel %vm8594_vm5, %v6611_v16, %v2436_v25  ;;  %v2438_v30 = vrot.slane %v2436_v25, 4  ;;  %v2443_v50 = vrot.slane %v1586_v17, 5  ;;  %v1591_v12 = vld [vmem:[%s8519_s7 + $0x78] sm:$0xf] }
  0xdd   : > { %7484 = vmatmul.mubr.bf16.gmra.mxu1 %v6585_v47  ;;  %7532 = vmatmul.mubr.bf16.gmra.mxu0 %v6641_v45  ;;  %v1798_v28 = vrot.slane %v1797_v21, 4  ;;  %v1807_v37 = vrot.slane %v1805_v0, 4  ;;  %v1810_v38 = vrot.slane %v1808_v26, 5  ;;  %v1824_v47 = vshll.u32 %v1587_v22, 16  ;;  %v2328_v0 = vld [vmem:[%s8519_s7 + $0x78] sm:$0xe] }
  0xde   : > { %7564 = vmatpush3.bf16.msra.mxu1 %v7985_v31  ;;  %7535 = vmatprep.mubr.bf16.mxu0 %v6642_v14  ;;  %v1814_v31 = vshll.u32 %v1586_v17, 16  ;;  %v1793_v35 = vsel %vm8611_vm6, %v1788_v51, %v1792_v9  ;;  %v2440_v44 = vsel %vm8594_vm5, %v2438_v30, %v2439_v59  ;;  %v2446_v52 = vrot.slane %v1587_v22, 5 }
  0xdf   : > { %7612 = vmatpush3.bf16.msra.mxu0 %v7986_v39  ;;  %7565 = vmatprep.subr.bf16.mxu1 %v7987_v41  ;;  %v1818_v39 = vshrl.u32 %v1586_v17, 16  ;;  %v1803_v43 = vsel %vm8611_vm6, %v1798_v28, %v1802_v23  ;;  %v6643_v48 = vcombine.low %v2437_v29, %v2440_v44  ;;  %v1811_v49 = vor.u32 %v1810_v38, %v1807_v37  ;;  %v1592_v17 = vld [vmem:[%s8519_s7 + $0x7c] sm:$0xf]  ;;  %v1593_v23 = vld [vmem:[%s8519_s7 + $0x80] sm:$0x1] }
  0xe0   : > { %7613 = vmatprep.subr.bf16.mxu0 %v7988_v62  ;;  %7487 = vmatprep.mubr.bf16.mxu1 %v6586_v20  ;;  %v1816_v46 = vrot.slane %v1814_v31, 5  ;;  %v6587_v45 = vcombine.low %v1793_v35, %v1803_v43  ;;  %v1826_v34 = vrot.slane %v1824_v47, 5  ;;  %v1829_v60 = vshrl.u32 %v1588_v32, 16  ;;  %v1595_v47 = vld [vmem:[%s8519_s7 + $0x88] sm:$0xf] }
  0xe1   : > { %v1820_v24 = vrot.slane %v1818_v39, 4  ;;  %v1812_v54 = vrot.slane %v1811_v49, 4  ;;  %v1832_v56 = vshll.u32 %v1588_v32, 16  ;;  %v2445_v63 = vrot.slane %v2443_v50, 4 }
  0xe2   : > { %7566 = vmatpush3.bf16.msra.mxu1 %v7987_v41  ;;  %v6612_v41 = vrot.slane %v2326_v27, 9  ;;  %v1838_v1 = vshll.u32 %v8785_v40, 16  ;;  %v1842_v2 = vshrl.u32 %v8785_v40, 16  ;;  %v1831_v6 = vrot.slane %v1829_v60, 4 }
  0xe3   : > { %7614 = vmatpush3.bf16.msra.mxu0 %v7988_v62  ;;  %7567 = vmatprep.subr.bf16.mxu1 %v7989_v18  ;;  %v1821_v55 = vor.u32 %v1820_v24, %v1816_v46  ;;  %v1817_v4 = vsel %vm8611_vm6, %v1812_v54, %v1816_v46  ;;  %v1834_v7 = vrot.slane %v1832_v56, 5  ;;  %v2447_v8 = vsel %vm8594_vm5, %v2445_v63, %v2446_v52  ;;  %v1597_v63 = vld [vmem:[%s8519_s7 + $0x90] sm:$0xf] }
  0xe4   : > { %7615 = vmatprep.subr.bf16.mxu0 %v7990_v19  ;;  %v2444_v62 = vsel %vm8594_vm5, %v6612_v41, %v2443_v50  ;;  %v1840_v9 = vrot.slane %v1838_v1, 5  ;;  %v1844_v10 = vrot.slane %v1842_v2, 4  ;;  %v1848_v11 = vshll.u32 %v1590_v58, 16 }
  0xe5   : > { %7488 = vmatmul.mubr.bf16.gmra.mxu1 %v6587_v45  ;;  %7536 = vmatmul.mubr.bf16.gmra.mxu0 %v6643_v48  ;;  %v1822_v5 = vrot.slane %v1821_v55, 4  ;;  %v6644_v14 = vcombine.low %v2444_v62, %v2447_v8  ;;  %v1835_v15 = vor.u32 %v1834_v7, %v1831_v6  ;;  %v6613_v16 = vrot.slane %v2327_v3, 9  ;;  %v2329_v55 = vld [vmem:[%s8519_s7 + $0x84] sm:$0xe] }
  0xe6   : > { %7568 = vmatpush3.bf16.msra.mxu1 %v7989_v18  ;;  %v1850_v20 = vrot.slane %v1848_v11, 5  ;;  %v2450_v21 = vrot.slane %v8785_v40, 5  ;;  %v2453_v22 = vrot.slane %v1590_v58, 5  ;;  %v1853_v51 = vshrl.u32 %v1591_v12, 16  ;;  %v1594_v40 = vld [vmem:[%s8519_s7 + $0x84] sm:$0xf] }
  0xe7   : > { %7616 = vmatpush3.bf16.msra.mxu0 %v7990_v19  ;;  %7569 = vmatprep.subr.bf16.mxu1 %v7991_v33  ;;  %v1827_v13 = vsel %vm8611_vm6, %v1822_v5, %v1826_v34  ;;  %v1845_v19 = vor.u32 %v1844_v10, %v1840_v9  ;;  %v1836_v25 = vrot.slane %v1835_v15, 4  ;;  %v1856_v59 = vshll.u32 %v1591_v12, 16  ;;  %v1596_v34 = vld [vmem:[%s8519_s7 + $0x8c] sm:$0x1]  ;;  %v1598_v5 = vld [vmem:[%s8519_s7 + $0x94] sm:$0xf] }
  0xe8   : > { %7617 = vmatprep.subr.bf16.mxu0 %v7992_v42  ;;  %v6588_v18 = vcombine.low %v1817_v4, %v1827_v13  ;;  %7539 = vmatprep.mubr.bf16.mxu0 %v6644_v14  ;;  %v2451_v27 = vsel %vm8594_vm5, %v6613_v16, %v2450_v21  ;;  %v2452_v28 = vrot.slane %v2450_v21, 4  ;;  %v1862_v29 = vshll.u32 %v1592_v17, 16  ;;  %v1599_v14 = vld [vmem:[%s8519_s7 + $0x98] sm:$0x1] }
  0xe9   : > { %v1846_v26 = vrot.slane %v1845_v19, 4  ;;  %v1841_v30 = vsel %vm8611_vm6, %v1836_v25, %v1840_v9  ;;  %v1855_v31 = vrot.slane %v1853_v51, 4  ;;  %v1858_v32 = vrot.slane %v1856_v59, 5 }
  0xea   : > { %7570 = vmatpush3.bf16.msra.mxu1 %v7991_v33  ;;  %7491 = vmatprep.mubr.bf16.mxu1 %v6588_v18  ;;  %v1866_v33 = vshrl.u32 %v1592_v17, 16  ;;  %v2454_v37 = vsel %vm8594_vm5, %v2452_v28, %v2453_v22  ;;  %v1864_v38 = vrot.slane %v1862_v29, 5  ;;  %v1872_v39 = vshll.u32 %v1593_v23, 16  ;;  %v2330_v29 = vld [vmem:[%s8519_s7 + $0x90] sm:$0xe] }
  0xeb   : > { %7618 = vmatpush3.bf16.msra.mxu0 %v7992_v42  ;;  %7651 = vmatprep.subr.bf16.mxu1 %v8793_v53  ;;  %v1851_v35 = vsel %vm8611_vm6, %v1846_v26, %v1850_v20  ;;  %v6645_v43 = vcombine.low %v2451_v27, %v2454_v37  ;;  %v1859_v44 = vor.u32 %v1858_v32, %v1855_v31  ;;  %v6614_v48 = vrot.slane %v2328_v0, 9 }
  0xec   : > { %7699 = vmatprep.subr.bf16.mxu0 %v8797_v61  ;;  %v6589_v42 = vcombine.low %v1841_v30, %v1851_v35  ;;  %v1868_v46 = vrot.slane %v1866_v33, 4  ;;  %v1874_v45 = vrot.slane %v1872_v39, 5  ;;  %v2457_v49 = vrot.slane %v1592_v17, 5  ;;  %v1600_v35 = vld [vmem:[%s8519_s7 + $0x9c] sm:$0xf] }
  0xed   : > { %v2460_v24 = vrot.slane %v1593_v23, 5  ;;  %7540 = vmatmul.mubr.bf16.gmra.mxu0 %v6645_v43  ;;  %v1860_v41 = vrot.slane %v1859_v44, 4  ;;  %v1877_v52 = vshrl.u32 %v1594_v40, 16  ;;  %v1880_v54 = vshll.u32 %v1594_v40, 16 }
  0xee   : > { %7492 = vmatmul.mubr.bf16.gmra.mxu1 %v6589_v42  ;;  %v1869_v50 = vor.u32 %v1868_v46, %v1864_v38  ;;  %v2458_v58 = vsel %vm8594_vm5, %v6614_v48, %v2457_v49  ;;  %v2459_v60 = vrot.slane %v2457_v49, 4  ;;  %v1886_v56 = vshll.u32 %v1595_v47, 16  ;;  %v1601_v42 = vld [vmem:[%s8519_s7 + $0xa0] sm:$0xf] }
  0xef   : > { %v1890_v62 = vshrl.u32 %v1595_v47, 16  ;;  %v1865_v1 = vsel %vm8611_vm6, %v1860_v41, %v1864_v38  ;;  %v1879_v3 = vrot.slane %v1877_v52, 4  ;;  %v1882_v4 = vrot.slane %v1880_v54, 5  ;;  %v2331_v41 = vld [vmem:[%s8519_s7 + $0x9c] sm:$0xe] }
  0xf0   : > { %v1870_v2 = vrot.slane %v1869_v50, 4  ;;  %v2461_v6 = vsel %vm8594_vm5, %v2459_v60, %v2460_v24  ;;  %v1888_v7 = vrot.slane %v1886_v56, 5  ;;  %v1896_v9 = vshll.u32 %v1596_v34, 16 }
  0xf1   : > { %v1892_v8 = vrot.slane %v1890_v62, 4  ;;  %v6646_v11 = vcombine.low %v2458_v58, %v2461_v6  ;;  %v1883_v12 = vor.u32 %v1882_v4, %v1879_v3  ;;  %v6615_v13 = vrot.slane %v2329_v55, 9  ;;  %v1603_v58 = vld [vmem:[%s8519_s7 + $0xa8] sm:$0xf] }
  0xf2   : > { %v1875_v10 = vsel %vm8611_vm6, %v1870_v2, %v1874_v45  ;;  %v1898_v17 = vrot.slane %v1896_v9, 5  ;;  %v2464_v18 = vrot.slane %v1595_v47, 5  ;;  %v2467_v20 = vrot.slane %v1596_v34, 5  ;;  %v1602_v45 = vld [vmem:[%s8519_s7 + $0xa4] sm:$0x1] }
  0xf3   : > { %v6590_v15 = vcombine.low %v1865_v1, %v1875_v10  ;;  %v1893_v16 = vor.u32 %v1892_v8, %v1888_v7  ;;  %7543 = vmatprep.mubr.bf16.mxu0 %v6646_v11  ;;  %v1884_v19 = vrot.slane %v1883_v12, 4  ;;  %v1901_v21 = vshrl.u32 %v1597_v63, 16  ;;  %v1604_v1 = vld [vmem:[%s8519_s7 + $0xac] sm:$0xf] }
  0xf4   : > { %v1904_v23 = vshll.u32 %v1597_v63, 16  ;;  %v2465_v22 = vsel %vm8594_vm5, %v6615_v13, %v2464_v18  ;;  %v2466_v51 = vrot.slane %v2464_v18, 4  ;;  %v1910_v59 = vshll.u32 %v1598_v5, 16 }
  0xf5   : > { %7495 = vmatprep.mubr.bf16.mxu1 %v6590_v15  ;;  %v1894_v25 = vrot.slane %v1893_v16, 4  ;;  %v1889_v0 = vsel %vm8611_vm6, %v1884_v19, %v1888_v7  ;;  %v1903_v26 = vrot.slane %v1901_v21, 4  ;;  %v1914_v28 = vshrl.u32 %v1598_v5, 16  ;;  %v1605_v16 = vld [vmem:[%s8519_s7 + $0xb0] sm:$0x1] }
  0xf6   : > { %v1906_v27 = vrot.slane %v1904_v23, 5  ;;  %v2468_v31 = vsel %vm8594_vm5, %v2466_v51, %v2467_v20  ;;  %v1912_v32 = vrot.slane %v1910_v59, 5  ;;  %v1920_v33 = vshll.u32 %v1599_v14, 16 }
  0xf7   : > { %v1899_v30 = vsel %vm8611_vm6, %v1894_v25, %v1898_v17  ;;  %v6647_v38 = vcombine.low %v2465_v22, %v2468_v31  ;;  %v1916_v40 = vrot.slane %v1914_v28, 4  ;;  %v6616_v44 = vrot.slane %v2330_v29, 9  ;;  %v2332_v25 = vld [vmem:[%s8519_s7 + $0xa8] sm:$0xe] }
  0xf8   : > { %v6591_v37 = vcombine.low %v1889_v0, %v1899_v30  ;;  %v1907_v39 = vor.u32 %v1906_v27, %v1903_v26  ;;  %v1922_v43 = vrot.slane %v1920_v33, 5  ;;  %v2471_v46 = vrot.slane %v1598_v5, 5  ;;  %v1606_v30 = vld [vmem:[%s8519_s7 + $0xb4] sm:$0xf] }
  0xf9   : > { %v2474_v47 = vrot.slane %v1599_v14, 5  ;;  %7544 = vmatmul.mubr.bf16.gmra.mxu0 %v6647_v38  ;;  %v1917_v49 = vor.u32 %v1916_v40, %v1912_v32  ;;  %v1925_v24 = vshrl.u32 %v1600_v35, 16  ;;  %v1928_v34 = vshll.u32 %v1600_v35, 16  ;;  %v1608_v38 = vld [vmem:[%s8519_s7 + $0xbc] sm:$0x1] }
  0xfa   : > { %7496 = vmatmul.mubr.bf16.gmra.mxu1 %v6591_v37  ;;  %v1908_v48 = vrot.slane %v1907_v39, 4  ;;  %v2472_v50 = vsel %vm8594_vm5, %v6616_v44, %v2471_v46  ;;  %v2473_v52 = vrot.slane %v2471_v46, 4  ;;  %v1934_v54 = vshll.u32 %v1601_v42, 16  ;;  %v1607_v37 = vld [vmem:[%s8519_s7 + $0xb8] sm:$0xf] }
  0xfb   : > { %v1938_v55 = vshrl.u32 %v1601_v42, 16  ;;  %v1918_v56 = vrot.slane %v1917_v49, 4  ;;  %v1927_v62 = vrot.slane %v1925_v24, 4  ;;  %v1930_v63 = vrot.slane %v1928_v34, 5  ;;  %v2333_v44 = vld [vmem:[%s8519_s7 + $0xb4] sm:$0xe] }
  0xfc   : > { %v1913_v60 = vsel %vm8611_vm6, %v1908_v48, %v1912_v32  ;;  %v2475_v2 = vsel %vm8594_vm5, %v2473_v52, %v2474_v47  ;;  %v1936_v3 = vrot.slane %v1934_v54, 5  ;;  %v1944_v5 = vshll.u32 %v1602_v45, 16 }
  0xfd   : > { %v1940_v4 = vrot.slane %v1938_v55, 4  ;;  %v1923_v6 = vsel %vm8611_vm6, %v1918_v56, %v1922_v43  ;;  %v6648_v7 = vcombine.low %v2472_v50, %v2475_v2  ;;  %v1931_v8 = vor.u32 %v1930_v63, %v1927_v62  ;;  %v6732_v50 = vld [vmem:[%s8519_s7 + $0xc] sm:$0xf] }
  0xfe   : > { %v6617_v9 = vrot.slane %v2331_v41, 9  ;;  %v6592_v10 = vcombine.low %v1913_v60, %v1923_v6  ;;  %v1946_v12 = vrot.slane %v1944_v5, 5  ;;  %v2478_v13 = vrot.slane %v1601_v42, 5  ;;  %v8887_v5 = vld [vmem:[%s8519_s7 + $0x10] sm:$0xf] }
  0xff   : > { %v1941_v11 = vor.u32 %v1940_v4, %v1936_v3  ;;  %7547 = vmatprep.mubr.bf16.mxu0 %v6648_v7  ;;  %v1932_v14 = vrot.slane %v1931_v8, 4  ;;  %v2481_v15 = vrot.slane %v1602_v45, 5  ;;  %v1949_v17 = vshrl.u32 %v1603_v58, 16 }
 0x100   : > { %v1952_v18 = vshll.u32 %v1603_v58, 16  ;;  %7499 = vmatprep.mubr.bf16.mxu1 %v6592_v10  ;;  %v2479_v20 = vsel %vm8594_vm5, %v6617_v9, %v2478_v13  ;;  %v2480_v21 = vrot.slane %v2478_v13, 4  ;;  %v1958_v23 = vshll.u32 %v1604_v1, 16  ;;  %v8890_v10 = vld [vmem:[%s8519_s7 + $0x14] sm:$0x1] }
 0x101   : > { %v1942_v19 = vrot.slane %v1941_v11, 4  ;;  %v1937_v22 = vsel %vm8611_vm6, %v1932_v14, %v1936_v3  ;;  %v1951_v51 = vrot.slane %v1949_v17, 4  ;;  %v1962_v0 = vshrl.u32 %v1604_v1, 16 }
 0x102   : > { %v1954_v59 = vrot.slane %v1952_v18, 5  ;;  %v2482_v27 = vsel %vm8594_vm5, %v2480_v21, %v2481_v15  ;;  %v1960_v28 = vrot.slane %v1958_v23, 5  ;;  %v1968_v29 = vshll.u32 %v1605_v16, 16  ;;  %v6735_v15 = vld [vmem:[%s8519_s7 + $0x18] sm:$0xf]  ;;  %v7993_v21 = vld [vmem:[%s8519_s7 + $0xc] sm:$0xff]  }
 0x103   : > { %v1947_v26 = vsel %vm8611_vm6, %v1942_v19, %v1946_v12  ;;  %v6649_v32 = vcombine.low %v2479_v20, %v2482_v27  ;;  %v1964_v35 = vrot.slane %v1962_v0, 4  ;;  %v6618_v40 = vrot.slane %v2332_v25, 9 }
 0x104   : > { %v6593_v31 = vcombine.low %v1937_v22, %v1947_v26  ;;  %v1955_v33 = vor.u32 %v1954_v59, %v1951_v51  ;;  %v1970_v39 = vrot.slane %v1968_v29, 5  ;;  %v2485_v42 = vrot.slane %v1604_v1, 5  ;;  %v8901_v51 = vld [vmem:[%s8519_s7 + $0x1c] sm:$0xf]  ;;  %v6738_v29 = vld [vmem:[%s8519_s7 + $0x24] sm:$0xf] }
 0x105   : > { %v2488_v43 = vrot.slane %v1605_v16, 5  ;;  %7548 = vmatmul.mubr.bf16.gmra.mxu0 %v6649_v32  ;;  %v1965_v47 = vor.u32 %v1964_v35, %v1960_v28  ;;  %v1973_v45 = vshrl.u32 %v1606_v30, 16  ;;  %v1976_v48 = vshll.u32 %v1606_v30, 16  ;;  %v8913_v35 = vld [vmem:[%s8519_s7 + $0x28] sm:$0xf] }
 0x106   : > { %7500 = vmatmul.mubr.bf16.gmra.mxu1 %v6593_v31  ;;  %v1956_v46 = vrot.slane %v1955_v33, 4  ;;  %v2486_v49 = vsel %vm8594_vm5, %v6618_v40, %v2485_v42  ;;  %v2487_v24 = vrot.slane %v2485_v42, 4  ;;  %v1982_v34 = vshll.u32 %v1607_v37, 16  ;;  %v8917_v42 = vld [vmem:[%s8519_s7 + $0x2c] sm:$0x1] }
 0x107   : > { %v1986_v41 = vshrl.u32 %v1607_v37, 16  ;;  %v1966_v54 = vrot.slane %v1965_v47, 4  ;;  %v1975_v55 = vrot.slane %v1973_v45, 4  ;;  %v1978_v58 = vrot.slane %v1976_v48, 5 }
 0x108   : > { %v1961_v52 = vsel %vm8611_vm6, %v1956_v46, %v1960_v28  ;;  %v2489_v60 = vsel %vm8594_vm5, %v2487_v24, %v2488_v43  ;;  %v1984_v56 = vrot.slane %v1982_v34, 5  ;;  %v1992_v63 = vshll.u32 %v1608_v38, 16  ;;  %v8909_v28 = vld [vmem:[%s8519_s7 + $0x20] sm:$0x1] }
 0x109   : > { %v1988_v62 = vrot.slane %v1986_v41, 4  ;;  %v1971_v1 = vsel %vm8611_vm6, %v1966_v54, %v1970_v39  ;;  %v6650_v2 = vcombine.low %v2486_v49, %v2489_v60  ;;  %v1979_v3 = vor.u32 %v1978_v58, %v1975_v55 }
 0x10a   : > { %v6619_v4 = vrot.slane %v2333_v44, 9  ;;  %v6594_v6 = vcombine.low %v1961_v52, %v1971_v1  ;;  %v1994_v8 = vrot.slane %v1992_v63, 5  ;;  %v2492_v9 = vrot.slane %v1607_v37, 5  ;;  %v7994_v63 = vld [vmem:[%s8519_s7 + $0x18] sm:$0xff]  }
 0x10b   : > { %v1989_v7 = vor.u32 %v1988_v62, %v1984_v56  ;;  %7551 = vmatprep.mubr.bf16.mxu0 %v6650_v2  ;;  %v1980_v11 = vrot.slane %v1979_v3, 4  ;;  %v2495_v12 = vrot.slane %v1608_v38, 5  ;;  %v3255_v13 = vshrl.u32 %v6732_v50, 16  ;;  %v7997_v2 = vld [vmem:[%s8519_s7 + $0x24] sm:$0xff]  }
 0x10c   : > { %v3258_v14 = vshll.u32 %v6732_v50, 16  ;;  %7503 = vmatprep.mubr.bf16.mxu1 %v6594_v6  ;;  %v2493_v17 = vsel %vm8594_vm5, %v6619_v4, %v2492_v9  ;;  %v2494_v18 = vrot.slane %v2492_v9, 4  ;;  %v3264_v19 = vshll.u32 %v8887_v5, 16  ;;  %v8932_v6 = vld [vmem:[%s8519_s7 + $0x34] sm:$0xf] }
 0x10d   : > { %v1990_v16 = vrot.slane %v1989_v7, 4  ;;  %v1985_v20 = vsel %vm8611_vm6, %v1980_v11, %v1984_v56  ;;  %v3257_v23 = vrot.slane %v3255_v13, 4  ;;  %v3268_v22 = vshrl.u32 %v8887_v5, 16  ;;  %v6741_v56 = vld [vmem:[%s8519_s7 + $0x30] sm:$0xf] }
 0x10e   : > { %v3260_v25 = vrot.slane %v3258_v14, 5  ;;  %v2496_v0 = vsel %vm8594_vm5, %v2494_v18, %v2495_v12  ;;  %v3266_v26 = vrot.slane %v3264_v19, 5  ;;  %v3274_v27 = vshll.u32 %v8890_v10, 16  ;;  %v7999_v12 = vld [vmem:[%s8521_s9 + $0x170] sm:$0xff]   ;;  %v8938_v19 = vld [vmem:[%s8519_s7 + $0x38] sm:$0x1] }
 0x10f   : > { %v1995_v59 = vsel %vm8611_vm6, %v1990_v16, %v1994_v8  ;;  %v6651_v31 = vcombine.low %v2493_v17, %v2496_v0  ;;  %v3270_v33 = vrot.slane %v3268_v22, 4  ;;  %v3279_v38 = vshrl.u32 %v6735_v15, 16 }
 0x110   : > { %v6595_v30 = vcombine.low %v1985_v20, %v1995_v59  ;;  %v3261_v32 = vor.u32 %v3260_v25, %v3257_v23  ;;  %v3276_v37 = vrot.slane %v3274_v27, 5  ;;  %v3282_v39 = vshll.u32 %v6735_v15, 16  ;;  %v8000_v23 = vld [vmem:[%s8521_s9 + $0x1b0] sm:$0xff]   ;;  %v6744_v25 = vld [vmem:[%s8519_s7 + $0x3c] sm:$0xf] }
 0x111   : > { %v3288_v40 = vshll.u32 %v8901_v51, 16  ;;  %7552 = vmatmul.mubr.bf16.gmra.mxu0 %v6651_v31  ;;  %v3271_v44 = vor.u32 %v3270_v33, %v3266_v26  ;;  %v3292_v46 = vshrl.u32 %v8901_v51, 16  ;;  %v3298_v47 = vshll.u32 %v8909_v28, 16  ;;  %v8947_v27 = vld [vmem:[%s8519_s7 + $0x40] sm:$0xf] }
 0x112   : > { %7504 = vmatmul.mubr.bf16.gmra.mxu1 %v6595_v30  ;;  %v3262_v43 = vrot.slane %v3261_v32, 4  ;;  %v3281_v45 = vrot.slane %v3279_v38, 4  ;;  %v3284_v48 = vrot.slane %v3282_v39, 5  ;;  %v3303_v24 = vshrl.u32 %v6738_v29, 16  ;;  %v8951_v33 = vld [vmem:[%s8519_s7 + $0x44] sm:$0x1] }
 0x113   : > { %7571 = vmatprep.mubr.bf16.mxu1 %v7993_v21  ;;  %v3290_v49 = vrot.slane %v3288_v40, 5  ;;  %v3272_v41 = vrot.slane %v3271_v44, 4  ;;  %v3294_v50 = vrot.slane %v3292_v46, 4  ;;  %v3300_v52 = vrot.slane %v3298_v47, 5  ;;  %v8003_v38 = vld [vmem:[%s8521_s9 + $0x168] sm:$0xff]   ;;  %v7998_v40 = vld [vmem:[%s8519_s7 + $0x30] sm:$0xff]  }
 0x114   : > { %v3267_v34 = vsel %vm8611_vm6, %v3262_v43, %v3266_v26  ;;  %v3285_v54 = vor.u32 %v3284_v48, %v3281_v45  ;;  %v3305_v55 = vrot.slane %v3303_v24, 4  ;;  %v3306_v58 = vshll.u32 %v6738_v29, 16  ;;  %v8001_v45 = vld [vmem:[%s8519_s7 + $0x3c] sm:$0xff]  }
 0x115   : > { %v3312_v60 = vshll.u32 %v8913_v35, 16  ;;  %v3277_v62 = vsel %vm8611_vm6, %v3272_v41, %v3276_v37  ;;  %v3295_v1 = vor.u32 %v3294_v50, %v3290_v49  ;;  %v3316_v3 = vshrl.u32 %v8913_v35, 16  ;;  %v6747_v37 = vld [vmem:[%s8519_s7 + $0x48] sm:$0xf] }
 0x116   : > { %v3322_v4 = vshll.u32 %v8917_v42, 16  ;;  %v6796_v7 = vcombine.low %v3267_v34, %v3277_v62  ;;  %v3286_v8 = vrot.slane %v3285_v54, 4  ;;  %v3308_v9 = vrot.slane %v3306_v58, 5  ;;  %v8004_v54 = vld [vmem:[%s8521_s9 + $0x1a8] sm:$0xff]   ;;  %v8971_v62 = vld [vmem:[%s8519_s7 + $0x50] sm:$0x1] }
 0x117   : > { %v3314_v11 = vrot.slane %v3312_v60, 5  ;;  %v3296_v13 = vrot.slane %v3295_v1, 4  ;;  %v3318_v14 = vrot.slane %v3316_v3, 4  ;;  %v3327_v16 = vshrl.u32 %v6741_v56, 16 }
 0x118   : > { %v3324_v15 = vrot.slane %v3322_v4, 5  ;;  %7619 = vmatprep.mubr.bf16.mxu0 %v6796_v7  ;;  %v3291_v17 = vsel %vm8611_vm6, %v3286_v8, %v3290_v49  ;;  %v3309_v18 = vor.u32 %v3308_v9, %v3305_v55  ;;  %v3330_v20 = vshll.u32 %v6741_v56, 16  ;;  %v6750_v4 = vld [vmem:[%s8519_s7 + $0x54] sm:$0xf] }
 0x119   : > { %v3336_v21 = vshll.u32 %v8932_v6, 16  ;;  %v3301_v22 = vsel %vm8611_vm6, %v3296_v13, %v3300_v52  ;;  %v3319_v59 = vor.u32 %v3318_v14, %v3314_v11  ;;  %v3329_v0 = vrot.slane %v3327_v16, 4  ;;  %v8965_v52 = vld [vmem:[%s8519_s7 + $0x4c] sm:$0xf]  ;;  %v8983_v16 = vld [vmem:[%s8519_s7 + $0x58] sm:$0xf] }
 0x11a   : > { %7572 = vmatmul.mubr.bf16.vlgmr.msra.gmra.mxu1 %v7994_v63  ;;  %v3340_v26 = vshrl.u32 %v8932_v6, 16  ;;  %v6797_v29 = vcombine.low %v3291_v17, %v3301_v22  ;;  %v3310_v30 = vrot.slane %v3309_v18, 4  ;;  %v3332_v31 = vrot.slane %v3330_v20, 5  ;;  %v8008_v22 = vld [vmem:[%s8521_s9 + $0x1a0] sm:$0xff]  }
 0x11b   : > { %7652 = vmatpush3.bf16.msra.mxu1 %v8793_v53  ;;  %7575 = vmatprep.mubr.bf16.mxu1 %v7997_v2  ;;  %v3338_v32 = vrot.slane %v3336_v21, 5  ;;  %v3320_v39 = vrot.slane %v3319_v59, 4  ;;  %v3346_v44 = vshll.u32 %v8938_v19, 16  ;;  %v3351_v46 = vshrl.u32 %v6744_v25, 16  ;;  %v8002_v59 = vld [vmem:[%s8519_s7 + $0x48] sm:$0xff]  }
 0x11c   : > { %v3342_v43 = vrot.slane %v3340_v26, 4  ;;  %7653 = vmatprep.subr.bf16.mxu1 %v7999_v12  ;;  %7620 = vmatmul.mubr.bf16.vlgmr.msra.gmra.mxu0 %v6797_v29  ;;  %v3315_v53 = vsel %vm8611_vm6, %v3310_v30, %v3314_v11  ;;  %v3333_v47 = vor.u32 %v3332_v31, %v3329_v0  ;;  %v3354_v48 = vshll.u32 %v6744_v25, 16  ;;  %v8988_v25 = vld [vmem:[%s8519_s7 + $0x5c] sm:$0x1]  ;;  %v6753_v30 = vld [vmem:[%s8519_s7 + $0x60] sm:$0xf] }
 0x11d   : > { %v3360_v49 = vshll.u32 %v8947_v27, 16  ;;  %7700 = vmatpush3.bf16.msra.mxu0 %v8797_v61  ;;  %v3325_v24 = vsel %vm8611_vm6, %v3320_v39, %v3324_v15  ;;  %v3348_v41 = vrot.slane %v3346_v44, 5  ;;  %v3353_v50 = vrot.slane %v3351_v46, 4  ;;  %v8007_v61 = vld [vmem:[%s8521_s9 + $0x160] sm:$0xff]   ;;  %v8011_v31 = vld [vmem:[%s8521_s9 + $0x158] sm:$0xff]  }
 0x11e   : > { %v3343_v34 = vor.u32 %v3342_v43, %v3338_v32  ;;  %v6798_v55 = vcombine.low %v3315_v53, %v3325_v24  ;;  %v3334_v58 = vrot.slane %v3333_v47, 4  ;;  %7701 = vmatprep.subr.bf16.mxu0 %v8000_v23  ;;  %v3356_v60 = vrot.slane %v3354_v48, 5  ;;  %v9003_v47 = vld [vmem:[%s8519_s7 + $0x64] sm:$0xf] }
 0x11f   : > { %7654 = vmatpush3.bf16.msra.mxu1 %v7999_v12  ;;  %v8968_v56 = vrot.slane %v3360_v49, 5  ;;  %v3364_v1 = vshrl.u32 %v8947_v27, 16  ;;  %v3370_v2 = vshll.u32 %v8951_v33, 16  ;;  %v3375_v3 = vshrl.u32 %v6747_v37, 16 }
 0x120   : > { %v3344_v63 = vrot.slane %v3343_v34, 4  ;;  %7655 = vmatprep.subr.bf16.mxu1 %v8003_v38  ;;  %7623 = vmatprep.mubr.bf16.mxu0 %v6798_v55  ;;  %v3339_v7 = vsel %vm8611_vm6, %v3334_v58, %v3338_v32  ;;  %v3357_v8 = vor.u32 %v3356_v60, %v3353_v50  ;;  %v3378_v9 = vshll.u32 %v6747_v37, 16 }
 0x121   : > { %v3384_v11 = vshll.u32 %v8965_v52, 16  ;;  %7702 = vmatpush3.bf16.msra.mxu0 %v8000_v23  ;;  %v3366_v13 = vrot.slane %v3364_v1, 4  ;;  %v3372_v14 = vrot.slane %v3370_v2, 5  ;;  %v3377_v15 = vrot.slane %v3375_v3, 4  ;;  %v9015_v1 = vld [vmem:[%s8519_s7 + $0x68] sm:$0x1] }
 0x122   : > { %7576 = vmatmul.mubr.bf16.gmra.mxu1 %v7998_v40  ;;  %v3349_v12 = vsel %vm8611_vm6, %v3344_v63, %v3348_v41  ;;  %v3358_v18 = vrot.slane %v3357_v8, 4  ;;  %v3380_v20 = vrot.slane %v3378_v9, 5  ;;  %v3388_v0 = vshrl.u32 %v8965_v52, 16  ;;  %7703 = vmatprep.subr.bf16.mxu0 %v8004_v54  ;;  %v8015_v2 = vld [vmem:[%s8521_s9 + $0x150] sm:$0xff]   ;;  %v9020_v9 = vld [vmem:[%s8519_s7 + $0x70] sm:$0xf] }
 0x123   : > { %v6799_v17 = vcombine.low %v3339_v7, %v3349_v12  ;;  %7579 = vmatprep.mubr.bf16.mxu1 %v8001_v45  ;;  %v8985_v21 = vrot.slane %v3384_v11, 5  ;;  %7656 = vmatpush3.bf16.msra.mxu1 %v8003_v38  ;;  %v3367_v23 = vor.u32 %v3366_v13, %v8968_v56  ;;  %v3394_v26 = vshll.u32 %v8971_v62, 16  ;;  %v8005_v38 = vld [vmem:[%s8519_s7 + $0x54] sm:$0xff]  }
 0x124   : > { %v3399_v29 = vshrl.u32 %v6750_v4, 16  ;;  %7657 = vmatprep.subr.bf16.mxu1 %v8007_v61  ;;  %v3363_v32 = vsel %vm8611_vm6, %v3358_v18, %v8968_v56  ;;  %v3381_v37 = vor.u32 %v3380_v20, %v3377_v15  ;;  %v3402_v39 = vshll.u32 %v6750_v4, 16  ;;  %v8012_v45 = vld [vmem:[%s8521_s9 + $0x198] sm:$0xff]   ;;  %v8016_v15 = vld [vmem:[%s8521_s9 + $0x190] sm:$0xff]  }
 0x125   : > { %7624 = vmatmul.mubr.bf16.gmra.mxu0 %v6799_v17  ;;  %v3408_v40 = vshll.u32 %v8983_v16, 16  ;;  %v3368_v43 = vrot.slane %v3367_v23, 4  ;;  %v3390_v44 = vrot.slane %v3388_v0, 4  ;;  %v3396_v46 = vrot.slane %v3394_v26, 5  ;;  %v8006_v18 = vld [vmem:[%s8519_s7 + $0x60] sm:$0xff]  }
 0x126   : > { %7704 = vmatpush3.bf16.msra.mxu0 %v8004_v54  ;;  %v3401_v53 = vrot.slane %v3399_v29, 4  ;;  %v3382_v48 = vrot.slane %v3381_v37, 4  ;;  %v3404_v49 = vrot.slane %v3402_v39, 5  ;;  %v3412_v34 = vshrl.u32 %v8983_v16, 16  ;;  %v8019_v23 = vld [vmem:[%s8521_s9 + $0x148] sm:$0xff]  }
 0x127   : > { %v3410_v24 = vrot.slane %v3408_v40, 5  ;;  %7658 = vmatpush3.bf16.msra.mxu1 %v8007_v61  ;;  %7705 = vmatprep.subr.bf16.mxu0 %v8008_v22  ;;  %v3373_v41 = vsel %vm8611_vm6, %v3368_v43, %v3372_v14  ;;  %v3391_v50 = vor.u32 %v3390_v44, %v8985_v21  ;;  %v3418_v54 = vshll.u32 %v8988_v25, 16  ;;  %v6756_v61 = vld [vmem:[%s8519_s7 + $0x6c] sm:$0xf]  ;;  %v6759_v37 = vld [vmem:[%s8519_s7 + $0x78] sm:$0xf] }
 0x128   : > { %v3423_v55 = vshrl.u32 %v6753_v30, 16  ;;  %7659 = vmatprep.subr.bf16.mxu1 %v8011_v31  ;;  %v6800_v58 = vcombine.low %v3363_v32, %v3373_v41  ;;  %v3387_v60 = vsel %vm8611_vm6, %v3382_v48, %v8985_v21  ;;  %v3405_v56 = vor.u32 %v3404_v49, %v3401_v53  ;;  %v9034_v32 = vld [vmem:[%s8519_s7 + $0x74] sm:$0x1]  ;;  %v9038_v43 = vld [vmem:[%s8519_s7 + $0x7c] sm:$0xf] }
 0x129   : > { %v3414_v63 = vrot.slane %v3412_v34, 4  ;;  %v3392_v3 = vrot.slane %v3391_v50, 4  ;;  %v3420_v4 = vrot.slane %v3418_v54, 5  ;;  %v3426_v8 = vshll.u32 %v6753_v30, 16  ;;  %v8009_v30 = vld [vmem:[%s8519_s7 + $0x6c] sm:$0xff]   ;;  %v9041_v44 = vld [vmem:[%s8521_s9 + $0x188] sm:$0xff]  }
 0x12a   : > { %7580 = vmatmul.mubr.bf16.gmra.mxu1 %v8002_v59  ;;  %v3425_v7 = vrot.slane %v3423_v55, 4  ;;  %7706 = vmatpush3.bf16.msra.mxu0 %v8008_v22  ;;  %v3406_v11 = vrot.slane %v3405_v56, 4  ;;  %v3432_v13 = vshll.u32 %v9003_v47, 16  ;;  %v3436_v14 = vshrl.u32 %v9003_v47, 16  ;;  %v8023_v34 = vld [vmem:[%s8521_s9 + $0x140] sm:$0xff]  }
 0x12b   : > { %7627 = vmatprep.mubr.bf16.mxu0 %v6800_v58  ;;  %7583 = vmatprep.mubr.bf16.mxu1 %v8005_v38  ;;  %v3415_v12 = vor.u32 %v3414_v63, %v3410_v24  ;;  %v3397_v17 = vsel %vm8611_vm6, %v3392_v3, %v3396_v46  ;;  %v3428_v20 = vrot.slane %v3426_v8, 5  ;;  %v3442_v21 = vshll.u32 %v9015_v1, 16 }
 0x12c   : > { %v3447_v22 = vshrl.u32 %v6756_v61, 16  ;;  %7660 = vmatpush3.bf16.msra.mxu1 %v8011_v31  ;;  %7707 = vmatprep.subr.bf16.mxu0 %v8012_v45  ;;  %v6801_v59 = vcombine.low %v3387_v60, %v3397_v17  ;;  %v3411_v0 = vsel %vm8611_vm6, %v3406_v11, %v3410_v24  ;;  %v3434_v29 = vrot.slane %v3432_v13, 5  ;;  %v9048_v24 = vld [vmem:[%s8519_s7 + $0x80] sm:$0x1] }
 0x12d   : > { %v3416_v26 = vrot.slane %v3415_v12, 4  ;;  %7661 = vmatprep.subr.bf16.mxu1 %v8015_v2  ;;  %v3429_v38 = vor.u32 %v3428_v20, %v3425_v7  ;;  %v3438_v39 = vrot.slane %v3436_v14, 4  ;;  %v3444_v40 = vrot.slane %v3442_v21, 5  ;;  %v6762_v12 = vld [vmem:[%s8519_s7 + $0x84] sm:$0xf]  ;;  %v8010_v14 = vld [vmem:[%s8519_s7 + $0x78] sm:$0xff]  }
 0x12e   : > { %v3449_v31 = vrot.slane %v3447_v22, 4  ;;  %7708 = vmatpush3.bf16.msra.mxu0 %v8012_v45  ;;  %v3450_v53 = vshll.u32 %v6756_v61, 16  ;;  %v3456_v48 = vshll.u32 %v9020_v9, 16  ;;  %v3460_v49 = vshrl.u32 %v9020_v9, 16  ;;  %v9062_v21 = vld [vmem:[%s8519_s7 + $0x88] sm:$0xf] }
 0x12f   : > { %7628 = vmatmul.mubr.bf16.gmra.mxu0 %v6801_v59  ;;  %v3421_v46 = vsel %vm8611_vm6, %v3416_v26, %v3420_v4  ;;  %7709 = vmatprep.subr.bf16.mxu0 %v8016_v15  ;;  %v3430_v50 = vrot.slane %v3429_v38, 4  ;;  %v3439_v54 = vor.u32 %v3438_v39, %v3434_v29  ;;  %v3466_v45 = vshll.u32 %v9034_v32, 16  ;;  %v8024_v22 = vld [vmem:[%s8521_s9 + $0x180] sm:$0xff]  }
 0x130   : > { %v6802_v41 = vcombine.low %v3411_v0, %v3421_v46  ;;  %7662 = vmatpush3.bf16.msra.mxu1 %v8015_v2  ;;  %v3452_v55 = vrot.slane %v3450_v53, 5  ;;  %v3458_v58 = vrot.slane %v3456_v48, 5  ;;  %v3462_v60 = vrot.slane %v3460_v49, 4  ;;  %v6765_v49 = vld [vmem:[%s8519_s7 + $0x90] sm:$0xf] }
 0x131   : > { %v3471_v56 = vshrl.u32 %v6759_v37, 16  ;;  %7663 = vmatprep.subr.bf16.mxu1 %v8019_v23  ;;  %v3435_v63 = vsel %vm8611_vm6, %v3430_v50, %v3434_v29  ;;  %v3440_v61 = vrot.slane %v3439_v54, 4  ;;  %v3468_v3 = vrot.slane %v3466_v45, 5  ;;  %v9067_v29 = vld [vmem:[%s8519_s7 + $0x8c] sm:$0x1] }
 0x132   : > { %7631 = vmatprep.mubr.bf16.mxu0 %v6802_v41  ;;  %7584 = vmatmul.mubr.bf16.gmra.mxu1 %v8006_v18  ;;  %v3474_v4 = vshll.u32 %v6759_v37, 16  ;;  %v3453_v7 = vor.u32 %v3452_v55, %v3449_v31  ;;  %v3463_v2 = vor.u32 %v3462_v60, %v3458_v58  ;;  %v3480_v11 = vshll.u32 %v9038_v43, 16  ;;  %v9080_v55 = vld [vmem:[%s8519_s7 + $0x94] sm:$0xf] }
 0x133   : > { %7587 = vmatprep.mubr.bf16.mxu1 %v8009_v30  ;;  %v3473_v8 = vrot.slane %v3471_v56, 4  ;;  %7710 = vmatpush3.bf16.msra.mxu0 %v8016_v15  ;;  %v3445_v13 = vsel %vm8611_vm6, %v3440_v61, %v3444_v40  ;;  %v3484_v18 = vshrl.u32 %v9038_v43, 16  ;;  %v3490_v20 = vshll.u32 %v9048_v24, 16  ;;  %v9070_v30 = vld [vmem:[%s8521_s9 + $0x1f8] sm:$0xff]  }
 0x134   : > { %v3476_v17 = vrot.slane %v3474_v4, 5  ;;  %7664 = vmatpush3.bf16.msra.mxu1 %v8019_v23  ;;  %7711 = vmatprep.subr.bf16.mxu0 %v9041_v44  ;;  %v6803_v59 = vcombine.low %v3435_v63, %v3445_v13  ;;  %v3454_v0 = vrot.slane %v3453_v7, 4  ;;  %v3464_v15 = vrot.slane %v3463_v2, 4  ;;  %v8013_v40 = vld [vmem:[%s8519_s7 + $0x84] sm:$0xff]   ;;  %v6768_v4 = vld [vmem:[%s8519_s7 + $0x9c] sm:$0xf] }
 0x135   : > { %v3482_v26 = vrot.slane %v3480_v11, 5  ;;  %7665 = vmatprep.subr.bf16.mxu1 %v8023_v34  ;;  %v3486_v38 = vrot.slane %v3484_v18, 4  ;;  %v3492_v39 = vrot.slane %v3490_v20, 5  ;;  %v3495_v23 = vshrl.u32 %v6762_v12, 16 }
 0x136   : > { %v3477_v37 = vor.u32 %v3476_v17, %v3473_v8  ;;  %v3459_v31 = vsel %vm8611_vm6, %v3454_v0, %v3458_v58  ;;  %v3469_v46 = vsel %vm8611_vm6, %v3464_v15, %v3468_v3  ;;  %v3498_v53 = vshll.u32 %v6762_v12, 16  ;;  %v9084_v58 = vld [vmem:[%s8521_s9 + $0x238] sm:$0xff]   ;;  %v9089_v3 = vld [vmem:[%s8519_s7 + $0x98] sm:$0x1]  ;;  %v9096_v8 = vld [vmem:[%s8519_s7 + $0xa0] sm:$0xf] }
 0x137   : > { %7632 = vmatmul.mubr.bf16.gmra.mxu0 %v6803_v59  ;;  %v3504_v48 = vshll.u32 %v9062_v21, 16  ;;  %v6804_v41 = vcombine.low %v3459_v31, %v3469_v46  ;;  %v3487_v54 = vor.u32 %v3486_v38, %v3482_v26  ;;  %v3497_v45 = vrot.slane %v3495_v23, 4  ;;  %v8014_v38 = vld [vmem:[%s8519_s7 + $0x90] sm:$0xff]  }
 0x138   : > { %v3478_v50 = vrot.slane %v3477_v37, 4  ;;  %7712 = vmatpush3.bf16.msra.mxu0 %v9041_v44  ;;  %7666 = vmatpush3.bf16.msra.mxu1 %v8023_v34  ;;  %v3500_v60 = vrot.slane %v3498_v53, 5  ;;  %v3508_v63 = vshrl.u32 %v9062_v21, 16  ;;  %v3514_v61 = vshll.u32 %v9067_v29, 16 }
 0x139   : > { %v3506_v56 = vrot.slane %v3504_v48, 5  ;;  %7713 = vmatprep.subr.bf16.mxu0 %v8024_v22  ;;  %7747 = vmatprep.subr.bf16.mxu1 %v9070_v30  ;;  %v3488_v34 = vrot.slane %v3487_v54, 4  ;;  %v3519_v7 = vshrl.u32 %v6765_v49, 16  ;;  %v3522_v2 = vshll.u32 %v6765_v49, 16  ;;  %v8017_v48 = vld [vmem:[%s8519_s7 + $0x9c] sm:$0xff]  }
 0x13a   : > { %7635 = vmatprep.mubr.bf16.mxu0 %v6804_v41  ;;  %7588 = vmatmul.mubr.bf16.gmra.mxu1 %v8010_v14  ;;  %v3483_v44 = vsel %vm8611_vm6, %v3478_v50, %v3482_v26  ;;  %v3501_v11 = vor.u32 %v3500_v60, %v3497_v45  ;;  %v3510_v12 = vrot.slane %v3508_v63, 4  ;;  %v3516_v13 = vrot.slane %v3514_v61, 5  ;;  %v6771_v50 = vld [vmem:[%s8519_s7 + $0xa8] sm:$0xf]  ;;  %v9114_v61 = vld [vmem:[%s8519_s7 + $0xac] sm:$0xf] }
 0x13b   : > { %7591 = vmatprep.mubr.bf16.mxu1 %v8013_v40  ;;  %v3528_v17 = vshll.u32 %v9080_v55, 16  ;;  %v3493_v18 = vsel %vm8611_vm6, %v3488_v34, %v3492_v39  ;;  %v3521_v14 = vrot.slane %v3519_v7, 4  ;;  %v3524_v20 = vrot.slane %v3522_v2, 5  ;;  %v9106_v39 = vld [vmem:[%s8519_s7 + $0xa4] sm:$0x1] }
 0x13c   : > { %v3532_v59 = vshrl.u32 %v9080_v55, 16  ;;  %7714 = vmatpush3.bf16.msra.mxu0 %v8024_v22  ;;  %v6805_v0 = vcombine.low %v3483_v44, %v3493_v18  ;;  %v3502_v15 = vrot.slane %v3501_v11, 4  ;;  %v3511_v26 = vor.u32 %v3510_v12, %v3506_v56 }
 0x13d   : > { %v3530_v37 = vrot.slane %v3528_v17, 5  ;;  %7795 = vmatprep.subr.bf16.mxu0 %v9084_v58  ;;  %v3525_v40 = vor.u32 %v3524_v20, %v3521_v14  ;;  %v3538_v31 = vshll.u32 %v9089_v3, 16  ;;  %v3543_v46 = vshrl.u32 %v6768_v4, 16  ;;  %v9123_v17 = vld [vmem:[%s8519_s7 + $0xb0] sm:$0x1] }
 0x13e   : > { %v3534_v23 = vrot.slane %v3532_v59, 4  ;;  %v3507_v22 = vsel %vm8611_vm6, %v3502_v15, %v3506_v56  ;;  %v3512_v53 = vrot.slane %v3511_v26, 4  ;;  %v3546_v49 = vshll.u32 %v6768_v4, 16  ;;  %v6774_v59 = vld [vmem:[%s8519_s7 + $0xb4] sm:$0xf]  ;;  %v8018_v26 = vld [vmem:[%s8519_s7 + $0xa8] sm:$0xff]  }
 0x13f   : > { %7636 = vmatmul.mubr.bf16.gmra.mxu0 %v6805_v0  ;;  %v3552_v41 = vshll.u32 %v9096_v8, 16  ;;  %v3526_v54 = vrot.slane %v3525_v40, 4  ;;  %v3540_v60 = vrot.slane %v3538_v31, 5  ;;  %v3545_v63 = vrot.slane %v3543_v46, 4  ;;  %v9132_v40 = vld [vmem:[%s8519_s7 + $0xb8] sm:$0xf] }
 0x140   : > { %v3535_v45 = vor.u32 %v3534_v23, %v3530_v37  ;;  %v3517_v44 = vsel %vm8611_vm6, %v3512_v53, %v3516_v13  ;;  %v3548_v34 = vrot.slane %v3546_v49, 5  ;;  %v3556_v56 = vshrl.u32 %v9096_v8, 16 }
 0x141   : > { %v3554_v7 = vrot.slane %v3552_v41, 5  ;;  %v6806_v4 = vcombine.low %v3507_v22, %v3517_v44  ;;  %v3531_v2 = vsel %vm8611_vm6, %v3526_v54, %v3530_v37  ;;  %v3562_v12 = vshll.u32 %v9106_v39, 16  ;;  %v6777_v54 = vld [vmem:[%s8519_s7 + $0xc0] sm:$0xf] }
 0x142   : > { %7592 = vmatmul.mubr.bf16.gmra.mxu1 %v8014_v38  ;;  %v3536_v11 = vrot.slane %v3535_v45, 4  ;;  %v3549_v18 = vor.u32 %v3548_v34, %v3545_v63  ;;  %v3558_v14 = vrot.slane %v3556_v56, 4  ;;  %v3567_v13 = vshrl.u32 %v6771_v50, 16  ;;  %v8021_v63 = vld [vmem:[%s8519_s7 + $0xb4] sm:$0xff]  }
 0x143   : > { %7595 = vmatprep.mubr.bf16.mxu1 %v8017_v48  ;;  %v3570_v20 = vshll.u32 %v6771_v50, 16  ;;  %7639 = vmatprep.mubr.bf16.mxu0 %v6806_v4  ;;  %v3564_v15 = vrot.slane %v3562_v12, 5  ;;  %v3576_v37 = vshll.u32 %v9114_v61, 16  ;;  %v3580_v38 = vshrl.u32 %v9114_v61, 16  ;;  %v9136_v50 = vld [vmem:[%s8519_s7 + $0xbc] sm:$0x1] }
 0x144   : > { %v3541_v0 = vsel %vm8611_vm6, %v3536_v11, %v3540_v60  ;;  %v3550_v31 = vrot.slane %v3549_v18, 4  ;;  %v3559_v46 = vor.u32 %v3558_v14, %v3554_v7  ;;  %v3569_v22 = vrot.slane %v3567_v13, 4  ;;  %v9144_v12 = vld [vmem:[%s8519_s7 + $0xc4] sm:$0xf] }
 0x145   : > { %v6807_v23 = vcombine.low %v3531_v2, %v3541_v0  ;;  %v3572_v53 = vrot.slane %v3570_v20, 5  ;;  %v3578_v48 = vrot.slane %v3576_v37, 5  ;;  %v3582_v49 = vrot.slane %v3580_v38, 4  ;;  %v9150_v38 = vld [vmem:[%s8519_s7 + $0xc8] sm:$0x1] }
 0x146   : > { %v3586_v41 = vshll.u32 %v9123_v17, 16  ;;  %v3555_v45 = vsel %vm8611_vm6, %v3550_v31, %v3554_v7  ;;  %v3560_v60 = vrot.slane %v3559_v46, 4  ;;  %v3591_v44 = vshrl.u32 %v6774_v59, 16 }
 0x147   : > { %7640 = vmatmul.mubr.bf16.gmra.mxu0 %v6807_v23  ;;  %v3594_v34 = vshll.u32 %v6774_v59, 16  ;;  %v3573_v56 = vor.u32 %v3572_v53, %v3569_v22  ;;  %v3583_v4 = vor.u32 %v3582_v49, %v3578_v48  ;;  %v3600_v11 = vshll.u32 %v9132_v40, 16  ;;  %v6820_v23 = vld [vmem:[%s8519_s7 + $0xc] sm:$0xe]  ;;  %v8022_v49 = vld [vmem:[%s8519_s7 + $0xc0] sm:$0xff]  }
 0x148   : > { %v3588_v2 = vrot.slane %v3586_v41, 5  ;;  %v3565_v18 = vsel %vm8611_vm6, %v3560_v60, %v3564_v15  ;;  %v3593_v14 = vrot.slane %v3591_v44, 4  ;;  %v3604_v7 = vshrl.u32 %v9132_v40, 16  ;;  %v6821_v60 = vld [vmem:[%s8519_s7 + $0x18] sm:$0xe] }
 0x149   : > { %v3596_v13 = vrot.slane %v3594_v34, 5  ;;  %v6808_v20 = vcombine.low %v3555_v45, %v3565_v18  ;;  %v3574_v0 = vrot.slane %v3573_v56, 4  ;;  %v3584_v59 = vrot.slane %v3583_v4, 4 }
 0x14a   : > { %7596 = vmatmul.mubr.bf16.gmra.mxu1 %v8018_v26  ;;  %v3602_v37 = vrot.slane %v3600_v11, 5  ;;  %v3606_v46 = vrot.slane %v3604_v7, 4  ;;  %v3610_v22 = vshll.u32 %v9136_v50, 16  ;;  %v3615_v15 = vshrl.u32 %v6777_v54, 16  ;;  %v6822_v7 = vld [vmem:[%s8519_s7 + $0x24] sm:$0xe] }
 0x14b   : > { %7599 = vmatprep.mubr.bf16.mxu1 %v8021_v63  ;;  %v3597_v31 = vor.u32 %v3596_v13, %v3593_v14  ;;  %7643 = vmatprep.mubr.bf16.mxu0 %v6808_v20  ;;  %v3579_v53 = vsel %vm8611_vm6, %v3574_v0, %v3578_v48  ;;  %v3589_v26 = vsel %vm8611_vm6, %v3584_v59, %v3588_v2  ;;  %v3618_v41 = vshll.u32 %v6777_v54, 16 }
 0x14c   : > { %v3624_v45 = vshll.u32 %v9144_v12, 16  ;;  %v6809_v44 = vcombine.low %v3579_v53, %v3589_v26  ;;  %v3607_v34 = vor.u32 %v3606_v46, %v3602_v37  ;;  %v3612_v56 = vrot.slane %v3610_v22, 5 }
 0x14d   : > { %v3598_v63 = vrot.slane %v3597_v31, 4  ;;  %v3617_v4 = vrot.slane %v3615_v15, 4  ;;  %v3620_v11 = vrot.slane %v3618_v41, 5  ;;  %v3628_v14 = vshrl.u32 %v9144_v12, 16 }
 0x14e   : > { %v3626_v18 = vrot.slane %v3624_v45, 5  ;;  %v3608_v2 = vrot.slane %v3607_v34, 4  ;;  %v3634_v54 = vshll.u32 %v9150_v38, 16  ;;  %v6836_v13 = vrot.slane %v6820_v23, 9  ;;  %v6823_v45 = vld [vmem:[%s8519_s7 + $0x30] sm:$0xe] }
 0x14f   : > { %7644 = vmatmul.mubr.bf16.gmra.mxu0 %v6809_v44  ;;  %v3603_v48 = vsel %vm8611_vm6, %v3598_v63, %v3602_v37  ;;  %v3621_v20 = vor.u32 %v3620_v11, %v3617_v4  ;;  %v3630_v0 = vrot.slane %v3628_v14, 4  ;;  %v4026_v59 = vrot.slane %v8887_v5, 5 }
 0x150   : > { %v4029_v31 = vrot.slane %v8890_v10, 5  ;;  %v3613_v46 = vsel %vm8611_vm6, %v3608_v2, %v3612_v56  ;;  %v3636_v22 = vrot.slane %v3634_v54, 5  ;;  %v6837_v15 = vrot.slane %v6821_v60, 9 }
 0x151   : > { %v4033_v37 = vrot.slane %v8901_v51, 5  ;;  %v6810_v53 = vcombine.low %v3603_v48, %v3613_v46  ;;  %v3622_v26 = vrot.slane %v3621_v20, 4  ;;  %v3631_v41 = vor.u32 %v3630_v0, %v3626_v18  ;;  %v6825_v46 = vld [vmem:[%s8519_s7 + $0x48] sm:$0xe] }
 0x152   : > { %7600 = vmatmul.mubr.bf16.gmra.mxu1 %v8022_v49  ;;  %v4027_v23 = vsel %vm8594_vm5, %v6836_v13, %v4026_v59  ;;  %v4028_v44 = vrot.slane %v4026_v59, 4  ;;  %v4036_v63 = vrot.slane %v8909_v28, 5  ;;  %v8025_v49 = vld [vmem:[%s8519_s7 + $0x18] sm:$0xff]   ;;  %v6838_v34 = vrot.slane %v6822_v7, 9  ;;  %v8031_v59 = vld [vmem:[%s8521_s9 + $0x1f0] sm:$0xff]  }
 0x153   : > { %v4034_v5 = vsel %vm8594_vm5, %v6837_v15, %v4033_v37  ;;  %v4035_v10 = vrot.slane %v4033_v37, 4  ;;  %7647 = vmatprep.mubr.bf16.mxu0 %v6810_v53  ;;  %v3627_v51 = vsel %vm8611_vm6, %v3622_v26, %v3626_v18  ;;  %v3632_v60 = vrot.slane %v3631_v41, 4  ;;  %v6824_v13 = vld [vmem:[%s8519_s7 + $0x3c] sm:$0xe] }
 0x154   : > { %v4040_v56 = vrot.slane %v8913_v35, 5  ;;  %v4030_v4 = vsel %vm8594_vm5, %v4028_v44, %v4029_v31  ;;  %v4043_v14 = vrot.slane %v8917_v42, 5  ;;  %v6839_v28 = vrot.slane %v6823_v45, 9  ;;  %v8035_v41 = vld [vmem:[%s8521_s9 + $0x1e8] sm:$0xff]  }
 0x155   : > { %v4037_v11 = vsel %vm8594_vm5, %v4035_v10, %v4036_v63  ;;  %v3637_v48 = vsel %vm8611_vm6, %v3632_v60, %v3636_v22  ;;  %v6868_v18 = vcombine.low %v4027_v23, %v4030_v4  ;;  %v4047_v20 = vrot.slane %v8932_v6, 5  ;;  %v6826_v63 = vld [vmem:[%s8519_s7 + $0x54] sm:$0xe]  ;;  %v8032_v60 = vld [vmem:[%s8521_s9 + $0x230] sm:$0xff]  }
 0x156   : > { %v6869_v2 = vcombine.low %v4034_v5, %v4037_v11  ;;  %v4041_v54 = vsel %vm8594_vm5, %v6838_v34, %v4040_v56  ;;  %v6811_v35 = vcombine.low %v3627_v51, %v3637_v48  ;;  %v4042_v7 = vrot.slane %v4040_v56, 4  ;;  %v6827_v34 = vld [vmem:[%s8519_s7 + $0x60] sm:$0xe] }
 0x157   : > { %v4050_v0 = vrot.slane %v8938_v19, 5  ;;  %7667 = vmatprep.mubr.bf16.mxu1 %v6868_v18  ;;  %v6840_v42 = vrot.slane %v6824_v13, 9  ;;  %v4054_v31 = vrot.slane %v8947_v27, 5  ;;  %v4061_v22 = vrot.slane %v8965_v52, 5  ;;  %v8026_v52 = vld [vmem:[%s8519_s7 + $0x24] sm:$0xff]  }
 0x158   : > { %7648 = vmatmul.mubr.bf16.gmra.mxu0 %v6811_v35  ;;  %v4044_v15 = vsel %vm8594_vm5, %v4042_v7, %v4043_v14  ;;  %v4048_v6 = vsel %vm8594_vm5, %v6839_v28, %v4047_v20  ;;  %v4049_v37 = vrot.slane %v4047_v20, 4  ;;  %v4057_v19 = vrot.slane %v8951_v33, 5  ;;  %v8029_v33 = vld [vmem:[%s8519_s7 + $0x30] sm:$0xff]   ;;  %v8036_v18 = vld [vmem:[%s8521_s9 + $0x228] sm:$0xff]  }
 0x159   : > { %7715 = vmatprep.mubr.bf16.mxu0 %v8025_v49  ;;  %v6870_v53 = vcombine.low %v4041_v54, %v4044_v15  ;;  %v4056_v27 = vrot.slane %v4054_v31, 4  ;;  %v6841_v26 = vrot.slane %v6825_v46, 9  ;;  %v4063_v45 = vrot.slane %v4061_v22, 4  ;;  %v6829_v7 = vld [vmem:[%s8519_s7 + $0x78] sm:$0xe] }
 0x15a   : > { %7668 = vmatmul.mubr.bf16.vlgmr.msra.gmra.mxu1 %v6869_v2  ;;  %v4051_v23 = vsel %vm8594_vm5, %v4049_v37, %v4050_v0  ;;  %v4068_v44 = vrot.slane %v8983_v16, 5  ;;  %v4064_v10 = vrot.slane %v8971_v62, 5  ;;  %v4075_v51 = vrot.slane %v9003_v47, 5  ;;  %v8039_v62 = vld [vmem:[%s8521_s9 + $0x1e0] sm:$0xff]  }
 0x15b   : > { %7748 = vmatpush3.bf16.msra.mxu1 %v9070_v30  ;;  %7671 = vmatprep.mubr.bf16.mxu1 %v6870_v53  ;;  %v6871_v5 = vcombine.low %v4048_v6, %v4051_v23  ;;  %v4055_v30 = vsel %vm8594_vm5, %v6840_v42, %v4054_v31  ;;  %v4058_v49 = vsel %vm8594_vm5, %v4056_v27, %v4057_v19  ;;  %v4071_v16 = vrot.slane %v8988_v25, 5  ;;  %v6828_v25 = vld [vmem:[%s8519_s7 + $0x6c] sm:$0xe]  ;;  %v9256_v6 = vld [vmem:[%s8521_s9 + $0x220] sm:$0xff]  }
 0x15c   : > { %7749 = vmatprep.subr.bf16.mxu1 %v8031_v59  ;;  %v6842_v56 = vrot.slane %v6826_v63, 9  ;;  %v4070_v4 = vrot.slane %v4068_v44, 4  ;;  %v6843_v11 = vrot.slane %v6827_v34, 9  ;;  %v4077_v14 = vrot.slane %v4075_v51, 4  ;;  %v8043_v31 = vld [vmem:[%s8521_s9 + $0x1d8] sm:$0xff]   ;;  %v1146_v53 = vld [vmem:[#allocation2 + $0x10] sm:$0xff] }
 0x15d   : > { %v6872_v47 = vcombine.low %v4055_v30, %v4058_v49  ;;  %v9222_v28 = vsel %vm8594_vm5, %v6841_v26, %v4061_v22  ;;  %v9226_v48 = vsel %vm8594_vm5, %v4063_v45, %v4064_v10  ;;  %v4078_v2 = vrot.slane %v9015_v1, 5  ;;  %v9279_v10 = vld [vmem:[%s8521_s9 + $0x1d0] sm:$0xff]  }
 0x15e   : > { %v6844_v54 = vrot.slane %v6828_v25, 9  ;;  %v4082_v13 = vrot.slane %v9020_v9, 5  ;;  %v4085_v35 = vrot.slane %v9034_v32, 5  ;;  %v4089_v20 = vrot.slane %v9038_v43, 5  ;;  %v8033_v9 = vld [vmem:[%s8519_s7 + $0x48] sm:$0xff]   ;;  %v1163_v25 = vld [vmem:[#allocation2 + $0x98] sm:$0xff] }
 0x15f   : > { %7750 = vmatpush3.bf16.msra.mxu1 %v8031_v59  ;;  %v4092_v0 = vrot.slane %v9048_v24, 5  ;;  %v8030_v59 = vld [vmem:[%s8519_s7 + $0x3c] sm:$0xff]   ;;  %v6845_v42 = vrot.slane %v6829_v7, 9  ;;  %v6873_v32 = vcombine.low %v9222_v28, %v9226_v48  ;;  %v4096_v46 = vrot.slane %v9062_v21, 5  ;;  %v6830_v21 = vld [vmem:[%s8519_s7 + $0x84] sm:$0xe] }
 0x160   : > { %7751 = vmatprep.subr.bf16.mxu1 %v8035_v41  ;;  %7716 = vmatmul.mubr.bf16.vlgmr.msra.gmra.mxu0 %v8026_v52  ;;  %v4084_v1 = vrot.slane %v4082_v13, 4  ;;  %v4069_v43 = vsel %vm8594_vm5, %v6842_v56, %v4068_v44  ;;  %v4072_v24 = vsel %vm8594_vm5, %v4070_v4, %v4071_v16  ;;  %v9249_v22 = vsel %vm8594_vm5, %v6843_v11, %v4075_v51  ;;  %v1162_v51 = vld [vmem:[#allocation2 + $0x90] sm:$0xff]  ;;  %v1144_v49 = vld [vmem:[#allocation2] sm:$0xff]  ;;  %v1147_v4 = vld [vmem:[#allocation2 + $0x18] sm:$0xff] }
 0x161   : > { %7796 = vmatpush3.bf16.msra.mxu0 %v9084_v58  ;;  %7719 = vmatprep.mubr.bf16.mxu0 %v8029_v33  ;;  %v4091_v58 = vrot.slane %v4089_v20, 4  ;;  %v9253_v15 = vsel %vm8594_vm5, %v4077_v14, %v4078_v2  ;;  %v9261_v37 = vsel %vm8594_vm5, %v6844_v54, %v4082_v13  ;;  %v9269_v27 = vsel %vm8594_vm5, %v6845_v42, %v4089_v20  ;;  %v6831_v33 = vld [vmem:[%s8519_s7 + $0x90] sm:$0xe]  ;;  %v1160_v34 = vld [vmem:[#allocation2 + $0x80] sm:$0xff]  ;;  %v8034_v28 = vld [vmem:[%s8519_s7 + $0x54] sm:$0xff]  }
 0x162   : > { %7672 = vmatmul.mubr.bf16.gmra.mxu1 %v6871_v5  ;;  %7797 = vmatprep.subr.bf16.mxu0 %v8032_v60  ;;  %v9265_v19 = vsel %vm8594_vm5, %v4084_v1, %v4085_v35  ;;  %v6846_v23 = vrot.slane %v6830_v21, 9  ;;  %v4098_v45 = vrot.slane %v4096_v46, 4  ;;  %v4099_v44 = vrot.slane %v9067_v29, 5  ;;  %v9283_v29 = vld [vmem:[%s8521_s9 + $0x218] sm:$0xff]   ;;  %v8037_v35 = vld [vmem:[%s8519_s7 + $0x60] sm:$0xff]  }
 0x163   : > { %7675 = vmatprep.mubr.bf16.mxu1 %v6872_v47  ;;  %7752 = vmatpush3.bf16.msra.mxu1 %v8035_v41  ;;  %v9273_v26 = vsel %vm8594_vm5, %v4091_v58, %v4092_v0  ;;  %v4103_v5 = vrot.slane %v9080_v55, 5  ;;  %v6874_v63 = vcombine.low %v4069_v43, %v4072_v24  ;;  %v4106_v30 = vrot.slane %v9089_v3, 5  ;;  %v6832_v47 = vld [vmem:[%s8519_s7 + $0x9c] sm:$0xe]  ;;  %v1145_v7 = vld [vmem:[#allocation2 + $0x8] sm:$0xff] }
 0x164   : > { %7753 = vmatprep.subr.bf16.mxu1 %v8039_v62  ;;  %v4110_v11 = vrot.slane %v9096_v8, 5  ;;  %v6875_v3 = vcombine.low %v9249_v22, %v9253_v15  ;;  %v6876_v14 = vcombine.low %v9261_v37, %v9265_v19  ;;  %v9299_v2 = vsel %vm8594_vm5, %v6846_v23, %v4096_v46  ;;  %v6833_v42 = vld [vmem:[%s8519_s7 + $0xa8] sm:$0xe]  ;;  %v8041_v22 = vld [vmem:[%s8519_s7 + $0x78] sm:$0xff]  }
 0x165   : > { %7798 = vmatpush3.bf16.msra.mxu0 %v8032_v60  ;;  %v6847_v60 = vrot.slane %v6831_v33, 9  ;;  %v4105_v55 = vrot.slane %v4103_v5, 4  ;;  %v9303_v54 = vsel %vm8594_vm5, %v4098_v45, %v4099_v44  ;;  %v6848_v13 = vrot.slane %v6832_v47, 9  ;;  %v1161_v58 = vld [vmem:[#allocation2 + $0x88] sm:$0xff]  ;;  %v1151_v47 = vld [vmem:[#allocation2 + $0x38] sm:$0xff]  ;;  %v1152_v19 = vld [vmem:[#allocation2 + $0x40] sm:$0xff] }
 0x166   : > { %7799 = vmatprep.subr.bf16.mxu0 %v8036_v18  ;;  %v4113_v1 = vrot.slane %v9106_v39, 5  ;;  %v6849_v43 = vrot.slane %v6833_v42, 9  ;;  %v4117_v24 = vrot.slane %v9114_v61, 5  ;;  %v4120_v21 = vrot.slane %v9123_v17, 5  ;;  %v1150_v61 = vld [vmem:[#allocation2 + $0x30] sm:$0xff]  ;;  %v8052_v42 = vld [vmem:[%s8521_s9 + $0x208] sm:$0xff]  }
 0x167   : > { %7754 = vmatpush3.bf16.msra.mxu1 %v8039_v62  ;;  %v6877_v62 = vcombine.low %v9269_v27, %v9273_v26  ;;  %v9308_v20 = vsel %vm8594_vm5, %v6847_v60, %v4103_v5  ;;  %v9312_v0 = vsel %vm8594_vm5, %v4105_v55, %v4106_v30  ;;  %v6878_v23 = vcombine.low %v9299_v2, %v9303_v54  ;;  %v1166_v17 = vld [vmem:[#allocation2 + $0xb0] sm:$0xff]  ;;  %v1148_v5 = vld [vmem:[#allocation2 + $0x20] sm:$0xff] }
 0x168   : > { %7720 = vmatmul.mubr.bf16.gmra.mxu0 %v8030_v59  ;;  %7755 = vmatprep.subr.bf16.mxu1 %v8043_v31  ;;  %v4112_v59 = vrot.slane %v4110_v11, 4  ;;  %v4124_v60 = vrot.slane %v9132_v40, 5  ;;  %v1164_v30 = vld [vmem:[#allocation2 + $0xa0] sm:$0xff] }
 0x169   : > { %7723 = vmatprep.mubr.bf16.mxu0 %v8033_v9  ;;  %7800 = vmatpush3.bf16.msra.mxu0 %v8036_v18 }
 0x16a   : > { %7676 = vmatmul.mubr.bf16.gmra.mxu1 %v6873_v32  ;;  %7801 = vmatprep.subr.bf16.mxu0 %v9256_v6 }
 0x16b   : > { %7679 = vmatprep.mubr.bf16.mxu1 %v6874_v63  ;;  %7756 = vmatpush3.bf16.msra.mxu1 %v8043_v31  ;;  %v9320_v31 = vld [vmem:[%s8521_s9 + $0x210] sm:$0xff]   ;;  %v4119_v63 = vrot.slane %v4117_v24, 4 }
 0x16c   : > { %7757 = vmatprep.subr.bf16.mxu1 %v9279_v10 }
 0x16d   : > { %v7429_v41 = vpop.f32.mrf.mxu0  ;;  %v7445_v52 = vpop.f32.mrf.mxu1  ;;  %7802 = vmatpush3.bf16.msra.mxu0 %v9256_v6 }
 0x16e   : > { %v9295_v48 = vadd.f32 %v7429_v41, %v1146_v53  ;;  %v9316_v9 = vadd.f32 %v7445_v52, %v1162_v51  ;;  %v8051_v53 = vld [vmem:[%s8521_s9 + $0x1c8] sm:$0xff]   ;;  %7803 = vmatprep.subr.bf16.mxu0 %v9283_v29  ;;  %v6834_v51 = vld [vmem:[%s8519_s7 + $0xb4] sm:$0xe] }
 0x16f   : > { %v1402_v16 = vpop.f32.mrf.mxu0  ;;  %v1466_v56 = vpop.f32.mrf.mxu1  ;;  %7758 = vmatpush3.bf16.msra.mxu1 %v9279_v10  ;;  %v1167_v10 = vld [vmem:[#allocation2 + $0xb8] sm:$0xff] }
 0x170   : > { %v9326_v39 = vadd.f32 %v1402_v16, %v1144_v49  ;;  %v9328_v41 = vadd.f32 %v1466_v56, %v1160_v34  ;;  %v9344_v49 = vsel %vm8594_vm5, %v6848_v13, %v4110_v11  ;;  %v9348_v16 = vsel %vm8594_vm5, %v4112_v59, %v4113_v1  ;;  %7724 = vmatmul.mubr.bf16.gmra.mxu0 %v8034_v28  ;;  %v8055_v1 = vld [vmem:[%s8521_s9 + $0x1c0] sm:$0xff]  }
 0x171   : > { %v7430_v8 = vpop.f32.mrf.mxu0  ;;  %v7446_v18 = vpop.f32.mrf.mxu1  ;;  %v6850_v34 = vrot.slane %v6834_v51, 9  ;;  %v4127_v56 = vrot.slane %v9136_v50, 5  ;;  %7759 = vmatprep.subr.bf16.mxu1 %v8051_v53  ;;  %v4126_v11 = vrot.slane %v4124_v60, 4  ;;  %v4134_v13 = vrot.slane %v9150_v38, 5  ;;  %7727 = vmatprep.mubr.bf16.mxu0 %v8037_v35 }
 0x172   : > { %v9330_v52 = vadd.f32 %v7430_v8, %v1147_v4  ;;  %v9335_v45 = vadd.f32 %v7446_v18, %v1163_v25  ;;  %v1149_v8 = vld [vmem:[#allocation2 + $0x28] sm:$0xff]  ;;  %v6835_v25 = vld [vmem:[%s8519_s7 + $0xc0] sm:$0xe]  ;;  %v4131_v18 = vrot.slane %v9144_v12, 5  ;;  %7804 = vmatpush3.bf16.msra.mxu0 %v9283_v29  ;;  %v9361_v28 = vsel %vm8594_vm5, %v6849_v43, %v4117_v24  ;;  %7680 = vmatmul.mubr.bf16.gmra.mxu1 %v6875_v3 }
 0x173   : > { %v1405_v32 = vpop.f32.mrf.mxu0  ;;  %v1469_v46 = vpop.f32.mrf.mxu1  ;;  %v6851_v59 = vrot.slane %v6835_v25, 9  ;;  %v8038_v12 = vld [vmem:[%s8519_s7 + $0x6c] sm:$0xff]   ;;  %7805 = vmatprep.subr.bf16.mxu0 %v9320_v31  ;;  %7683 = vmatprep.mubr.bf16.mxu1 %v6876_v14 }
 0x174   : > { %v9351_v4 = vadd.f32 %v1405_v32, %v1145_v7  ;;  %v9357_v50 = vadd.f32 %v1469_v46, %v1161_v58  ;;  %v9365_v7 = vsel %vm8594_vm5, %v4119_v63, %v4120_v21  ;;  %v9378_v32 = vsel %vm8594_vm5, %v6850_v34, %v4124_v60  ;;  %v1165_v24 = vld [vmem:[#allocation2 + $0xa8] sm:$0xff]  ;;  %7760 = vmatpush3.bf16.msra.mxu1 %v8051_v53  ;;  %v1154_v60 = vld [vmem:[#allocation2 + $0x50] sm:$0xff] }
 0x175   : > { %v7433_v44 = vpop.f32.mrf.mxu0  ;;  %v7449_v33 = vpop.f32.mrf.mxu1  ;;  %v9382_v58 = vsel %vm8594_vm5, %v4126_v11, %v4127_v56  ;;  %v4133_v46 = vrot.slane %v4131_v18, 4  ;;  %v1170_v34 = vld [vmem:[#allocation2 + $0xd0] sm:$0xff]  ;;  %v9400_v14 = vsel %vm8594_vm5, %v6851_v59, %v4131_v18  ;;  %7761 = vmatprep.subr.bf16.mxu1 %v8055_v1  ;;  %v1155_v59 = vld [vmem:[#allocation2 + $0x58] sm:$0xff] }
 0x176   : > { %v9388_v15 = vadd.f32 %v7433_v44, %v1150_v61  ;;  %v9390_v3 = vadd.f32 %v7449_v33, %v1166_v17  ;;  %7806 = vmatpush3.bf16.msra.mxu0 %v9320_v31  ;;  %v1168_v33 = vld [vmem:[#allocation2 + $0xc0] sm:$0xff]  ;;  %v6964_v56 = vld [vmem:[%s8519_s7 + $0x18] sm:$0xf] }
 0x177   : > { %v1418_v55 = vpop.f32.mrf.mxu0  ;;  %v1482_v40 = vpop.f32.mrf.mxu1  ;;  %v9404_v53 = vsel %vm8594_vm5, %v4133_v46, %v4134_v13  ;;  %7807 = vmatprep.subr.bf16.mxu0 %v8052_v42  ;;  %v4897_v25 = vshll.u32 %v6964_v56, 16 }
 0x178   : > { %v9392_v43 = vadd.f32 %v1418_v55, %v1148_v5  ;;  %v9394_v21 = vadd.f32 %v1482_v40, %v1164_v30  ;;  %v8056_v30 = vld [vmem:[%s8521_s9 + $0x200] sm:$0xff]   ;;  %7762 = vmatpush3.bf16.msra.mxu1 %v8055_v1  ;;  %7728 = vmatmul.mubr.bf16.gmra.mxu0 %v8038_v12 }
 0x179   : > { %v7434_v38 = vpop.f32.mrf.mxu0  ;;  %v7450_v29 = vpop.f32.mrf.mxu1  ;;  %v4899_v5 = vrot.slane %v4897_v25, 5  ;;  %7731 = vmatprep.mubr.bf16.mxu0 %v8041_v22  ;;  %v1169_v25 = vld [vmem:[#allocation2 + $0xc8] sm:$0xff] }
 0x17a   : > { %v9407_v61 = vadd.f32 %v7434_v38, %v1151_v47  ;;  %v9409_v44 = vadd.f32 %v7450_v29, %v1167_v10  ;;  %v6965_v47 = vld [vmem:[%s8519_s7 + $0x1c] sm:$0xf]  ;;  %v9423_v10 = vld [vmem:[%s8519_s7 + $0x20] sm:$0x1]  ;;  %7808 = vmatpush3.bf16.msra.mxu0 %v8052_v42  ;;  %7684 = vmatmul.mubr.bf16.gmra.mxu1 %v6877_v62  ;;  %v9448_v62 = vld [vmem:[%s8519_s7 + $0x28] sm:$0xf] }
 0x17b   : > { %v1421_v63 = vpop.f32.mrf.mxu0  ;;  %v1485_v51 = vpop.f32.mrf.mxu1  ;;  %v1171_v38 = vld [vmem:[#allocation2 + $0xd8] sm:$0xff]  ;;  %v4903_v29 = vshll.u32 %v6965_v47, 16  ;;  %v4907_v46 = vshrl.u32 %v6965_v47, 16  ;;  %v4913_v37 = vshll.u32 %v9423_v10, 16  ;;  %7809 = vmatprep.subr.bf16.mxu0 %v8056_v30  ;;  %7687 = vmatprep.mubr.bf16.mxu1 %v6878_v23 }
 0x17c   : > { %v9411_v17 = vadd.f32 %v1421_v63, %v1149_v8  ;;  %v9417_v55 = vadd.f32 %v1485_v51, %v1165_v24  ;;  %v4894_v8 = vshrl.u32 %v6964_v56, 16  ;;  %v7052_v24 = vld [vmem:[%s8519_s7 + $0x18] sm:$0xe]  ;;  %v6967_v56 = vld [vmem:[%s8519_s7 + $0x24] sm:$0xf] }
 0x17d   : > { %v7437_v40 = vpop.f32.mrf.mxu0  ;;  %v7453_v11 = vpop.f32.mrf.mxu1  ;;  %v7068_v35 = vrot.slane %v7052_v24, 9  ;;  %v4909_v1 = vrot.slane %v4907_v46, 4  ;;  %v4915_v22 = vrot.slane %v4913_v37, 5  ;;  %v8042_v46 = vld [vmem:[%s8519_s7 + $0x84] sm:$0xff]   ;;  %v1158_v37 = vld [vmem:[#allocation2 + $0x70] sm:$0xff]  ;;  %v4921_v23 = vshll.u32 %v6967_v56, 16 }
 0x17e   : > { %v9425_v18 = vadd.f32 %v7437_v40, %v1154_v60  ;;  %v9427_v13 = vadd.f32 %v7453_v11, %v1170_v34  ;;  %v4896_v31 = vrot.slane %v4894_v8, 4  ;;  %v4905_v40 = vrot.slane %v4903_v29, 5  ;;  %v1153_v8 = vld [vmem:[#allocation2 + $0x48] sm:$0xff]  ;;  %7810 = vmatpush3.bf16.msra.mxu0 %v8056_v30 }
 0x17f   : > { %v1434_v63 = vpop.f32.mrf.mxu0  ;;  %v1498_v51 = vpop.f32.mrf.mxu1  ;;  %v4918_v29 = vshrl.u32 %v6967_v56, 16  ;;  %v6969_v56 = vld [vmem:[%s8519_s7 + $0x2c] sm:$0x1] }
 0x180   : > { %v9432_v60 = vadd.f32 %v1434_v63, %v1152_v19  ;;  %v9434_v34 = vadd.f32 %v1498_v51, %v1168_v33  ;;  %v4900_v24 = vor.u32 %v4899_v5, %v4896_v31  ;;  %v5665_v19 = vrot.slane %v6965_v47, 5  ;;  %v1174_v31 = vld [vmem:[#allocation2 + $0xf0] sm:$0xff]  ;;  %v1156_v51 = vld [vmem:[#allocation2 + $0x60] sm:$0xff]  ;;  %7732 = vmatmul.mubr.bf16.gmra.mxu0 %v8042_v46 }
 0x181   : > { %v7438_v12 = vpop.f32.mrf.mxu0  ;;  %v7454_v11 = vpop.f32.mrf.mxu1  ;;  %v5668_v33 = vrot.slane %v9423_v10, 5  ;;  %v4910_v26 = vor.u32 %v4909_v1, %v4905_v40  ;;  %v8045_v10 = vld [vmem:[%s8519_s7 + $0x90] sm:$0xff]   ;;  %v1172_v1 = vld [vmem:[#allocation2 + $0xe0] sm:$0xff]  ;;  %v10428_v46 = vcombine.low %v9308_v20, %v9312_v0 }
 0x182   : > { %10423 = vst [vmem:[#allocation5_spill] sm:$0xff] %v9434_v34  ;;  %v9443_v42 = vadd.f32 %v7438_v12, %v1155_v59  ;;  %v9445_v27 = vadd.f32 %v7454_v11, %v1171_v38  ;;  %v4901_v47 = vrot.slane %v4900_v24, 4  ;;  %v9453_v2 = vsel %vm8594_vm5, %v7068_v35, %v5665_v19  ;;  %7735 = vmatprep.mubr.bf16.mxu0 %v8045_v10 }
 0x183   : > { %v1437_v63 = vpop.f32.mrf.mxu0  ;;  %v1501_v5 = vpop.f32.mrf.mxu1  ;;  %v5667_v54 = vrot.slane %v5665_v19, 4  ;;  %v4911_v12 = vrot.slane %v4910_v26, 4  ;;  %v4920_v11 = vrot.slane %v4918_v29, 4  ;;  %v4923_v19 = vrot.slane %v4921_v23, 5  ;;  %7688 = vmatmul.mubr.bf16.gmra.mxu1 %v10428_v46  ;;  %v8046_v46 = vld [vmem:[%s8519_s7 + $0x9c] sm:$0xff]  }
 0x184   : > { %10424 = vst [vmem:[#allocation6_spill] sm:$0xff] %v9445_v27  ;;  %v9456_v59 = vadd.f32 %v1437_v63, %v1153_v8  ;;  %v9458_v38 = vadd.f32 %v1501_v5, %v1169_v25  ;;  %v4906_v27 = vsel %vm8611_vm6, %v4901_v47, %v4905_v40  ;;  %v4927_v8 = vshll.u32 %v9448_v62, 16  ;;  %v7053_v25 = vld [vmem:[%s8519_s7 + $0x24] sm:$0xe] }
 0x185   : > { %v7441_v6 = vpop.f32.mrf.mxu0  ;;  %v7457_v24 = vpop.f32.mrf.mxu1  ;;  %v9464_v35 = vsel %vm8594_vm5, %v5667_v54, %v5668_v33  ;;  %v4916_v26 = vsel %vm8611_vm6, %v4911_v12, %v4915_v22  ;;  %v1159_v5 = vld [vmem:[#allocation2 + $0x78] sm:$0xff]  ;;  %v4924_v23 = vor.u32 %v4923_v19, %v4920_v11  ;;  %v4937_v22 = vshll.u32 %v6969_v56, 16  ;;  %v1157_v11 = vld [vmem:[#allocation2 + $0x68] sm:$0xff] }
 0x186   : > { %10425 = vst [vmem:[#allocation7_spill] sm:$0xff] %v9458_v38  ;;  %v9469_v63 = vadd.f32 %v7441_v6, %v1158_v37  ;;  %v9471_v30 = vadd.f32 %v7457_v24, %v1174_v31  ;;  %v1175_v47 = vld [vmem:[#allocation2 + $0xf8] sm:$0xff]  ;;  %v9477_v54 = vcombine.low %v4906_v27, %v4916_v26  ;;  %v4929_v38 = vrot.slane %v4927_v8, 5  ;;  %v6970_v37 = vld [vmem:[%s8519_s7 + $0x30] sm:$0xf] }
 0x187   : > { %v1450_v29 = vpop.f32.mrf.mxu0  ;;  %v1514_v33 = vpop.f32.mrf.mxu1  ;;  %v4931_v6 = vshrl.u32 %v9448_v62, 16  ;;  %v7069_v12 = vrot.slane %v7053_v25, 9  ;;  %v1173_v19 = vld [vmem:[#allocation2 + $0xe8] sm:$0xff]  ;;  %v4925_v8 = vrot.slane %v4924_v23, 4  ;;  %v5672_v10 = vrot.slane %v9448_v62, 5 }
 0x188   : > { %10426 = vst [vmem:[#allocation8_spill] sm:$0xff] %v9471_v30  ;;  %v9481_v31 = vadd.f32 %v1450_v29, %v1156_v51  ;;  %v9483_v24 = vadd.f32 %v1514_v33, %v1172_v1  ;;  %v5675_v51 = vrot.slane %v6969_v56, 5  ;;  %v10429_v1 = vcombine.low %v9344_v49, %v9348_v16  ;;  %v6971_v29 = vld [vmem:[%s8519_s7 + $0x34] sm:$0xf]  ;;  %v6972_v16 = vld [vmem:[%s8519_s7 + $0x38] sm:$0x1]  ;;  %7736 = vmatmul.mubr.bf16.gmra.mxu0 %v8046_v46 }
 0x189   : > { %v7442_v27 = vpop.f32.mrf.mxu0  ;;  %v7458_v26 = vpop.f32.mrf.mxu1  ;;  %v4933_v40 = vrot.slane %v4931_v6, 4  ;;  %v4939_v0 = vrot.slane %v4937_v22, 5  ;;  %v4942_v33 = vshrl.u32 %v6970_v37, 16  ;;  %v4930_v62 = vsel %vm8611_vm6, %v4925_v8, %v4929_v38 }
 0x18a   : > { %10427 = vst [vmem:[#allocation9_spill] sm:$0xff] %v9483_v24  ;;  %7691 = vmatprep.mubr.bf16.mxu1 %v10429_v1  ;;  %v9492_v25 = vadd.f32 %v7442_v27, %v1159_v5  ;;  %v9494_v20 = vadd.f32 %v7458_v26, %v1175_v47  ;;  %v9502_v56 = vsel %vm8594_vm5, %v7069_v12, %v5672_v10  ;;  %v5674_v49 = vrot.slane %v5672_v10, 4  ;;  %v8049_v5 = vld [vmem:[%s8519_s7 + $0xa8] sm:$0xff]   ;;  %v7054_v1 = vld [vmem:[%s8519_s7 + $0x30] sm:$0xe] }
 0x18b   : > { %v1453_v23 = vpop.f32.mrf.mxu0  ;;  %v1517_v6 = vpop.f32.mrf.mxu1  ;;  %v4934_v24 = vor.u32 %v4933_v40, %v4929_v38  ;;  %v4944_v27 = vrot.slane %v4942_v33, 4  ;;  %v4945_v26 = vshll.u32 %v6970_v37, 16  ;;  %v4951_v40 = vshll.u32 %v6971_v29, 16  ;;  %7739 = vmatprep.mubr.bf16.mxu0 %v8049_v5 }
 0x18c   : > { %10430 = vst [vmem:[#allocation10_spill] sm:$0xff] %v9494_v20  ;;  %v9506_v47 = vadd.f32 %v1453_v23, %v1157_v11  ;;  %v9508_v22 = vadd.f32 %v1517_v6, %v1173_v19  ;;  %v9513_v38 = vsel %vm8594_vm5, %v5674_v49, %v5675_v51  ;;  %v4955_v12 = vshrl.u32 %v6971_v29, 16  ;;  %v6973_v51 = vld [vmem:[%s8519_s7 + $0x3c] sm:$0xf] }
 0x18d   : > { %v7477_v20 = vpop.f32.mrf.mxu1  ;;  %v7525_v30 = vpop.f32.mrf.mxu0  ;;  %v4935_v34 = vrot.slane %v4934_v24, 4  ;;  %v4947_v19 = vrot.slane %v4945_v26, 5  ;;  %v4961_v10 = vshll.u32 %v6972_v16, 16  ;;  %v4953_v24 = vrot.slane %v4951_v40, 5 }
 0x18e   : > { %10431 = vst [vmem:[#allocation11_spill] sm:$0xff] %v9508_v22  ;;  %v2288_v8 = vadd.f32 %v7477_v20, %v9295_v48  ;;  %v4957_v6 = vrot.slane %v4955_v12, 4  ;;  %v7070_v22 = vrot.slane %v7054_v1, 9  ;;  %v10432_v46 = vcombine.low %v9361_v28, %v9365_v7  ;;  %v8050_v7 = vld [vmem:[%s8519_s7 + $0xb4] sm:$0xff]  }
 0x18f   : > { %v4940_v37 = vsel %vm8611_vm6, %v4935_v34, %v4939_v0  ;;  %v2159_v33 = vpop.f32.mrf.mxu1  ;;  %v2660_v23 = vpop.f32.mrf.mxu0  ;;  %v4948_v26 = vor.u32 %v4947_v19, %v4944_v27  ;;  %v4963_v12 = vrot.slane %v4961_v10, 5  ;;  %v5679_v1 = vrot.slane %v6971_v29, 5 }
 0x190   : > { %v9521_v49 = vadd.f32 %v7525_v30, %v2288_v8  ;;  %v9523_v48 = vcombine.low %v4930_v62, %v4940_v37  ;;  %v2286_v20 = vadd.f32 %v2159_v33, %v9326_v39  ;;  %7692 = vmatmul.mubr.bf16.gmra.mxu1 %v10432_v46  ;;  %v4958_v40 = vor.u32 %v4957_v6, %v4953_v24  ;;  %v6974_v8 = vld [vmem:[%s8519_s7 + $0x40] sm:$0xf]  ;;  %v6975_v6 = vld [vmem:[%s8519_s7 + $0x44] sm:$0x1] }
 0x191   : > { %v7478_v34 = vpop.f32.mrf.mxu1  ;;  %v7526_v0 = vpop.f32.mrf.mxu0  ;;  %v5682_v5 = vrot.slane %v6972_v16, 5  ;;  %v10433_v30 = vcombine.low %v9378_v32, %v9382_v58  ;;  %v4949_v27 = vrot.slane %v4948_v26, 4  ;;  %v4966_v28 = vshrl.u32 %v6973_v51, 16  ;;  %v8053_v58 = vld [vmem:[%s8519_s7 + $0xc0] sm:$0xff]   ;;  %7740 = vmatmul.mubr.bf16.gmra.mxu0 %v8050_v7 }
 0x192   : > { %v9532_v62 = vadd.f32 %v2660_v23, %v2286_v20  ;;  %v2289_v39 = vadd.f32 %v7478_v34, %v9330_v52  ;;  %v4959_v33 = vrot.slane %v4958_v40, 4  ;;  %v9539_v29 = vsel %vm8594_vm5, %v7070_v22, %v5679_v1  ;;  %v7055_v40 = vld [vmem:[%s8519_s7 + $0x3c] sm:$0xe]  ;;  %7743 = vmatprep.mubr.bf16.mxu0 %v8053_v58 }
 0x193   : > { %7695 = vmatprep.mubr.bf16.mxu1 %v10433_v30  ;;  %v2162_v19 = vpop.f32.mrf.mxu1  ;;  %v2663_v37 = vpop.f32.mrf.mxu0  ;;  %v5681_v16 = vrot.slane %v5679_v1, 4  ;;  %v4969_v32 = vshll.u32 %v6973_v51, 16  ;;  %v4954_v52 = vsel %vm8611_vm6, %v4949_v27, %v4953_v24  ;;  %v4968_v20 = vrot.slane %v4966_v28, 4 }
 0x194   : > { %v9542_v10 = vadd.f32 %v7526_v0, %v2289_v39  ;;  %v2287_v23 = vadd.f32 %v2162_v19, %v9351_v4  ;;  %v4964_v26 = vsel %vm8611_vm6, %v4959_v33, %v4963_v12  ;;  %v4975_v0 = vshll.u32 %v6974_v8, 16  ;;  %v6976_v33 = vld [vmem:[%s8519_s7 + $0x48] sm:$0xf] }
 0x195   : > { %v9552_v46 = vsel %vm8594_vm5, %v5681_v16, %v5682_v5  ;;  %v7481_v22 = vpop.f32.mrf.mxu1  ;;  %v7529_v51 = vpop.f32.mrf.mxu0  ;;  %v4971_v34 = vrot.slane %v4969_v32, 5  ;;  %v9557_v4 = vcombine.low %v4954_v52, %v4964_v26  ;;  %v4979_v5 = vshrl.u32 %v6974_v8, 16 }
 0x196   : > { %v9555_v1 = vadd.f32 %v2663_v37, %v2287_v23  ;;  %v2292_v30 = vadd.f32 %v7481_v22, %v9388_v15  ;;  %v4977_v39 = vrot.slane %v4975_v0, 5  ;;  %v4985_v27 = vshll.u32 %v6975_v6, 16 }
 0x197   : > { %v4972_v12 = vor.u32 %v4971_v34, %v4968_v20  ;;  %v2175_v28 = vpop.f32.mrf.mxu1  ;;  %v2676_v19 = vpop.f32.mrf.mxu0  ;;  %v7071_v37 = vrot.slane %v7055_v40, 9  ;;  %v5686_v32 = vrot.slane %v6974_v8, 5  ;;  %v5689_v23 = vrot.slane %v6975_v6, 5  ;;  %v8054_v34 = vld [vmem:[%s8519_s7 + $0xcc] sm:$0xff]  }
 0x198   : > { %v9563_v16 = vadd.f32 %v7529_v51, %v2292_v30  ;;  %v10434_v52 = vcombine.low %v9400_v14, %v9404_v53  ;;  %v4981_v7 = vrot.slane %v4979_v5, 4  ;;  %v4987_v20 = vrot.slane %v4985_v27, 5  ;;  %v6977_v14 = vld [vmem:[%s8519_s7 + $0x4c] sm:$0xf]  ;;  %v6978_v5 = vld [vmem:[%s8519_s7 + $0x50] sm:$0x1] }
 0x199   : > { %v4973_v15 = vrot.slane %v4972_v12, 4  ;;  %v2290_v26 = vadd.f32 %v2175_v28, %v9392_v43  ;;  %v7482_v22 = vpop.f32.mrf.mxu1  ;;  %v7530_v58 = vpop.f32.mrf.mxu0  ;;  %v9572_v51 = vsel %vm8594_vm5, %v7071_v37, %v5686_v32  ;;  %v5688_v8 = vrot.slane %v5686_v32, 4  ;;  %v7056_v27 = vld [vmem:[%s8519_s7 + $0x48] sm:$0xe]  ;;  %7744 = vmatmul.mubr.bf16.gmra.mxu0 %v8054_v34 }
 0x19a   : > { %7696 = vmatmul.mubr.bf16.gmra.mxu1 %v10434_v52  ;;  %v2293_v6 = vadd.f32 %v7482_v22, %v9407_v61  ;;  %v4990_v53 = vshrl.u32 %v6976_v33, 16  ;;  %v4982_v40 = vor.u32 %v4981_v7, %v4977_v39  ;;  %v5003_v22 = vshrl.u32 %v6977_v14, 16 }
 0x19b   : > { %7763 = vmatprep.mubr.bf16.mxu1 %v9477_v54  ;;  %v4978_v0 = vsel %vm8611_vm6, %v4973_v15, %v4977_v39  ;;  %v9579_v43 = vadd.f32 %v2676_v19, %v2290_v26  ;;  %v2178_v30 = vpop.f32.mrf.mxu1  ;;  %v2679_v12 = vpop.f32.mrf.mxu0  ;;  %v4993_v54 = vshll.u32 %v6976_v33, 16  ;;  %v9585_v28 = vsel %vm8594_vm5, %v5688_v8, %v5689_v23 }
 0x19c   : > { %v9587_v37 = vadd.f32 %v7530_v58, %v2293_v6  ;;  %v2291_v61 = vadd.f32 %v2178_v30, %v9411_v17  ;;  %v4992_v32 = vrot.slane %v4990_v53, 4  ;;  %v4983_v52 = vrot.slane %v4982_v40, 4  ;;  %v6979_v40 = vld [vmem:[%s8519_s7 + $0x54] sm:$0xf]  ;;  %v6980_v30 = vld [vmem:[%s8519_s7 + $0x58] sm:$0xf] }
 0x19d   : > { %v4995_v19 = vrot.slane %v4993_v54, 5  ;;  %v4999_v15 = vshll.u32 %v6977_v14, 16  ;;  %v7485_v7 = vpop.f32.mrf.mxu1  ;;  %v7533_v33 = vpop.f32.mrf.mxu0  ;;  %v5009_v23 = vshll.u32 %v6978_v5, 16  ;;  %v7072_v8 = vrot.slane %v7056_v27, 9 }
 0x19e   : > { %v9592_v26 = vadd.f32 %v2679_v12, %v2291_v61  ;;  %v4988_v17 = vsel %vm8611_vm6, %v4983_v52, %v4987_v20  ;;  %v5693_v53 = vrot.slane %v6977_v14, 5  ;;  %v10436_v24 = vcombine.low %v9453_v2, %v9464_v35 }
 0x19f   : > { %v4996_v58 = vor.u32 %v4995_v19, %v4992_v32  ;;  %v5001_v6 = vrot.slane %v4999_v15, 5  ;;  %v2191_v39 = vpop.f32.mrf.mxu1  ;;  %v2692_v54 = vpop.f32.mrf.mxu0  ;;  %v7031_v12 = vcombine.low %v4978_v0, %v4988_v17  ;;  %v5005_v61 = vrot.slane %v5003_v22, 4  ;;  %v6981_v19 = vld [vmem:[%s8519_s7 + $0x5c] sm:$0x1] }
 0x1a0   : > { %10435 = vst [vmem:[#allocation12_spill] sm:$0xff] %v9592_v26  ;;  %7811 = vmatprep.mubr.bf16.mxu0 %v10436_v24  ;;  %v5011_v27 = vrot.slane %v5009_v23, 5  ;;  %v5696_v34 = vrot.slane %v6978_v5, 5  ;;  %v9604_v32 = vsel %vm8594_vm5, %v7072_v8, %v5693_v53  ;;  %v5695_v14 = vrot.slane %v5693_v53, 4  ;;  %v7057_v5 = vld [vmem:[%s8519_s7 + $0x54] sm:$0xe] }
 0x1a1   : > { %v4997_v20 = vrot.slane %v4996_v58, 4  ;;  %v2296_v52 = vadd.f32 %v7485_v7, %v9425_v18  ;;  %v7486_v15 = vpop.f32.mrf.mxu1  ;;  %v7534_v11 = vpop.f32.mrf.mxu0  ;;  %v5006_v2 = vor.u32 %v5005_v61, %v5001_v6  ;;  %v5014_v35 = vshrl.u32 %v6979_v40, 16 }
 0x1a2   : > { %7764 = vmatmul.mubr.bf16.vlgmr.msra.gmra.mxu1 %v9523_v48  ;;  %v5017_v24 = vshll.u32 %v6979_v40, 16  ;;  %v5023_v0 = vshll.u32 %v6980_v30, 16  ;;  %v9614_v22 = vsel %vm8594_vm5, %v5695_v14, %v5696_v34  ;;  %v5027_v18 = vshrl.u32 %v6980_v30, 16 }
 0x1a3   : > { %7767 = vmatprep.mubr.bf16.mxu1 %v9557_v4  ;;  %v5002_v48 = vsel %vm8611_vm6, %v4997_v20, %v5001_v6  ;;  %v9616_v23 = vadd.f32 %v7533_v33, %v2296_v52  ;;  %v5007_v7 = vrot.slane %v5006_v2, 4  ;;  %v5016_v8 = vrot.slane %v5014_v35, 4  ;;  %v2194_v58 = vpop.f32.mrf.mxu1  ;;  %v2695_v53 = vpop.f32.mrf.mxu0  ;;  %v6982_v52 = vld [vmem:[%s8519_s7 + $0x60] sm:$0xf] }
 0x1a4   : > { %v5019_v17 = vrot.slane %v5017_v24, 5  ;;  %v5025_v40 = vrot.slane %v5023_v0, 5  ;;  %v5029_v61 = vrot.slane %v5027_v18, 4  ;;  %v5033_v26 = vshll.u32 %v6981_v19, 16 }
 0x1a5   : > { %v7073_v6 = vrot.slane %v7057_v5, 9  ;;  %v5012_v34 = vsel %vm8611_vm6, %v5007_v7, %v5011_v27  ;;  %v5700_v33 = vrot.slane %v6980_v30, 5  ;;  %v5703_v14 = vrot.slane %v6981_v19, 5  ;;  %v7537_v19 = vpop.f32.mrf.mxu0 }
 0x1a6   : > { %v5020_v20 = vor.u32 %v5019_v17, %v5016_v8  ;;  %v10437_v2 = vcombine.low %v9502_v56, %v9513_v38  ;;  %v7032_v35 = vcombine.low %v5002_v48, %v5012_v34  ;;  %v5030_v24 = vor.u32 %v5029_v61, %v5025_v40  ;;  %v7489_v38 = vpop.f32.mrf.mxu1  ;;  %v7058_v8 = vld [vmem:[%s8519_s7 + $0x60] sm:$0xe] }
 0x1a7   : > { %v5035_v4 = vrot.slane %v5033_v26, 5  ;;  %v2294_v0 = vadd.f32 %v2191_v39, %v9432_v60  ;;  %v10438_v5 = vcombine.low %v9539_v29, %v9552_v46  ;;  %v9632_v30 = vsel %vm8594_vm5, %v7073_v6, %v5700_v33  ;;  %v6983_v29 = vld [vmem:[%s8519_s7 + $0x64] sm:$0xf]  ;;  %v9649_v17 = vpop.f32.mrf.mxu0 }
 0x1a8   : > { %7812 = vmatmul.mubr.bf16.vlgmr.msra.gmra.mxu0 %v10437_v2  ;;  %v5021_v18 = vrot.slane %v5020_v20, 4  ;;  %v5702_v27 = vrot.slane %v5700_v33, 4  ;;  %v2297_v56 = vadd.f32 %v7486_v15, %v9443_v42  ;;  %v5031_v26 = vrot.slane %v5030_v24, 4  ;;  %v6984_v15 = vld [vmem:[%s8519_s7 + $0x68] sm:$0x1] }
 0x1a9   : > { %7815 = vmatprep.mubr.bf16.mxu0 %v10438_v5  ;;  %v9635_v48 = vadd.f32 %v2692_v54, %v2294_v0  ;;  %v2295_v60 = vadd.f32 %v2194_v58, %v9456_v59  ;;  %v5038_v46 = vshrl.u32 %v6982_v52, 16  ;;  %v2207_v54 = vpop.f32.mrf.mxu1  ;;  %v5051_v20 = vshrl.u32 %v6983_v29, 16  ;;  %v6985_v33 = vld [vmem:[%s8519_s7 + $0x6c] sm:$0xf] }
 0x1aa   : > { %7768 = vmatmul.mubr.bf16.gmra.mxu1 %v7031_v12  ;;  %v5026_v39 = vsel %vm8611_vm6, %v5021_v18, %v5025_v40  ;;  %v9643_v7 = vsel %vm8594_vm5, %v5702_v27, %v5703_v14  ;;  %v9645_v42 = vadd.f32 %v7534_v11, %v2297_v56  ;;  %v5041_v12 = vshll.u32 %v6982_v52, 16  ;;  %v9658_v52 = vpop.f32.mrf.mxu0 }
 0x1ab   : > { %7771 = vmatprep.mubr.bf16.mxu1 %v7032_v35  ;;  %v5036_v59 = vsel %vm8611_vm6, %v5031_v26, %v5035_v4  ;;  %v7105_v58 = vcombine.low %v9632_v30, %v9643_v7  ;;  %v9655_v40 = vadd.f32 %v2695_v53, %v2295_v60  ;;  %v5040_v61 = vrot.slane %v5038_v46, 4  ;;  %v7490_v14 = vpop.f32.mrf.mxu1  ;;  %v6986_v30 = vld [vmem:[%s8519_s7 + $0x70] sm:$0xf] }
 0x1ac   : > { %v7033_v6 = vcombine.low %v5026_v39, %v5036_v59  ;;  %v5043_v34 = vrot.slane %v5041_v12, 5  ;;  %v5047_v11 = vshll.u32 %v6983_v29, 16  ;;  %v5057_v2 = vshll.u32 %v6984_v15, 16  ;;  %v7059_v12 = vld [vmem:[%s8519_s7 + $0x6c] sm:$0xe] }
 0x1ad   : > { %v7074_v35 = vrot.slane %v7058_v8, 9  ;;  %v5707_v24 = vrot.slane %v6983_v29, 5  ;;  %v5710_v4 = vrot.slane %v6984_v15, 5  ;;  %v5053_v53 = vrot.slane %v5051_v20, 4  ;;  %v2210_v8 = vpop.f32.mrf.mxu1 }
 0x1ae   : > { %v5044_v0 = vor.u32 %v5043_v34, %v5040_v61  ;;  %v5049_v5 = vrot.slane %v5047_v11, 5  ;;  %v2300_v18 = vadd.f32 %v7489_v38, %v9469_v63  ;;  %v10439_v27 = vcombine.low %v9572_v51, %v9585_v28  ;;  %v6987_v63 = vld [vmem:[%s8519_s7 + $0x74] sm:$0x1]  ;;  %v2711_v51 = vpop.f32.mrf.mxu0 }
 0x1af   : > { %v5059_v56 = vrot.slane %v5057_v2, 5  ;;  %v5708_v26 = vsel %vm8594_vm5, %v7074_v35, %v5707_v24  ;;  %v5709_v60 = vrot.slane %v5707_v24, 4  ;;  %v5062_v46 = vshrl.u32 %v6985_v33, 16 }
 0x1b0   : > { %7816 = vmatmul.mubr.bf16.gmra.mxu0 %v10439_v27  ;;  %v10440_v29 = vcombine.low %v9604_v32, %v9614_v22  ;;  %v5045_v39 = vrot.slane %v5044_v0, 4  ;;  %v5054_v7 = vor.u32 %v5053_v53, %v5049_v5  ;;  %v9670_v15 = vadd.f32 %v7537_v19, %v2300_v18  ;;  %v6988_v53 = vld [vmem:[%s8519_s7 + $0x78] sm:$0xf]  ;;  %v7493_v18 = vpop.f32.mrf.mxu1  ;;  %v7541_v27 = vpop.f32.mrf.mxu0 }
 0x1b1   : > { %v5065_v38 = vshll.u32 %v6985_v33, 16  ;;  %v5711_v28 = vsel %vm8594_vm5, %v5709_v60, %v5710_v4  ;;  %v5064_v59 = vrot.slane %v5062_v46, 4  ;;  %v5071_v61 = vshll.u32 %v6986_v30, 16 }
 0x1b2   : > { %7819 = vmatprep.mubr.bf16.mxu0 %v10440_v29  ;;  %7772 = vmatmul.mubr.bf16.gmra.mxu1 %v7033_v6  ;;  %v5075_v34 = vshrl.u32 %v6986_v30, 16  ;;  %v5050_v32 = vsel %vm8611_vm6, %v5045_v39, %v5049_v5  ;;  %v5055_v22 = vrot.slane %v5054_v7, 4  ;;  %v7106_v11 = vcombine.low %v5708_v26, %v5711_v28 }
 0x1b3   : > { %v5067_v19 = vrot.slane %v5065_v38, 5  ;;  %v5073_v20 = vrot.slane %v5071_v61, 5  ;;  %v5081_v33 = vshll.u32 %v6987_v63, 16  ;;  %v7075_v35 = vrot.slane %v7059_v12, 9 }
 0x1b4   : > { %v5077_v2 = vrot.slane %v5075_v34, 4  ;;  %v5060_v6 = vsel %vm8611_vm6, %v5055_v22, %v5059_v56  ;;  %v5714_v0 = vrot.slane %v6986_v30, 5  ;;  %v5717_v4 = vrot.slane %v6987_v63, 5  ;;  %v9685_v30 = vpop.f32.mrf.mxu1  ;;  %v9687_v63 = vpop.f32.mrf.mxu0  ;;  %v7060_v34 = vld [vmem:[%s8519_s7 + $0x78] sm:$0xe] }
 0x1b5   : > { %v5068_v24 = vor.u32 %v5067_v19, %v5064_v59  ;;  %v7034_v60 = vcombine.low %v5050_v32, %v5060_v6  ;;  %v5083_v5 = vrot.slane %v5081_v33, 5  ;;  %v2298_v26 = vadd.f32 %v2207_v54, %v9481_v31  ;;  %v6989_v54 = vld [vmem:[%s8519_s7 + $0x7c] sm:$0xf]  ;;  %v6991_v33 = vld [vmem:[%s8519_s7 + $0x84] sm:$0xf] }
 0x1b6   : > { %v5078_v46 = vor.u32 %v5077_v2, %v5073_v20  ;;  %v5715_v39 = vsel %vm8594_vm5, %v7075_v35, %v5714_v0  ;;  %v5716_v7 = vrot.slane %v5714_v0, 4  ;;  %v2301_v56 = vadd.f32 %v7490_v14, %v9492_v25  ;;  %v9705_v32 = vpop.f32.mrf.mxu0 }
 0x1b7   : > { %v5069_v29 = vrot.slane %v5068_v24, 4  ;;  %7775 = vmatprep.mubr.bf16.mxu1 %v7034_v60  ;;  %v9690_v12 = vadd.f32 %v9649_v17, %v2298_v26  ;;  %v2299_v31 = vadd.f32 %v2210_v8, %v9506_v47  ;;  %v5086_v28 = vshrl.u32 %v6988_v53, 16  ;;  %v9703_v17 = vpop.f32.mrf.mxu1 }
 0x1b8   : > { %7820 = vmatmul.mubr.bf16.gmra.mxu0 %v7105_v58  ;;  %v5079_v38 = vrot.slane %v5078_v46, 4  ;;  %v5718_v25 = vsel %vm8594_vm5, %v5716_v7, %v5717_v4  ;;  %v9699_v14 = vadd.f32 %v9658_v52, %v2301_v56  ;;  %v6990_v58 = vld [vmem:[%s8519_s7 + $0x80] sm:$0x1]  ;;  %v5089_v61 = vshll.u32 %v6988_v53, 16  ;;  %v6992_v46 = vld [vmem:[%s8519_s7 + $0x88] sm:$0xf]  ;;  %v2727_v26 = vpop.f32.mrf.mxu0 }
 0x1b9   : > { %7823 = vmatprep.mubr.bf16.mxu0 %v7106_v11  ;;  %v5074_v59 = vsel %vm8611_vm6, %v5069_v29, %v5073_v20  ;;  %v7107_v8 = vcombine.low %v5715_v39, %v5718_v25  ;;  %v9709_v22 = vadd.f32 %v2711_v51, %v2299_v31  ;;  %v5088_v11 = vrot.slane %v5086_v28, 4  ;;  %v6993_v28 = vld [vmem:[%s8519_s7 + $0x8c] sm:$0x1]  ;;  %v7061_v25 = vld [vmem:[%s8519_s7 + $0x84] sm:$0xe] }
 0x1ba   : > { %v5084_v47 = vsel %vm8611_vm6, %v5079_v38, %v5083_v5  ;;  %v5091_v20 = vrot.slane %v5089_v61, 5  ;;  %v5095_v2 = vshll.u32 %v6989_v54, 16  ;;  %v5099_v52 = vshrl.u32 %v6989_v54, 16  ;;  %v2226_v5 = vpop.f32.mrf.mxu1 }
 0x1bb   : > { %v7035_v19 = vcombine.low %v5074_v59, %v5084_v47  ;;  %v5105_v35 = vshll.u32 %v6990_v58, 16  ;;  %v7076_v6 = vrot.slane %v7060_v34, 9  ;;  %v5721_v24 = vrot.slane %v6989_v54, 5 }
 0x1bc   : > { %v5724_v0 = vrot.slane %v6990_v58, 5  ;;  %v5092_v4 = vor.u32 %v5091_v20, %v5088_v11  ;;  %v5097_v53 = vrot.slane %v5095_v2, 5  ;;  %v5101_v60 = vrot.slane %v5099_v52, 4  ;;  %v7497_v20 = vpop.f32.mrf.mxu1 }
 0x1bd   : > { %7776 = vmatmul.mubr.bf16.gmra.mxu1 %v7035_v19  ;;  %v2304_v51 = vadd.f32 %v7493_v18, %v9316_v9  ;;  %v5107_v29 = vrot.slane %v5105_v35, 5  ;;  %v5722_v39 = vsel %vm8594_vm5, %v7076_v6, %v5721_v24  ;;  %v5723_v7 = vrot.slane %v5721_v24, 4 }
 0x1be   : > { %v5110_v56 = vshrl.u32 %v6991_v33, 16  ;;  %v5093_v38 = vrot.slane %v5092_v4, 4  ;;  %v5102_v31 = vor.u32 %v5101_v60, %v5097_v53  ;;  %v5113_v59 = vshll.u32 %v6991_v33, 16  ;;  %v6994_v4 = vld [vmem:[%s8519_s7 + $0x90] sm:$0xf]  ;;  %v9729_v60 = vpop.f32.mrf.mxu1 }
 0x1bf   : > { %v9716_v54 = vadd.f32 %v7541_v27, %v2304_v51  ;;  %v5725_v9 = vsel %vm8594_vm5, %v5723_v7, %v5724_v0  ;;  %v5119_v58 = vshll.u32 %v6992_v46, 16  ;;  %v5123_v61 = vshrl.u32 %v6992_v46, 16  ;;  %v9724_v27 = vpop.f32.mrf.mxu0 }
 0x1c0   : > { %7824 = vmatmul.mubr.bf16.gmra.mxu0 %v7107_v8  ;;  %v5112_v18 = vrot.slane %v5110_v56, 4  ;;  %v5098_v34 = vsel %vm8611_vm6, %v5093_v38, %v5097_v53  ;;  %v5103_v47 = vrot.slane %v5102_v31, 4  ;;  %v7108_v11 = vcombine.low %v5722_v39, %v5725_v9 }
 0x1c1   : > { %v5115_v19 = vrot.slane %v5113_v59, 5  ;;  %v5121_v2 = vrot.slane %v5119_v58, 5  ;;  %v5125_v52 = vrot.slane %v5123_v61, 4  ;;  %v5129_v33 = vshll.u32 %v6993_v28, 16  ;;  %v9731_v53 = vpop.f32.mrf.mxu0  ;;  %v6996_v61 = vld [vmem:[%s8519_s7 + $0x98] sm:$0x1] }
 0x1c2   : > { %v7077_v8 = vrot.slane %v7061_v25, 9  ;;  %v5108_v35 = vsel %vm8611_vm6, %v5103_v47, %v5107_v29  ;;  %7827 = vmatprep.mubr.bf16.mxu0 %v7108_v11  ;;  %v5728_v24 = vrot.slane %v6992_v46, 5  ;;  %v5731_v0 = vrot.slane %v6993_v28, 5  ;;  %v9739_v28 = vpop.f32.mrf.mxu1  ;;  %v7062_v47 = vld [vmem:[%s8519_s7 + $0x90] sm:$0xe] }
 0x1c3   : > { %v5116_v6 = vor.u32 %v5115_v19, %v5112_v18  ;;  %v7036_v51 = vcombine.low %v5098_v34, %v5108_v35  ;;  %v5126_v39 = vor.u32 %v5125_v52, %v5121_v2  ;;  %v5131_v7 = vrot.slane %v5129_v33, 5  ;;  %v9741_v59 = vpop.f32.mrf.mxu0 }
 0x1c4   : > { %v2302_v56 = vadd.f32 %v9685_v30, %v9328_v41  ;;  %v5729_v29 = vsel %vm8594_vm5, %v7077_v8, %v5728_v24  ;;  %v5730_v46 = vrot.slane %v5728_v24, 4  ;;  %v2305_v31 = vadd.f32 %v9703_v17, %v9335_v45  ;;  %v6995_v30 = vld [vmem:[%s8519_s7 + $0x94] sm:$0xf]  ;;  %v6997_v8 = vld [vmem:[%s8519_s7 + $0x9c] sm:$0xf]  ;;  %v2242_v35 = vpop.f32.mrf.mxu1 }
 0x1c5   : > { %v5117_v38 = vrot.slane %v5116_v6, 4  ;;  %7779 = vmatprep.mubr.bf16.mxu1 %v7036_v51  ;;  %v5127_v25 = vrot.slane %v5126_v39, 4  ;;  %v2303_v41 = vadd.f32 %v2226_v5, %v9357_v50  ;;  %v5134_v18 = vshrl.u32 %v6994_v4, 16  ;;  %v9762_v6 = vpop.f32.mrf.mxu0 }
 0x1c6   : > { %v9744_v9 = vadd.f32 %v9687_v63, %v2302_v56  ;;  %v5732_v45 = vsel %vm8594_vm5, %v5730_v46, %v5731_v0  ;;  %v9753_v17 = vadd.f32 %v9705_v32, %v2305_v31  ;;  %v5137_v34 = vshll.u32 %v6994_v4, 16  ;;  %v6998_v56 = vld [vmem:[%s8519_s7 + $0xa0] sm:$0xf] }
 0x1c7   : > { %v5122_v58 = vsel %vm8611_vm6, %v5117_v38, %v5121_v2  ;;  %v5132_v63 = vsel %vm8611_vm6, %v5127_v25, %v5131_v7  ;;  %v7109_v11 = vcombine.low %v5729_v29, %v5732_v45  ;;  %v9759_v50 = vadd.f32 %v2727_v26, %v2303_v41  ;;  %v7063_v45 = vld [vmem:[%s8519_s7 + $0x9c] sm:$0xe] }
 0x1c8   : > { %10441 = vst [vmem:[#allocation13_spill] sm:$0xff] %v9753_v17  ;;  %v5136_v5 = vrot.slane %v5134_v18, 4  ;;  %v7037_v19 = vcombine.low %v5122_v58, %v5132_v63  ;;  %v5139_v52 = vrot.slane %v5137_v34, 5  ;;  %v5143_v2 = vshll.u32 %v6995_v30, 16  ;;  %v9775_v34 = vpop.f32.mrf.mxu0 }
 0x1c9   : > { %10442 = vst [vmem:[#allocation14_spill] sm:$0xff] %v9759_v50  ;;  %v5147_v33 = vshrl.u32 %v6995_v30, 16  ;;  %7828 = vmatmul.mubr.bf16.gmra.mxu0 %v7109_v11  ;;  %v5153_v32 = vshll.u32 %v6996_v61, 16  ;;  %v7078_v24 = vrot.slane %v7062_v47, 9  ;;  %v5735_v0 = vrot.slane %v6995_v30, 5 }
 0x1ca   : > { %v5738_v4 = vrot.slane %v6996_v61, 5  ;;  %7780 = vmatmul.mubr.bf16.gmra.mxu1 %v7037_v19  ;;  %v5140_v26 = vor.u32 %v5139_v52, %v5136_v5  ;;  %v5145_v51 = vrot.slane %v5143_v2, 5  ;;  %v2308_v7 = vadd.f32 %v7497_v20, %v9390_v3  ;;  %v6999_v30 = vld [vmem:[%s8519_s7 + $0xa4] sm:$0x1]  ;;  %v9773_v61 = vpop.f32.mrf.mxu1  ;;  %v9783_v2 = vpop.f32.mrf.mxu0 }
 0x1cb   : > { %v5149_v39 = vrot.slane %v5147_v33, 4  ;;  %v5155_v38 = vrot.slane %v5153_v32, 5  ;;  %v5736_v29 = vsel %vm8594_vm5, %v7078_v24, %v5735_v0  ;;  %v5737_v46 = vrot.slane %v5735_v0, 4 }
 0x1cc   : > { %v5158_v31 = vshrl.u32 %v6997_v8, 16  ;;  %v5141_v25 = vrot.slane %v5140_v26, 4  ;;  %v9769_v18 = vadd.f32 %v9724_v27, %v2308_v7  ;;  %v5161_v58 = vshll.u32 %v6997_v8, 16  ;;  %v9781_v52 = vpop.f32.mrf.mxu1 }
 0x1cd   : > { %v5150_v41 = vor.u32 %v5149_v39, %v5145_v51  ;;  %v5739_v3 = vsel %vm8594_vm5, %v5737_v46, %v5738_v4  ;;  %v5167_v47 = vshll.u32 %v6998_v56, 16  ;;  %v5171_v63 = vshrl.u32 %v6998_v56, 16 }
 0x1ce   : > { %10443 = vst [vmem:[#allocation15_spill] sm:$0xff] %v9769_v18  ;;  %v5160_v20 = vrot.slane %v5158_v31, 4  ;;  %v5146_v11 = vsel %vm8611_vm6, %v5141_v25, %v5145_v51  ;;  %v7110_v27 = vcombine.low %v5736_v29, %v5739_v3  ;;  %v5163_v19 = vrot.slane %v5161_v58, 5  ;;  %v7000_v51 = vld [vmem:[%s8519_s7 + $0xa8] sm:$0xf]  ;;  %v9788_v7 = vpop.f32.mrf.mxu1  ;;  %v9790_v29 = vpop.f32.mrf.mxu0 }
 0x1cf   : > { %v5151_v5 = vrot.slane %v5150_v41, 4  ;;  %v5169_v33 = vrot.slane %v5167_v47, 5  ;;  %v5173_v8 = vrot.slane %v5171_v63, 4  ;;  %v5177_v32 = vshll.u32 %v6999_v30, 16  ;;  %v7001_v47 = vld [vmem:[%s8519_s7 + $0xac] sm:$0xf] }
 0x1d0   : > { %v7079_v24 = vrot.slane %v7063_v45, 9  ;;  %7831 = vmatprep.mubr.bf16.mxu0 %v7110_v27  ;;  %v5164_v4 = vor.u32 %v5163_v19, %v5160_v20  ;;  %v5742_v26 = vrot.slane %v6998_v56, 5  ;;  %v5745_v39 = vrot.slane %v6999_v30, 5  ;;  %v9812_v27 = vpop.f32.mrf.mxu1 }
 0x1d1   : > { %v5156_v0 = vsel %vm8611_vm6, %v5151_v5, %v5155_v38  ;;  %v5174_v31 = vor.u32 %v5173_v8, %v5169_v33  ;;  %v5179_v25 = vrot.slane %v5177_v32, 5  ;;  %v2306_v41 = vadd.f32 %v9729_v60, %v9394_v21  ;;  %v7064_v5 = vld [vmem:[%s8519_s7 + $0xa8] sm:$0xe] }
 0x1d2   : > { %v7038_v46 = vcombine.low %v5146_v11, %v5156_v0  ;;  %v5165_v58 = vrot.slane %v5164_v4, 4  ;;  %v5743_v38 = vsel %vm8594_vm5, %v7079_v24, %v5742_v26  ;;  %v5744_v56 = vrot.slane %v5742_v26, 4  ;;  %v7003_v0 = vld [vmem:[%s8519_s7 + $0xb4] sm:$0xf] }
 0x1d3   : > { %v2309_v30 = vadd.f32 %v9739_v28, %v9409_v44  ;;  %v5175_v45 = vrot.slane %v5174_v31, 4  ;;  %v9799_v3 = vadd.f32 %v9731_v53, %v2306_v41  ;;  %v2307_v20 = vadd.f32 %v2242_v35, %v9417_v55  ;;  %v7002_v44 = vld [vmem:[%s8519_s7 + $0xb0] sm:$0x1]  ;;  %v9814_v53 = vpop.f32.mrf.mxu0  ;;  %v7004_v41 = vld [vmem:[%s8519_s7 + $0xb8] sm:$0xf] }
 0x1d4   : > { %7783 = vmatprep.mubr.bf16.mxu1 %v7038_v46  ;;  %v5182_v63 = vshrl.u32 %v7000_v51, 16  ;;  %v5170_v21 = vsel %vm8611_vm6, %v5165_v58, %v5169_v33  ;;  %v5746_v60 = vsel %vm8594_vm5, %v5744_v56, %v5745_v39  ;;  %v5185_v28 = vshll.u32 %v7000_v51, 16  ;;  %v9825_v58 = vpop.f32.mrf.mxu1 }
 0x1d5   : > { %10444 = vst [vmem:[#allocation16_spill] sm:$0xff] %v9799_v3  ;;  %v9808_v11 = vadd.f32 %v9741_v59, %v2309_v30  ;;  %v5180_v55 = vsel %vm8611_vm6, %v5175_v45, %v5179_v25  ;;  %v7111_v35 = vcombine.low %v5743_v38, %v5746_v60  ;;  %v9819_v19 = vadd.f32 %v9762_v6, %v2307_v20  ;;  %v9827_v38 = vpop.f32.mrf.mxu0  ;;  %v7005_v60 = vld [vmem:[%s8519_s7 + $0xbc] sm:$0x1] }
 0x1d6   : > { %v5184_v33 = vrot.slane %v5182_v63, 4  ;;  %v7039_v8 = vcombine.low %v5170_v21, %v5180_v55  ;;  %v5187_v32 = vrot.slane %v5185_v28, 5  ;;  %v5191_v59 = vshll.u32 %v7001_v47, 16  ;;  %v7065_v28 = vld [vmem:[%s8519_s7 + $0xb4] sm:$0xe] }
 0x1d7   : > { %10445 = vst [vmem:[#allocation17_spill] sm:$0xff] %v9808_v11  ;;  %10446 = vst [vmem:[#allocation18_spill] sm:$0xff] %v9819_v19  ;;  %v5195_v24 = vshrl.u32 %v7001_v47, 16  ;;  %7832 = vmatmul.mubr.bf16.gmra.mxu0 %v7111_v35  ;;  %v5201_v4 = vshll.u32 %v7002_v44, 16  ;;  %v7080_v26 = vrot.slane %v7064_v5, 9  ;;  %v5749_v39 = vrot.slane %v7001_v47, 5 }
 0x1d8   : > { %v5752_v51 = vrot.slane %v7002_v44, 5  ;;  %7784 = vmatmul.mubr.bf16.gmra.mxu1 %v7039_v8  ;;  %v5188_v46 = vor.u32 %v5187_v32, %v5184_v33  ;;  %v5193_v31 = vrot.slane %v5191_v59, 5  ;;  %v2312_v6 = vadd.f32 %v9773_v61, %v9427_v13  ;;  %v9836_v13 = vpop.f32.mrf.mxu1  ;;  %v9838_v61 = vpop.f32.mrf.mxu0 }
 0x1d9   : > { %v5197_v25 = vrot.slane %v5195_v24, 4  ;;  %v5203_v56 = vrot.slane %v5201_v4, 5  ;;  %v5750_v30 = vsel %vm8594_vm5, %v7080_v26, %v5749_v39  ;;  %v5751_v45 = vrot.slane %v5749_v39, 4 }
 0x1da   : > { %v5206_v20 = vshrl.u32 %v7003_v0, 16  ;;  %v5189_v47 = vrot.slane %v5188_v46, 4  ;;  %v9832_v21 = vadd.f32 %v9775_v34, %v2312_v6  ;;  %v5209_v44 = vshll.u32 %v7003_v0, 16  ;;  %v9844_v24 = vpop.f32.mrf.mxu1  ;;  %v9846_v0 = vpop.f32.mrf.mxu0 }
 0x1db   : > { %v5198_v63 = vor.u32 %v5197_v25, %v5193_v31  ;;  %v5753_v5 = vsel %vm8594_vm5, %v5751_v45, %v5752_v51  ;;  %v5215_v35 = vshll.u32 %v7004_v41, 16  ;;  %v5219_v33 = vshrl.u32 %v7004_v41, 16 }
 0x1dc   : > { %10447 = vst [vmem:[#allocation19_spill] sm:$0xff] %v9832_v21  ;;  %v5208_v55 = vrot.slane %v5206_v20, 4  ;;  %v5194_v8 = vsel %vm8611_vm6, %v5189_v47, %v5193_v31  ;;  %v7112_v34 = vcombine.low %v5750_v30, %v5753_v5  ;;  %v5211_v59 = vrot.slane %v5209_v44, 5  ;;  %v7006_v20 = vld [vmem:[%s8519_s7 + $0xc0] sm:$0xf]  ;;  %v9851_v31 = vpop.f32.mrf.mxu1  ;;  %v10448_v44 = vld [vmem:[#allocation5_spill] sm:$0xff] }
 0x1dd   : > { %v5199_v32 = vrot.slane %v5198_v63, 4  ;;  %v5217_v4 = vrot.slane %v5215_v35, 5  ;;  %v5221_v26 = vrot.slane %v5219_v33, 4  ;;  %v5225_v39 = vshll.u32 %v7005_v60, 16  ;;  %v9855_v35 = vpop.f32.mrf.mxu0 }
 0x1de   : > { %v7081_v46 = vrot.slane %v7065_v28, 9  ;;  %7835 = vmatprep.mubr.bf16.mxu0 %v7112_v34  ;;  %v5212_v25 = vor.u32 %v5211_v59, %v5208_v55  ;;  %v5756_v6 = vrot.slane %v7004_v41, 5  ;;  %v5759_v45 = vrot.slane %v7005_v60, 5  ;;  %v10449_v60 = vld [vmem:[#allocation6_spill] sm:$0xff]  ;;  %v9861_v33 = vpop.f32.mrf.mxu1 }
 0x1df   : > { %v5204_v51 = vsel %vm8611_vm6, %v5199_v32, %v5203_v56  ;;  %v5222_v47 = vor.u32 %v5221_v26, %v5217_v4  ;;  %v5227_v63 = vrot.slane %v5225_v39, 5  ;;  %v2310_v5 = vadd.f32 %v9781_v52, %v10448_v44  ;;  %v10451_v52 = vld [vmem:[#allocation7_spill] sm:$0xff]  ;;  %v9885_v44 = vpop.f32.mrf.mxu0 }
 0x1e0   : > { %v7040_v30 = vcombine.low %v5194_v8, %v5204_v51  ;;  %v5213_v28 = vrot.slane %v5212_v25, 4  ;;  %v5757_v56 = vsel %vm8594_vm5, %v7081_v46, %v5756_v6  ;;  %v5758_v41 = vrot.slane %v5756_v6, 4  ;;  %v7007_v59 = vld [vmem:[%s8519_s7 + $0xc4] sm:$0xf]  ;;  %v7008_v51 = vld [vmem:[%s8519_s7 + $0xc8] sm:$0x1] }
 0x1e1   : > { %v2313_v55 = vadd.f32 %v9788_v7, %v10449_v60  ;;  %v5223_v8 = vrot.slane %v5222_v47, 4  ;;  %v9864_v32 = vadd.f32 %v9783_v2, %v2310_v5  ;;  %v2311_v34 = vadd.f32 %v9812_v27, %v10451_v52  ;;  %v7066_v6 = vld [vmem:[%s8519_s7 + $0xc0] sm:$0xe]  ;;  %v9878_v2 = vpop.f32.mrf.mxu1 }
 0x1e2   : > { %7787 = vmatprep.mubr.bf16.mxu1 %v7040_v30  ;;  %v5230_v26 = vshrl.u32 %v7006_v20, 16  ;;  %v5218_v39 = vsel %vm8611_vm6, %v5213_v28, %v5217_v4  ;;  %v5760_v46 = vsel %vm8594_vm5, %v5758_v41, %v5759_v45  ;;  %v5233_v25 = vshll.u32 %v7006_v20, 16  ;;  %v7009_v41 = vld [vmem:[%s8519_s7 + $0xcc] sm:$0xf] }
 0x1e3   : > { %10450 = vst [vmem:[#allocation5_spill] sm:$0xff] %v9864_v32  ;;  %v9874_v7 = vadd.f32 %v9790_v29, %v2313_v55  ;;  %v5228_v27 = vsel %vm8611_vm6, %v5223_v8, %v5227_v63  ;;  %v7113_v30 = vcombine.low %v5757_v56, %v5760_v46  ;;  %v9883_v47 = vadd.f32 %v9814_v53, %v2311_v34  ;;  %v9888_v20 = vpop.f32.mrf.mxu1  ;;  %v9890_v56 = vpop.f32.mrf.mxu0  ;;  %v7010_v46 = vld [vmem:[%s8519_s7 + $0xd0] sm:$0xf] }
 0x1e4   : > { %v5232_v4 = vrot.slane %v5230_v26, 4  ;;  %v7041_v5 = vcombine.low %v5218_v39, %v5228_v27  ;;  %v5235_v45 = vrot.slane %v5233_v25, 5  ;;  %v5239_v29 = vshll.u32 %v7007_v59, 16  ;;  %v10454_v26 = vld [vmem:[#allocation8_spill] sm:$0xff] }
 0x1e5   : > { %10452 = vst [vmem:[#allocation6_spill] sm:$0xff] %v9874_v7  ;;  %10453 = vst [vmem:[#allocation7_spill] sm:$0xff] %v9883_v47  ;;  %v5243_v28 = vshrl.u32 %v7007_v59, 16  ;;  %7836 = vmatmul.mubr.bf16.gmra.mxu0 %v7113_v30  ;;  %v5249_v60 = vshll.u32 %v7008_v51, 16  ;;  %v7082_v55 = vrot.slane %v7066_v6, 9  ;;  %v5763_v52 = vrot.slane %v7007_v59, 5  ;;  %v9895_v25 = vpop.f32.mrf.mxu1  ;;  %v9899_v30 = vpop.f32.mrf.mxu0 }
 0x1e6   : > { %v5766_v63 = vrot.slane %v7008_v51, 5  ;;  %7788 = vmatmul.mubr.bf16.gmra.mxu1 %v7041_v5  ;;  %v5236_v53 = vor.u32 %v5235_v45, %v5232_v4  ;;  %v5241_v8 = vrot.slane %v5239_v29, 5  ;;  %v2316_v39 = vadd.f32 %v9825_v58, %v10454_v26  ;;  %v7011_v45 = vld [vmem:[%s8519_s7 + $0xd4] sm:$0x1] }
 0x1e7   : > { %v5245_v34 = vrot.slane %v5243_v28, 4  ;;  %v5251_v27 = vrot.slane %v5249_v60, 5  ;;  %v5764_v6 = vsel %vm8594_vm5, %v7082_v55, %v5763_v52  ;;  %v5765_v59 = vrot.slane %v5763_v52, 4  ;;  %v7067_v28 = vld [vmem:[%s8519_s7 + $0xcc] sm:$0xe]  ;;  %v7577_v58 = vpop.f32.mrf.mxu1  ;;  %v3804_v55 = vpop.f32.mrf.mxu0 }
 0x1e8   : > { %v5254_v51 = vshrl.u32 %v7009_v41, 16  ;;  %v5237_v47 = vrot.slane %v5236_v53, 4  ;;  %v9902_v4 = vadd.f32 %v9827_v38, %v2316_v39  ;;  %v5257_v29 = vshll.u32 %v7009_v41, 16 }
 0x1e9   : > { %v5246_v5 = vor.u32 %v5245_v34, %v5241_v8  ;;  %v5767_v26 = vsel %vm8594_vm5, %v5765_v59, %v5766_v63  ;;  %v5263_v7 = vshll.u32 %v7010_v46, 16  ;;  %v5267_v32 = vshrl.u32 %v7010_v46, 16  ;;  %v3063_v19 = vpop.f32.mrf.mxu1  ;;  %v7625_v11 = vpop.f32.mrf.mxu0 }
 0x1ea   : > { %10455 = vst [vmem:[#allocation8_spill] sm:$0xff] %v9902_v4  ;;  %v5256_v60 = vrot.slane %v5254_v51, 4  ;;  %v5242_v52 = vsel %vm8611_vm6, %v5237_v47, %v5241_v8  ;;  %v7114_v53 = vcombine.low %v5764_v6, %v5767_v26  ;;  %v5259_v34 = vrot.slane %v5257_v29, 5  ;;  %v10456_v8 = vld [vmem:[#allocation9_spill] sm:$0xff] }
 0x1eb   : > { %v5247_v21 = vrot.slane %v5246_v5, 4  ;;  %v5265_v38 = vrot.slane %v5263_v7, 5  ;;  %v5269_v39 = vrot.slane %v5267_v32, 4  ;;  %v5273_v4 = vshll.u32 %v7011_v45, 16  ;;  %v7578_v18 = vpop.f32.mrf.mxu1  ;;  %v3817_v5 = vpop.f32.mrf.mxu0 }
 0x1ec   : > { %v7083_v41 = vrot.slane %v7067_v28, 9  ;;  %7839 = vmatprep.mubr.bf16.mxu0 %v7114_v53  ;;  %v5260_v63 = vor.u32 %v5259_v34, %v5256_v60  ;;  %v5770_v59 = vrot.slane %v7010_v46, 5  ;;  %v5773_v51 = vrot.slane %v7011_v45, 5  ;;  %v10457_v28 = vld [vmem:[#allocation10_spill] sm:$0xff] }
 0x1ed   : > { %v5252_v3 = vsel %vm8611_vm6, %v5247_v21, %v5251_v27  ;;  %v5270_v17 = vor.u32 %v5269_v39, %v5265_v38  ;;  %v5275_v47 = vrot.slane %v5273_v4, 5  ;;  %v2314_v6 = vadd.f32 %v9836_v13, %v10456_v8  ;;  %v3066_v27 = vpop.f32.mrf.mxu1  ;;  %v7626_v26 = vpop.f32.mrf.mxu0 }
 0x1ee   : > { %v7042_v50 = vcombine.low %v5242_v52, %v5252_v3  ;;  %v5261_v7 = vrot.slane %v5260_v63, 4  ;;  %v5771_v32 = vsel %vm8594_vm5, %v7083_v41, %v5770_v59  ;;  %v5772_v29 = vrot.slane %v5770_v59, 4  ;;  %v10458_v3 = vld [vmem:[#allocation11_spill] sm:$0xff] }
 0x1ef   : > { %v2317_v21 = vadd.f32 %v9844_v24, %v10457_v28  ;;  %v5271_v46 = vrot.slane %v5270_v17, 4  ;;  %v9919_v45 = vadd.f32 %v9838_v61, %v2314_v6  ;;  %v2315_v4 = vadd.f32 %v9851_v31, %v10458_v3  ;;  %v3820_v53 = vpop.f32.mrf.mxu0 }
 0x1f0   : > { %7791 = vmatprep.mubr.bf16.mxu1 %v7042_v50  ;;  %v3176_v13 = vadd.f32 %v9861_v33, %v9521_v49  ;;  %v5266_v60 = vsel %vm8611_vm6, %v5261_v7, %v5265_v38  ;;  %v5774_v52 = vsel %vm8594_vm5, %v5772_v29, %v5773_v51  ;;  %v3174_v17 = vadd.f32 %v9878_v2, %v9532_v62  ;;  %v7581_v50 = vpop.f32.mrf.mxu1  ;;  %v10459_v38 = vld [vmem:[#allocation12_spill] sm:$0xff] }
 0x1f1   : > { %v9930_v24 = vadd.f32 %v9846_v0, %v2317_v21  ;;  %v5276_v61 = vsel %vm8611_vm6, %v5271_v46, %v5275_v47  ;;  %v7115_v31 = vcombine.low %v5771_v32, %v5774_v52  ;;  %v9937_v49 = vadd.f32 %v9855_v35, %v2315_v4 }
 0x1f2   : > { %v9940_v33 = vadd.f32 %v9885_v44, %v3176_v13  ;;  %v7043_v36 = vcombine.low %v5266_v60, %v5276_v61  ;;  %v9943_v34 = vadd.f32 %v9890_v56, %v3174_v17  ;;  %v3177_v0 = vadd.f32 %v9888_v20, %v9542_v10  ;;  %v3079_v57 = vpop.f32.mrf.mxu1  ;;  %v10464_v17 = vld [vmem:[#allocation13_spill] sm:$0xff] }
 0x1f3   : > { %v3175_v62 = vadd.f32 %v9895_v25, %v9555_v1  ;;  %7840 = vmatmul.mubr.bf16.gmra.mxu0 %v7115_v31  ;;  %v3180_v2 = vadd.f32 %v7577_v58, %v9563_v16  ;;  %v3178_v35 = vadd.f32 %v3063_v19, %v9579_v43  ;;  %v3181_v44 = vadd.f32 %v7578_v18, %v9587_v37  ;;  %v7629_v18 = vpop.f32.mrf.mxu0 }
 0x1f4   : > { %v3179_v39 = vadd.f32 %v3066_v27, %v10459_v38  ;;  %7792 = vmatmul.mubr.bf16.gmra.mxu1 %v7043_v36  ;;  %v9954_v56 = vadd.f32 %v9899_v30, %v3177_v0  ;;  %v3184_v10 = vadd.f32 %v7581_v50, %v9616_v23  ;;  %v3182_v1 = vadd.f32 %v3079_v57, %v9635_v48  ;;  %v7582_v20 = vpop.f32.mrf.mxu1  ;;  %v10466_v57 = vld [vmem:[#allocation15_spill] sm:$0xff]  ;;  %v10467_v38 = vld [vmem:[#allocation16_spill] sm:$0xff] }
 0x1f5   : > { %v9956_v41 = vadd.f32 %v3804_v55, %v3175_v62  ;;  %v9960_v25 = vadd.f32 %v7625_v11, %v3180_v2  ;;  %v9962_v16 = vadd.f32 %v3817_v5, %v3178_v35  ;;  %v9964_v43 = vadd.f32 %v7626_v26, %v3181_v44  ;;  %v3833_v55 = vpop.f32.mrf.mxu0 }
 0x1f6   : > { %v9966_v37 = vadd.f32 %v3820_v53, %v3179_v39  ;;  %v9968_v19 = vadd.f32 %v7629_v18, %v3184_v10  ;;  %v3185_v30 = vadd.f32 %v7582_v20, %v9645_v42  ;;  %v3082_v58 = vpop.f32.mrf.mxu1  ;;  %v9972_v63 = vadd.f32 %v3833_v55, %v3182_v1  ;;  %v10465_v53 = vld [vmem:[#allocation14_spill] sm:$0xff]  ;;  %v10468_v18 = vld [vmem:[#allocation17_spill] sm:$0xff] }
 0x1f7   : > { %v3183_v23 = vadd.f32 %v3082_v58, %v9655_v40  ;;  %v7630_v11 = vpop.f32.mrf.mxu0 }
 0x1f8   : > { %v7585_v48 = vpop.f32.mrf.mxu1  ;;  %v9975_v51 = vadd.f32 %v7630_v11, %v3185_v30 }
 0x1f9   : > { %v3188_v59 = vadd.f32 %v7585_v48, %v9670_v15  ;;  %v3836_v8 = vpop.f32.mrf.mxu0  ;;  %v10469_v48 = vld [vmem:[#allocation18_spill] sm:$0xff] }
 0x1fa   : > { %v3095_v47 = vpop.f32.mrf.mxu1  ;;  %v9978_v5 = vadd.f32 %v3836_v8, %v3183_v23 }
 0x1fb   : > { %v3186_v6 = vadd.f32 %v3095_v47, %v9690_v12  ;;  %v7633_v42 = vpop.f32.mrf.mxu0 }
 0x1fc   : > { %v7586_v7 = vpop.f32.mrf.mxu1  ;;  %v9981_v29 = vadd.f32 %v7633_v42, %v3188_v59 }
 0x1fd   : > { %v3189_v32 = vadd.f32 %v7586_v7, %v9699_v14  ;;  %v3849_v28 = vpop.f32.mrf.mxu0 }
 0x1fe   : > { %10460 = vst [vmem:[#allocation9_spill] sm:$0xff] %v9981_v29  ;;  %v3098_v40 = vpop.f32.mrf.mxu1  ;;  %v9984_v27 = vadd.f32 %v3849_v28, %v3186_v6  ;;  %v10470_v6 = vld [vmem:[#allocation19_spill] sm:$0xff]  ;;  %v10471_v28 = vld [vmem:[#allocation5_spill] sm:$0xff] }
 0x1ff   : > { %v3187_v21 = vadd.f32 %v3098_v40, %v9709_v22  ;;  %v7634_v46 = vpop.f32.mrf.mxu0 }
 0x200   : > { %10461 = vst [vmem:[#allocation10_spill] sm:$0xff] %v9984_v27  ;;  %v7589_v15 = vpop.f32.mrf.mxu1  ;;  %v9987_v4 = vadd.f32 %v7634_v46, %v3189_v32 }
 0x201   : > { %v3192_v3 = vadd.f32 %v7589_v15, %v9716_v54  ;;  %v3852_v13 = vpop.f32.mrf.mxu0 }
 0x202   : > { %10462 = vst [vmem:[#allocation11_spill] sm:$0xff] %v9987_v4  ;;  %v3111_v12 = vpop.f32.mrf.mxu1  ;;  %v9990_v60 = vadd.f32 %v3852_v13, %v3187_v21 }
 0x203   : > { %v3190_v26 = vadd.f32 %v3111_v12, %v9744_v9  ;;  %v7637_v52 = vpop.f32.mrf.mxu0  ;;  %v10472_v12 = vld [vmem:[#allocation6_spill] sm:$0xff] }
 0x204   : > { %10463 = vst [vmem:[#allocation12_spill] sm:$0xff] %v9990_v60  ;;  %v7590_v14 = vpop.f32.mrf.mxu1  ;;  %v9993_v61 = vadd.f32 %v7637_v52, %v3192_v3 }
 0x205   : > { %v3193_v50 = vadd.f32 %v7590_v14, %v10464_v17  ;;  %v3865_v31 = vpop.f32.mrf.mxu0  ;;  %v10473_v17 = vld [vmem:[#allocation7_spill] sm:$0xff] }
 0x206   : > { %v3114_v22 = vpop.f32.mrf.mxu1  ;;  %v9996_v0 = vadd.f32 %v3865_v31, %v3190_v26 }
 0x207   : > { %v3191_v36 = vadd.f32 %v3114_v22, %v10465_v53  ;;  %v7638_v62 = vpop.f32.mrf.mxu0 }
 0x208   : > { %v7593_v54 = vpop.f32.mrf.mxu1  ;;  %v9999_v35 = vadd.f32 %v7638_v62, %v3193_v50 }
 0x209   : > { %v3196_v2 = vadd.f32 %v7593_v54, %v10466_v57  ;;  %v3868_v44 = vpop.f32.mrf.mxu0 }
 0x20a   : > { %v3127_v9 = vpop.f32.mrf.mxu1  ;;  %v10002_v10 = vadd.f32 %v3868_v44, %v3191_v36  ;;  %v10474_v36 = vld [vmem:[#allocation8_spill] sm:$0xff] }
 0x20b   : > { %v3194_v39 = vadd.f32 %v3127_v9, %v10467_v38  ;;  %v7641_v20 = vpop.f32.mrf.mxu0 }
 0x20c   : > { %v7594_v1 = vpop.f32.mrf.mxu1  ;;  %v10005_v58 = vadd.f32 %v7641_v20, %v3196_v2 }
 0x20d   : > { %v3197_v30 = vadd.f32 %v7594_v1, %v10468_v18  ;;  %v3881_v23 = vpop.f32.mrf.mxu0 }
 0x20e   : > { %v3130_v55 = vpop.f32.mrf.mxu1  ;;  %v10008_v59 = vadd.f32 %v3881_v23, %v3194_v39 }
 0x20f   : > { %v3195_v11 = vadd.f32 %v3130_v55, %v10469_v48  ;;  %v7642_v8 = vpop.f32.mrf.mxu0 }
 0x210   : > { %v7597_v47 = vpop.f32.mrf.mxu1  ;;  %v10011_v42 = vadd.f32 %v7642_v8, %v3197_v30 }
 0x211   : > { %v3200_v7 = vadd.f32 %v7597_v47, %v10470_v6  ;;  %v3884_v40 = vpop.f32.mrf.mxu0 }
 0x212   : > { %v3143_v32 = vpop.f32.mrf.mxu1  ;;  %v10014_v15 = vadd.f32 %v3884_v40, %v3195_v11 }
 0x213   : > { %v3198_v21 = vadd.f32 %v3143_v32, %v10471_v28  ;;  %v7645_v3 = vpop.f32.mrf.mxu0 }
 0x214   : > { %v7598_v46 = vpop.f32.mrf.mxu1  ;;  %v10017_v26 = vadd.f32 %v7645_v3, %v3200_v7 }
 0x215   : > { %v3201_v13 = vadd.f32 %v7598_v46, %v10472_v12  ;;  %v3897_v52 = vpop.f32.mrf.mxu0 }
 0x216   : > { %v3146_v14 = vpop.f32.mrf.mxu1  ;;  %v10020_v22 = vadd.f32 %v3897_v52, %v3198_v21 }
 0x217   : > { %v3199_v50 = vadd.f32 %v3146_v14, %v10473_v17  ;;  %v7646_v53 = vpop.f32.mrf.mxu0 }
 0x218   : > { %v7601_v31 = vpop.f32.mrf.mxu1  ;;  %v10023_v62 = vadd.f32 %v7646_v53, %v3201_v13 }
 0x219   : > { %v3204_v54 = vadd.f32 %v7601_v31, %v10474_v36  ;;  %v3900_v2 = vpop.f32.mrf.mxu0 }
 0x21a   : > { %v3159_v57 = vpop.f32.mrf.mxu1  ;;  %v10026_v44 = vadd.f32 %v3900_v2, %v3199_v50 }
 0x21b   : > { %v3202_v9 = vadd.f32 %v3159_v57, %v9919_v45  ;;  %v7649_v20 = vpop.f32.mrf.mxu0 }
 0x21c   : > { %v7602_v38 = vpop.f32.mrf.mxu1  ;;  %v10030_v30 = vadd.f32 %v7649_v20, %v3204_v54 }
 0x21d   : > { %v3205_v39 = vadd.f32 %v7602_v38, %v9930_v24  ;;  %v3913_v23 = vpop.f32.mrf.mxu0 }
 0x21e   : > { %v3162_v1 = vpop.f32.mrf.mxu1  ;;  %v10034_v48 = vadd.f32 %v3913_v23, %v3202_v9 }
 0x21f   : > { %v3203_v18 = vadd.f32 %v3162_v1, %v9937_v49  ;;  %v7650_v47 = vpop.f32.mrf.mxu0 }
 0x220   : > { %v10032_v55 = vpop.f32.mrf.mxu1  ;;  %v10038_v45 = vadd.f32 %v7650_v47, %v3205_v39 }
 0x221   : > { %v3916_v6 = vpop.f32.mrf.mxu0 }
 0x222   : > { %v10036_v11 = vpop.f32.mrf.mxu1  ;;  %v10042_v24 = vadd.f32 %v3916_v6, %v3203_v18 }
 0x223   : > { %v10046_v49 = vpop.f32.mrf.mxu0 }
 0x224   : > { %v10040_v8 = vpop.f32.mrf.mxu1 }
 0x225   : > { %v10048_v32 = vpop.f32.mrf.mxu0 }
 0x226   : > { %v10044_v7 = vpop.f32.mrf.mxu1 }
 0x227   : > { %v10052_v28 = vpop.f32.mrf.mxu0 }
 0x228   : > { %v10050_v40 = vpop.f32.mrf.mxu1 }
 0x229   : > { %v10056_v46 = vpop.f32.mrf.mxu0 }
 0x22a   : > { %v10054_v21 = vpop.f32.mrf.mxu1 }
 0x22b   : > { %v10060_v12 = vpop.f32.mrf.mxu0 }
 0x22c   : > { %v10058_v3 = vpop.f32.mrf.mxu1 }
 0x22d   : > { %v10064_v14 = vpop.f32.mrf.mxu0 }
 0x22e   : > { %v10062_v13 = vpop.f32.mrf.mxu1 }
 0x22f   : > { %v10068_v17 = vpop.f32.mrf.mxu0 }
 0x230   : > { %v10066_v52 = vpop.f32.mrf.mxu1 }
 0x231   : > { %v10072_v31 = vpop.f32.mrf.mxu0 }
 0x232   : > { %v10070_v50 = vpop.f32.mrf.mxu1 }
 0x233   : > { %v10076_v36 = vpop.f32.mrf.mxu0 }
 0x234   : > { %v10074_v53 = vpop.f32.mrf.mxu1 }
 0x235   : > { %v10080_v57 = vpop.f32.mrf.mxu0 }
 0x236   : > { %v10078_v54 = vpop.f32.mrf.mxu1 }
 0x237   : > { %10475 = vst [vmem:[#allocation13_spill] sm:$0xff] %v10078_v54  ;;  %v10084_v9 = vpop.f32.mrf.mxu0 }
 0x238   : > { %v10082_v2 = vpop.f32.mrf.mxu1  ;;  %10477 = vst [vmem:[#allocation15_spill] sm:$0xff] %v10084_v9 }
 0x239   : > { %10476 = vst [vmem:[#allocation14_spill] sm:$0xff] %v10082_v2  ;;  %v10088_v39 = vpop.f32.mrf.mxu0 }
 0x23a   : > { %v10086_v38 = vpop.f32.mrf.mxu1  ;;  %10479 = vst [vmem:[#allocation17_spill] sm:$0xff] %v10088_v39 }
 0x23b   : > { %10478 = vst [vmem:[#allocation16_spill] sm:$0xff] %v10086_v38  ;;  %v10092_v20 = vpop.f32.mrf.mxu0 }
 0x23c   : > { %v10090_v1 = vpop.f32.mrf.mxu1  ;;  %10481 = vst [vmem:[#allocation19_spill] sm:$0xff] %v10092_v20 }
 0x23d   : > { %10480 = vst [vmem:[#allocation18_spill] sm:$0xff] %v10090_v1  ;;  %v10096_v23 = vpop.f32.mrf.mxu0 }
 0x23e   : > { %v10094_v18 = vpop.f32.mrf.mxu1  ;;  %10483 = vst [vmem:[#allocation6_spill] sm:$0xff] %v10096_v23 }
 0x23f   : > { %10482 = vst [vmem:[#allocation5_spill] sm:$0xff] %v10094_v18  ;;  %v10099_v60 = vpop.f32.mrf.mxu0 }
 0x240   : > { %v7685_v47 = vpop.f32.mrf.mxu1  ;;  %10484 = vst [vmem:[#allocation7_spill] sm:$0xff] %v10099_v60 }
 0x241   : > { %v4444_v6 = vadd.f32 %v7685_v47, %v9993_v61  ;;  %v10102_v2 = vpop.f32.mrf.mxu0 }
 0x242   : > { %v4363_v4 = vpop.f32.mrf.mxu1  ;;  %10485 = vst [vmem:[#allocation8_spill] sm:$0xff] %v10102_v2 }
 0x243   : > { %v4442_v27 = vadd.f32 %v4363_v4, %v9996_v0  ;;  %v7733_v1 = vpop.f32.mrf.mxu0 }
 0x244   : > { %v7686_v38 = vpop.f32.mrf.mxu1  ;;  %v10105_v20 = vadd.f32 %v7733_v1, %v4444_v6 }
 0x245   : > { %v4445_v39 = vadd.f32 %v7686_v38, %v9999_v35  ;;  %v4750_v23 = vpop.f32.mrf.mxu0 }
 0x246   : > { %v4366_v29 = vpop.f32.mrf.mxu1  ;;  %v10108_v54 = vadd.f32 %v4750_v23, %v4442_v27 }
 0x247   : > { %v4443_v18 = vadd.f32 %v4366_v29, %v10002_v10  ;;  %v7734_v47 = vpop.f32.mrf.mxu0 }
 0x248   : > { %v7689_v9 = vpop.f32.mrf.mxu1  ;;  %v10111_v4 = vadd.f32 %v7734_v47, %v4445_v39 }
 0x249   : > { %v4448_v61 = vadd.f32 %v7689_v9, %v10005_v58  ;;  %v4753_v2 = vpop.f32.mrf.mxu0 }
 0x24a   : > { %v4379_v60 = vpop.f32.mrf.mxu1  ;;  %v10114_v38 = vadd.f32 %v4753_v2, %v4443_v18 }
 0x24b   : > { %v4446_v0 = vadd.f32 %v4379_v60, %v10008_v59  ;;  %v7737_v6 = vpop.f32.mrf.mxu0 }
 0x24c   : > { %v7690_v35 = vpop.f32.mrf.mxu1  ;;  %v10117_v10 = vadd.f32 %v7737_v6, %v4448_v61 }
 0x24d   : > { %v4449_v1 = vadd.f32 %v7690_v35, %v10011_v42  ;;  %v4766_v23 = vpop.f32.mrf.mxu0 }
 0x24e   : > { %v4382_v29 = vpop.f32.mrf.mxu1  ;;  %v10120_v9 = vadd.f32 %v4766_v23, %v4446_v0 }
 0x24f   : > { %v4447_v27 = vadd.f32 %v4382_v29, %v10014_v15  ;;  %v7738_v47 = vpop.f32.mrf.mxu0 }
 0x250   : > { %v7693_v58 = vpop.f32.mrf.mxu1  ;;  %v10123_v59 = vadd.f32 %v7738_v47, %v4449_v1 }
 0x251   : > { %v4452_v39 = vadd.f32 %v7693_v58, %v10017_v26  ;;  %v4769_v18 = vpop.f32.mrf.mxu0 }
 0x252   : > { %v4395_v60 = vpop.f32.mrf.mxu1  ;;  %v10126_v35 = vadd.f32 %v4769_v18, %v4447_v27 }
 0x253   : > { %v4450_v2 = vadd.f32 %v4395_v60, %v10020_v22  ;;  %v7741_v6 = vpop.f32.mrf.mxu0 }
 0x254   : > { %v7694_v42 = vpop.f32.mrf.mxu1  ;;  %v10129_v29 = vadd.f32 %v7741_v6, %v4452_v39  ;;  %v4428_v39 = vadd.f32 %v10032_v55, %v9940_v33  ;;  %v4429_v33 = vadd.f32 %v10040_v8, %v9954_v56 }
 0x255   : > { %v4453_v61 = vadd.f32 %v7694_v42, %v10023_v62  ;;  %v4782_v23 = vpop.f32.mrf.mxu0 }
 0x256   : > { %v4398_v15 = vpop.f32.mrf.mxu1  ;;  %v10132_v58 = vadd.f32 %v4782_v23, %v4450_v2 }
 0x257   : > { %v4451_v0 = vadd.f32 %v4398_v15, %v10026_v44  ;;  %v7742_v47 = vpop.f32.mrf.mxu0 }
 0x258   : > { %v10135_v60 = vadd.f32 %v7742_v47, %v4453_v61 }
 0x259   : > { %v4785_v18 = vpop.f32.mrf.mxu0 }
 0x25a   : > { %v7697_v26 = vpop.f32.mrf.mxu1  ;;  %v10140_v42 = vadd.f32 %v4785_v18, %v4451_v0  ;;  %v4816_v18 = vadd.f32 %v10052_v28, %v4429_v33 }
 0x25b   : > { %v4456_v1 = vadd.f32 %v7697_v26, %v10030_v30  ;;  %v7745_v6 = vpop.f32.mrf.mxu0  ;;  %v4426_v30 = vadd.f32 %v10036_v11, %v9943_v34  ;;  %v4815_v26 = vadd.f32 %v10046_v49, %v4428_v39  ;;  %v4427_v34 = vadd.f32 %v10044_v7, %v9956_v41 }
 0x25c   : > { %v4411_v22 = vpop.f32.mrf.mxu1  ;;  %v4432_v49 = vadd.f32 %v10050_v40, %v9960_v25  ;;  %v4430_v41 = vadd.f32 %v10054_v21, %v9962_v16  ;;  %v4433_v25 = vadd.f32 %v10058_v3, %v9964_v43  ;;  %v4431_v16 = vadd.f32 %v10062_v13, %v9966_v37 }
 0x25d   : > { %v4454_v27 = vadd.f32 %v4411_v22, %v10034_v48  ;;  %v10145_v15 = vadd.f32 %v7745_v6, %v4456_v1  ;;  %v4798_v23 = vpop.f32.mrf.mxu0  ;;  %v4813_v47 = vadd.f32 %v10048_v32, %v4426_v30  ;;  %v4814_v32 = vadd.f32 %v10056_v46, %v4427_v34 }
 0x25e   : > { %v7698_v62 = vpop.f32.mrf.mxu1  ;;  %v4819_v28 = vadd.f32 %v10060_v12, %v4432_v49  ;;  %v4817_v46 = vadd.f32 %v10064_v14, %v4430_v41  ;;  %v4436_v43 = vadd.f32 %v10066_v52, %v9968_v19  ;;  %v4434_v37 = vadd.f32 %v10070_v50, %v9972_v63  ;;  %v10486_v63 = vld [vmem:[#allocation13_spill] sm:$0xff] }
 0x25f   : > { %v4457_v44 = vadd.f32 %v7698_v62, %v10038_v45  ;;  %v10151_v55 = vadd.f32 %v4798_v23, %v4454_v27  ;;  %v7746_v0 = vpop.f32.mrf.mxu0  ;;  %v4437_v19 = vadd.f32 %v10074_v53, %v9975_v51  ;;  %v4435_v50 = vadd.f32 %v10486_v63, %v9978_v5  ;;  %v10488_v41 = vld [vmem:[#allocation9_spill] sm:$0xff]  ;;  %v10500_v63 = vld [vmem:[#allocation8_spill] sm:$0xff] }
 0x260   : > { %v4414_v2 = vpop.f32.mrf.mxu1 }
 0x261   : > { %v4455_v61 = vadd.f32 %v4414_v2, %v10042_v24  ;;  %v10156_v11 = vadd.f32 %v7746_v0, %v4457_v44  ;;  %v4801_v24 = vpop.f32.mrf.mxu0 }
 0x262   : > { %v7765_v48 = vpop.f32.mrf.mxu1 }
 0x263   : > { %v5569_v1 = vadd.f32 %v7765_v48, %v4815_v26  ;;  %v10161_v56 = vadd.f32 %v4801_v24, %v4455_v61  ;;  %v4820_v26 = vadd.f32 %v10068_v17, %v4433_v25 }
 0x264   : > { %v5440_v45 = vpop.f32.mrf.mxu1 }
 0x265   : > { %v5567_v8 = vadd.f32 %v5440_v45, %v4813_v47  ;;  %v4818_v45 = vadd.f32 %v10072_v31, %v4431_v16 }
 0x266   : > { %v7766_v22 = vpop.f32.mrf.mxu1 }
 0x267   : > { %v5570_v39 = vadd.f32 %v7766_v22, %v4816_v18  ;;  %v4821_v18 = vadd.f32 %v10080_v57, %v4434_v37  ;;  %v10498_v37 = vld [vmem:[#allocation5_spill] sm:$0xff] }
 0x268   : > { %v7813_v27 = vpop.f32.mrf.mxu0  ;;  %v5443_v62 = vpop.f32.mrf.mxu1 }
 0x269   : > { %v6067_v7 = vadd.f32 %v7813_v27, %v5569_v1  ;;  %v5568_v2 = vadd.f32 %v5443_v62, %v4814_v32  ;;  %v4823_v1 = vadd.f32 %v10076_v36, %v4436_v43  ;;  %v10487_v62 = vld [vmem:[#allocation15_spill] sm:$0xff] }
 0x26a   : > { %v5938_v44 = vpop.f32.mrf.mxu0  ;;  %v7769_v6 = vpop.f32.mrf.mxu1  ;;  %v4824_v32 = vadd.f32 %v10487_v62, %v4437_v19  ;;  %v10499_v19 = vld [vmem:[#allocation7_spill] sm:$0xff] }
 0x26b   : > { %6100 = vst.msk [vmem:[#allocation2 + $0x10] sm:$0xff] %vm6097_vm7, %v6067_v7  ;;  %v6065_v40 = vadd.f32 %v5938_v44, %v5567_v8  ;;  %v5573_v23 = vadd.f32 %v7769_v6, %v4819_v28  ;;  %v10489_v7 = vld [vmem:[#allocation14_spill] sm:$0xff]  ;;  %v10490_v6 = vld [vmem:[#allocation17_spill] sm:$0xff] }
 0x26c   : > { %v7814_v30 = vpop.f32.mrf.mxu0  ;;  %v5456_v61 = vpop.f32.mrf.mxu1  ;;  %v4822_v28 = vadd.f32 %v10490_v6, %v4435_v50 }
 0x26d   : > { %6098 = vst.msk [vmem:[#allocation2] sm:$0xff] %vm6097_vm7, %v6065_v40  ;;  %v6068_v21 = vadd.f32 %v7814_v30, %v5570_v39  ;;  %v5571_v33 = vadd.f32 %v5456_v61, %v4817_v46  ;;  %v4440_v39 = vadd.f32 %v10489_v7, %v10488_v41  ;;  %v10491_v40 = vld [vmem:[#allocation10_spill] sm:$0xff] }
 0x26e   : > { %v5941_v48 = vpop.f32.mrf.mxu0  ;;  %v7770_v12 = vpop.f32.mrf.mxu1 }
 0x26f   : > { %6101 = vst.msk [vmem:[#allocation2 + $0x18] sm:$0xff] %vm6097_vm7, %v6068_v21  ;;  %v6066_v3 = vadd.f32 %v5941_v48, %v5568_v2  ;;  %v5574_v47 = vadd.f32 %v7770_v12, %v4820_v26  ;;  %v10492_v2 = vld [vmem:[#allocation16_spill] sm:$0xff]  ;;  %v10493_v21 = vld [vmem:[#allocation19_spill] sm:$0xff]  ;;  %v10495_v12 = vld [vmem:[#allocation18_spill] sm:$0xff] }
 0x270   : > { %v7817_v0 = vpop.f32.mrf.mxu0  ;;  %v5459_v14 = vpop.f32.mrf.mxu1  ;;  %v4438_v30 = vadd.f32 %v10492_v2, %v10491_v40  ;;  %v10494_v48 = vld [vmem:[#allocation11_spill] sm:$0xff] }
 0x271   : > { %6099 = vst.msk [vmem:[#allocation2 + $0x8] sm:$0xff] %vm6097_vm7, %v6066_v3  ;;  %v6071_v13 = vadd.f32 %v7817_v0, %v5573_v23  ;;  %v5572_v24 = vadd.f32 %v5459_v14, %v4818_v45  ;;  %v4827_v23 = vadd.f32 %v10493_v21, %v4440_v39  ;;  %v4441_v26 = vadd.f32 %v10495_v12, %v10494_v48  ;;  %v10496_v0 = vld [vmem:[#allocation6_spill] sm:$0xff]  ;;  %v10497_v45 = vld [vmem:[#allocation12_spill] sm:$0xff] }
 0x272   : > { %v5954_v34 = vpop.f32.mrf.mxu0  ;;  %v7773_v17 = vpop.f32.mrf.mxu1  ;;  %v4825_v14 = vadd.f32 %v10496_v0, %v4438_v30 }
 0x273   : > { %6104 = vst.msk [vmem:[#allocation2 + $0x30] sm:$0xff] %vm6097_vm7, %v6071_v13  ;;  %v6069_v52 = vadd.f32 %v5954_v34, %v5571_v33  ;;  %v5577_v8 = vadd.f32 %v7773_v17, %v4823_v1  ;;  %v4439_v13 = vadd.f32 %v10498_v37, %v10497_v45 }
 0x274   : > { %v7818_v22 = vpop.f32.mrf.mxu0  ;;  %v5472_v31 = vpop.f32.mrf.mxu1 }
 0x275   : > { %6102 = vst.msk [vmem:[#allocation2 + $0x20] sm:$0xff] %vm6097_vm7, %v6069_v52  ;;  %v6072_v49 = vadd.f32 %v7818_v22, %v5574_v47  ;;  %v5575_v53 = vadd.f32 %v5472_v31, %v4821_v18  ;;  %v4828_v52 = vadd.f32 %v10499_v19, %v4441_v26  ;;  %v4826_v50 = vadd.f32 %v10500_v63, %v4439_v13 }
 0x276   : > { %v5957_v27 = vpop.f32.mrf.mxu0  ;;  %v7774_v36 = vpop.f32.mrf.mxu1 }
 0x277   : > { %6105 = vst.msk [vmem:[#allocation2 + $0x38] sm:$0xff] %vm6097_vm7, %v6072_v49  ;;  %v6070_v51 = vadd.f32 %v5957_v27, %v5572_v24  ;;  %v5578_v25 = vadd.f32 %v7774_v36, %v4824_v32 }
 0x278   : > { %v7821_v44 = vpop.f32.mrf.mxu0  ;;  %v5475_v57 = vpop.f32.mrf.mxu1 }
 0x279   : > { %6103 = vst.msk [vmem:[#allocation2 + $0x28] sm:$0xff] %vm6097_vm7, %v6070_v51  ;;  %v6075_v5 = vadd.f32 %v7821_v44, %v5577_v8  ;;  %v5576_v16 = vadd.f32 %v5475_v57, %v4822_v28 }
 0x27a   : > { %v5970_v61 = vpop.f32.mrf.mxu0 }
 0x27b   : > { %6108 = vst.msk [vmem:[#allocation2 + $0x50] sm:$0xff] %vm6097_vm7, %v6075_v5  ;;  %v6073_v46 = vadd.f32 %v5970_v61, %v5575_v53 }
 0x27c   : > { %v7822_v43 = vpop.f32.mrf.mxu0 }
 0x27d   : > { %6106 = vst.msk [vmem:[#allocation2 + $0x40] sm:$0xff] %vm6097_vm7, %v6073_v46  ;;  %v6076_v3 = vadd.f32 %v7822_v43, %v5578_v25  ;;  %v7777_v33 = vpop.f32.mrf.mxu1 }
 0x27e   : > { %v5973_v47 = vpop.f32.mrf.mxu0  ;;  %v5581_v34 = vadd.f32 %v7777_v33, %v4827_v23 }
 0x27f   : > { %6109 = vst.msk [vmem:[#allocation2 + $0x58] sm:$0xff] %vm6097_vm7, %v6076_v3  ;;  %v6074_v17 = vadd.f32 %v5973_v47, %v5576_v16  ;;  %v5488_v1 = vpop.f32.mrf.mxu1 }
 0x280   : > { %v7825_v24 = vpop.f32.mrf.mxu0  ;;  %v5579_v22 = vadd.f32 %v5488_v1, %v4825_v14 }
 0x281   : > { %6107 = vst.msk [vmem:[#allocation2 + $0x48] sm:$0xff] %vm6097_vm7, %v6074_v17  ;;  %v6079_v31 = vadd.f32 %v7825_v24, %v5581_v34  ;;  %v7778_v18 = vpop.f32.mrf.mxu1 }
 0x282   : > { %v5986_v49 = vpop.f32.mrf.mxu0  ;;  %v5582_v8 = vadd.f32 %v7778_v18, %v4828_v52 }
 0x283   : > { %6112 = vst.msk [vmem:[#allocation2 + $0x70] sm:$0xff] %vm6097_vm7, %v6079_v31  ;;  %v6077_v27 = vadd.f32 %v5986_v49, %v5579_v22  ;;  %v5491_v36 = vpop.f32.mrf.mxu1 }
 0x284   : > { %v7826_v62 = vpop.f32.mrf.mxu0  ;;  %v5580_v32 = vadd.f32 %v5491_v36, %v4826_v50 }
 0x285   : > { %6110 = vst.msk [vmem:[#allocation2 + $0x60] sm:$0xff] %vm6097_vm7, %v6077_v27  ;;  %v6080_v51 = vadd.f32 %v7826_v62, %v5582_v8 }
 0x286   : > { %v5989_v53 = vpop.f32.mrf.mxu0 }
 0x287   : > { %6113 = vst.msk [vmem:[#allocation2 + $0x78] sm:$0xff] %vm6097_vm7, %v6080_v51  ;;  %v6078_v41 = vadd.f32 %v5989_v53, %v5580_v32 }
 0x289   : > { %6111 = vst.msk [vmem:[#allocation2 + $0x68] sm:$0xff] %vm6097_vm7, %v6078_v41  ;;  %v7829_v7 = vpop.f32.mrf.mxu0 }
 0x28a   : > { %v7781_v39 = vpop.f32.mrf.mxu1 }
 0x28b   : > { %v5585_v44 = vadd.f32 %v7781_v39, %v10105_v20  ;;  %v6002_v57 = vpop.f32.mrf.mxu0 }
 0x28c   : > { %v5504_v6 = vpop.f32.mrf.mxu1 }
 0x28d   : > { %v6083_v28 = vadd.f32 %v7829_v7, %v5585_v44  ;;  %v5583_v5 = vadd.f32 %v5504_v6, %v10108_v54  ;;  %v7830_v40 = vpop.f32.mrf.mxu0 }
 0x28e   : > { %v7782_v25 = vpop.f32.mrf.mxu1 }
 0x28f   : > { %6116 = vst.msk [vmem:[#allocation2 + $0x90] sm:$0xff] %vm6097_vm7, %v6083_v28  ;;  %v6081_v2 = vadd.f32 %v6002_v57, %v5583_v5  ;;  %v5586_v30 = vadd.f32 %v7782_v25, %v10111_v4  ;;  %v6005_v21 = vpop.f32.mrf.mxu0 }
 0x290   : > { %v5507_v61 = vpop.f32.mrf.mxu1 }
 0x291   : > { %6114 = vst.msk [vmem:[#allocation2 + $0x80] sm:$0xff] %vm6097_vm7, %v6081_v2  ;;  %v6084_v46 = vadd.f32 %v7830_v40, %v5586_v30  ;;  %v5584_v16 = vadd.f32 %v5507_v61, %v10114_v38 }
 0x293   : > { %6117 = vst.msk [vmem:[#allocation2 + $0x98] sm:$0xff] %vm6097_vm7, %v6084_v46  ;;  %v6082_v20 = vadd.f32 %v6005_v21, %v5584_v16 }
 0x295   : > { %6115 = vst.msk [vmem:[#allocation2 + $0x88] sm:$0xff] %vm6097_vm7, %v6082_v20 }
 0x297   : > { %v7833_v54 = vpop.f32.mrf.mxu0 }
 0x298   : > { %v7785_v23 = vpop.f32.mrf.mxu1 }
 0x299   : > { %v5589_v48 = vadd.f32 %v7785_v23, %v10117_v10  ;;  %v6018_v12 = vpop.f32.mrf.mxu0 }
 0x29a   : > { %v5520_v26 = vpop.f32.mrf.mxu1 }
 0x29b   : > { %v6087_v43 = vadd.f32 %v7833_v54, %v5589_v48  ;;  %v5587_v4 = vadd.f32 %v5520_v26, %v10120_v9  ;;  %v7834_v33 = vpop.f32.mrf.mxu0 }
 0x29c   : > { %v7786_v3 = vpop.f32.mrf.mxu1 }
 0x29d   : > { %6120 = vst.msk [vmem:[#allocation2 + $0xb0] sm:$0xff] %vm6097_vm7, %v6087_v43  ;;  %v6085_v38 = vadd.f32 %v6018_v12, %v5587_v4  ;;  %v5590_v0 = vadd.f32 %v7786_v3, %v10123_v59  ;;  %v6021_v13 = vpop.f32.mrf.mxu0 }
 0x29e   : > { %v5523_v14 = vpop.f32.mrf.mxu1 }
 0x29f   : > { %6118 = vst.msk [vmem:[#allocation2 + $0xa0] sm:$0xff] %vm6097_vm7, %v6085_v38  ;;  %v6088_v45 = vadd.f32 %v7834_v33, %v5590_v0  ;;  %v5588_v37 = vadd.f32 %v5523_v14, %v10126_v35 }
 0x2a1   : > { %6121 = vst.msk [vmem:[#allocation2 + $0xb8] sm:$0xff] %vm6097_vm7, %v6088_v45  ;;  %v6086_v10 = vadd.f32 %v6021_v13, %v5588_v37 }
 0x2a3   : > { %6119 = vst.msk [vmem:[#allocation2 + $0xa8] sm:$0xff] %vm6097_vm7, %v6086_v10 }
 0x2a5   : > { %v7837_v9 = vpop.f32.mrf.mxu0 }
 0x2a6   : > { %v7789_v47 = vpop.f32.mrf.mxu1 }
 0x2a7   : > { %v5593_v34 = vadd.f32 %v7789_v47, %v10129_v29  ;;  %v6034_v17 = vpop.f32.mrf.mxu0 }
 0x2a8   : > { %v5536_v1 = vpop.f32.mrf.mxu1 }
 0x2a9   : > { %v6091_v19 = vadd.f32 %v7837_v9, %v5593_v34  ;;  %v5591_v59 = vadd.f32 %v5536_v1, %v10132_v58  ;;  %v7838_v24 = vpop.f32.mrf.mxu0 }
 0x2aa   : > { %v7790_v52 = vpop.f32.mrf.mxu1 }
 0x2ab   : > { %6124 = vst.msk [vmem:[#allocation2 + $0xd0] sm:$0xff] %vm6097_vm7, %v6091_v19  ;;  %v6089_v35 = vadd.f32 %v6034_v17, %v5591_v59  ;;  %v5594_v22 = vadd.f32 %v7790_v52, %v10135_v60  ;;  %v6037_v50 = vpop.f32.mrf.mxu0 }
 0x2ac   : > { %v5539_v31 = vpop.f32.mrf.mxu1 }
 0x2ad   : > { %6122 = vst.msk [vmem:[#allocation2 + $0xc0] sm:$0xff] %vm6097_vm7, %v6089_v35  ;;  %v6092_v18 = vadd.f32 %v7838_v24, %v5594_v22  ;;  %v5592_v63 = vadd.f32 %v5539_v31, %v10140_v42 }
 0x2af   : > { %6125 = vst.msk [vmem:[#allocation2 + $0xd8] sm:$0xff] %vm6097_vm7, %v6092_v18  ;;  %v6090_v29 = vadd.f32 %v6037_v50, %v5592_v63 }
 0x2b1   : > { %6123 = vst.msk [vmem:[#allocation2 + $0xc8] sm:$0xff] %vm6097_vm7, %v6090_v29 }
 0x2b3   : > { %v7841_v58 = vpop.f32.mrf.mxu0 }
 0x2b4   : > { %v7793_v49 = vpop.f32.mrf.mxu1 }
 0x2b5   : > { %v5597_v8 = vadd.f32 %v7793_v49, %v10145_v15  ;;  %v6050_v27 = vpop.f32.mrf.mxu0 }
 0x2b6   : > { %v5552_v36 = vpop.f32.mrf.mxu1 }
 0x2b7   : > { %v6095_v62 = vadd.f32 %v7841_v58, %v5597_v8  ;;  %v5595_v60 = vadd.f32 %v5552_v36, %v10151_v55  ;;  %v7842_v51 = vpop.f32.mrf.mxu0 }
 0x2b8   : > { %v7794_v32 = vpop.f32.mrf.mxu1 }
 0x2b9   : > { %6128 = vst.msk [vmem:[#allocation2 + $0xf0] sm:$0xff] %vm6097_vm7, %v6095_v62  ;;  %v6093_v42 = vadd.f32 %v6050_v27, %v5595_v60  ;;  %v5598_v53 = vadd.f32 %v7794_v32, %v10156_v11  ;;  %v6053_v44 = vpop.f32.mrf.mxu0 }
 0x2ba   : > { %v5555_v41 = vpop.f32.mrf.mxu1 }
 0x2bb   : > { %6126 = vst.msk [vmem:[#allocation2 + $0xe0] sm:$0xff] %vm6097_vm7, %v6093_v42  ;;  %v6096_v7 = vadd.f32 %v7842_v51, %v5598_v53  ;;  %v5596_v39 = vadd.f32 %v5555_v41, %v10161_v56  ;;  %6133 = sbr.rel (%p7124_p1) target bundleno = 744 (0x2e8), region = 126 }
 0x2bd   : > { %6129 = vst.msk [vmem:[#allocation2 + $0xf8] sm:$0xff] %vm6097_vm7, %v6096_v7  ;;  %v6094_v15 = vadd.f32 %v6053_v44, %v5596_v39 }
 0x2bf   : > { %6127 = vst.msk [vmem:[#allocation2 + $0xe8] sm:$0xff] %vm6097_vm7, %v6094_v15 }
 0x2c0   : > { %v6134_v55 = vld [vmem:[#allocation2] sm:$0xff]  ;;  %v6135_v6 = vld [vmem:[#allocation2 + $0x8] sm:$0xff]  ;;  %v6136_v28 = vld [vmem:[#allocation2 + $0x10] sm:$0xff]  ;;  %vm6404_vm8 = vcmask 519168  }
 0x2c1   : > { %v10250_v11 = vld [vmem:[%s10414_s2] ss:$0 sm:$0xff]  ;;  %v6137_v5 = vld [vmem:[#allocation2 + $0x18] sm:$0xff]  ;;  %v6139_v61 = vld [vmem:[#allocation2 + $0x28] sm:$0xff] }
 0x2c2   : > { %v10255_v57 = vld [vmem:[%s10415_s3] ss:$0 sm:$0xff]  ;;  %v6173_v56 = vmul.f32 %v10250_v11, %v6134_v55  ;;  %v6174_v25 = vmul.f32 %v10250_v11, %v6135_v6  ;;  %v6175_v40 = vmul.f32 %v10250_v11, %v6136_v28  ;;  %v6176_v2 = vmul.f32 %v10250_v11, %v6137_v5  ;;  %v6140_v46 = vld [vmem:[#allocation2 + $0x30] sm:$0xff]  ;;  %v6141_v23 = vld [vmem:[#allocation2 + $0x38] sm:$0xff] }
 0x2c3   : > { %v6138_v30 = vld [vmem:[#allocation2 + $0x20] sm:$0xff]  ;;  %v6178_v20 = vmul.f32 %v10250_v11, %v6139_v61  ;;  %v6179_v54 = vmul.f32 %v10250_v11, %v6140_v46  ;;  %v6180_v43 = vmul.f32 %v10250_v11, %v6141_v23  ;;  %v6143_v17 = vld [vmem:[#allocation2 + $0x48] sm:$0xff]  ;;  %v6144_v1 = vld [vmem:[#allocation2 + $0x50] sm:$0xff] }
 0x2c4   : > { %v6212_v16 = vadd.f32 %v10255_v57, %v6173_v56  ;;  %v6177_v21 = vmul.f32 %v10250_v11, %v6138_v30  ;;  %v6213_v48 = vadd.f32 %v10255_v57, %v6174_v25  ;;  %v6214_v12 = vadd.f32 %v10255_v57, %v6175_v40  ;;  %v6142_v13 = vld [vmem:[#allocation2 + $0x40] sm:$0xff]  ;;  %v6145_v19 = vld [vmem:[#allocation2 + $0x58] sm:$0xff]  ;;  %v6147_v31 = vld [vmem:[#allocation2 + $0x68] sm:$0xff] }
 0x2c5   : > { %v6215_v26 = vadd.f32 %v10255_v57, %v6176_v2  ;;  %v6217_v33 = vadd.f32 %v10255_v57, %v6178_v20  ;;  %v6218_v38 = vadd.f32 %v10255_v57, %v6179_v54  ;;  %v6219_v37 = vadd.f32 %v10255_v57, %v6180_v43  ;;  %v6146_v22 = vld [vmem:[#allocation2 + $0x60] sm:$0xff]  ;;  %v6148_v18 = vld [vmem:[#allocation2 + $0x70] sm:$0xff]  ;;  %v6149_v49 = vld [vmem:[#allocation2 + $0x78] sm:$0xff] }
 0x2c6   : > { %v6244_v4 = vmax.f32 %v6212_v16, 0.0  ;;  %v6216_v3 = vadd.f32 %v10255_v57, %v6177_v21  ;;  %v6245_v0 = vmax.f32 %v6213_v48, 0.0  ;;  %v6246_v14 = vmax.f32 %v6214_v12, 0.0  ;;  %v6150_v40 = vld [vmem:[#allocation2 + $0x80] sm:$0xff]  ;;  %v6151_v16 = vld [vmem:[#allocation2 + $0x88] sm:$0xff]  ;;  %v6152_v21 = vld [vmem:[#allocation2 + $0x90] sm:$0xff] }
 0x2c7   : > { %v6247_v45 = vmax.f32 %v6215_v26, 0.0  ;;  %v6249_v47 = vmax.f32 %v6217_v33, 0.0  ;;  %v6250_v34 = vmax.f32 %v6218_v38, 0.0  ;;  %v6251_v35 = vmax.f32 %v6219_v37, 0.0  ;;  %v6153_v20 = vld [vmem:[#allocation2 + $0x98] sm:$0xff]  ;;  %v6154_v26 = vld [vmem:[#allocation2 + $0xa0] sm:$0xff] }
 0x2c8   : > { %v7163_v10 = vpack.c.bf16 %v6244_v4, %v6244_v4  ;;  %v6248_v9 = vmax.f32 %v6216_v3, 0.0  ;;  %v7164_v59 = vpack.c.bf16 %v6245_v0, %v6245_v0  ;;  %v7165_v52 = vpack.c.bf16 %v6246_v14, %v6246_v14  ;;  %v6155_v43 = vld [vmem:[#allocation2 + $0xa8] sm:$0xff]  ;;  %v6156_v4 = vld [vmem:[#allocation2 + $0xb0] sm:$0xff]  ;;  %v6157_v14 = vld [vmem:[#allocation2 + $0xb8] sm:$0xff] }
 0x2c9   : > { %v7166_v24 = vpack.c.bf16 %v6247_v45, %v6247_v45  ;;  %v7168_v50 = vpack.c.bf16 %v6249_v47, %v6249_v47  ;;  %v7169_v29 = vpack.c.bf16 %v6250_v34, %v6250_v34  ;;  %v6181_v58 = vmul.f32 %v10250_v11, %v6142_v13 }
 0x2ca   : > { %6405 = vst.msk [vmem:[%s8517_s6] sm:$0xf] %vm6404_vm8, %v7163_v10  ;;  %v7167_v63 = vpack.c.bf16 %v6248_v9, %v6248_v9  ;;  %6406 = vst.msk [vmem:[%s8517_s6 + $0x4] sm:$0xf] %vm6404_vm8, %v7164_v59  ;;  %v7170_v8 = vpack.c.bf16 %v6251_v35, %v6251_v35  ;;  %v6182_v27 = vmul.f32 %v10250_v11, %v6143_v17 }
 0x2cb   : > { %6407 = vst.msk [vmem:[%s8517_s6 + $0x8] sm:$0xf] %vm6404_vm8, %v7165_v52  ;;  %6408 = vst.msk [vmem:[%s8517_s6 + $0xc] sm:$0xf] %vm6404_vm8, %v7166_v24  ;;  %v6183_v36 = vmul.f32 %v10250_v11, %v6144_v1  ;;  %v6184_v62 = vmul.f32 %v10250_v11, %v6145_v19  ;;  %v6220_v60 = vadd.f32 %v10255_v57, %v6181_v58  ;;  %v6158_v58 = vld [vmem:[#allocation2 + $0xc0] sm:$0xff] }
 0x2cc   : > { %6409 = vst.msk [vmem:[%s8517_s6 + $0x10] sm:$0xf] %vm6404_vm8, %v7167_v63  ;;  %6410 = vst.msk [vmem:[%s8517_s6 + $0x14] sm:$0xf] %vm6404_vm8, %v7168_v50  ;;  %v6185_v32 = vmul.f32 %v10250_v11, %v6146_v22  ;;  %v6186_v51 = vmul.f32 %v10250_v11, %v6147_v31  ;;  %v6187_v42 = vmul.f32 %v10250_v11, %v6148_v18 }
 0x2cd   : > { %6411 = vst.msk [vmem:[%s8517_s6 + $0x18] sm:$0xf] %vm6404_vm8, %v7169_v29  ;;  %6412 = vst.msk [vmem:[%s8517_s6 + $0x1c] sm:$0xf] %vm6404_vm8, %v7170_v8  ;;  %v6221_v53 = vadd.f32 %v10255_v57, %v6182_v27  ;;  %v6222_v41 = vadd.f32 %v10255_v57, %v6183_v36  ;;  %v6223_v7 = vadd.f32 %v10255_v57, %v6184_v62  ;;  %v6252_v44 = vmax.f32 %v6220_v60, 0.0  ;;  %v6159_v62 = vld [vmem:[#allocation2 + $0xc8] sm:$0xff] }
 0x2ce   : > { %v6188_v39 = vmul.f32 %v10250_v11, %v6149_v49  ;;  %v6224_v15 = vadd.f32 %v10255_v57, %v6185_v32  ;;  %v6225_v55 = vadd.f32 %v10255_v57, %v6186_v51  ;;  %v6226_v56 = vadd.f32 %v10255_v57, %v6187_v42  ;;  %v6160_v60 = vld [vmem:[#allocation2 + $0xd0] sm:$0xff]  ;;  %v6161_v32 = vld [vmem:[#allocation2 + $0xd8] sm:$0xff] }
 0x2cf   : > { %v6253_v6 = vmax.f32 %v6221_v53, 0.0  ;;  %v6254_v28 = vmax.f32 %v6222_v41, 0.0  ;;  %v6255_v5 = vmax.f32 %v6223_v7, 0.0  ;;  %v7171_v2 = vpack.c.bf16 %v6252_v44, %v6252_v44  ;;  %v6162_v7 = vld [vmem:[#allocation2 + $0xe0] sm:$0xff]  ;;  %v6164_v44 = vld [vmem:[#allocation2 + $0xf0] sm:$0xff] }
 0x2d0   : > { %v6227_v25 = vadd.f32 %v10255_v57, %v6188_v39  ;;  %v6256_v30 = vmax.f32 %v6224_v15, 0.0  ;;  %v6257_v61 = vmax.f32 %v6225_v55, 0.0  ;;  %v6258_v46 = vmax.f32 %v6226_v56, 0.0  ;;  %v6163_v39 = vld [vmem:[#allocation2 + $0xe8] sm:$0xff] }
 0x2d1   : > { %v7172_v54 = vpack.c.bf16 %v6253_v6, %v6253_v6  ;;  %v7173_v23 = vpack.c.bf16 %v6254_v28, %v6254_v28  ;;  %v7174_v48 = vpack.c.bf16 %v6255_v5, %v6255_v5  ;;  %6413 = vst.msk [vmem:[%s8517_s6 + $0x20] sm:$0xf] %vm6404_vm8, %v7171_v2  ;;  %v6189_v0 = vmul.f32 %v10250_v11, %v6150_v40  ;;  %v6165_v28 = vld [vmem:[#allocation2 + $0xf8] sm:$0xff] }
 0x2d2   : > { %v6259_v12 = vmax.f32 %v6227_v25, 0.0  ;;  %v7175_v3 = vpack.c.bf16 %v6256_v30, %v6256_v30  ;;  %v7176_v33 = vpack.c.bf16 %v6257_v61, %v6257_v61  ;;  %v7177_v38 = vpack.c.bf16 %v6258_v46, %v6258_v46 }
 0x2d3   : > { %6414 = vst.msk [vmem:[%s8517_s6 + $0x24] sm:$0xf] %vm6404_vm8, %v7172_v54  ;;  %6415 = vst.msk [vmem:[%s8517_s6 + $0x28] sm:$0xf] %vm6404_vm8, %v7173_v23  ;;  %v6190_v37 = vmul.f32 %v10250_v11, %v6151_v16  ;;  %v6191_v13 = vmul.f32 %v10250_v11, %v6152_v21  ;;  %v6192_v10 = vmul.f32 %v10250_v11, %v6153_v20 }
 0x2d4   : > { %6416 = vst.msk [vmem:[%s8517_s6 + $0x2c] sm:$0xf] %vm6404_vm8, %v7174_v48  ;;  %v7178_v45 = vpack.c.bf16 %v6259_v12, %v6259_v12  ;;  %6417 = vst.msk [vmem:[%s8517_s6 + $0x30] sm:$0xf] %vm6404_vm8, %v7175_v3  ;;  %v6228_v9 = vadd.f32 %v10255_v57, %v6189_v0  ;;  %v6193_v47 = vmul.f32 %v10250_v11, %v6154_v26 }
 0x2d5   : > { %6418 = vst.msk [vmem:[%s8517_s6 + $0x34] sm:$0xf] %vm6404_vm8, %v7176_v33  ;;  %6419 = vst.msk [vmem:[%s8517_s6 + $0x38] sm:$0xf] %vm6404_vm8, %v7177_v38  ;;  %v6194_v34 = vmul.f32 %v10250_v11, %v6155_v43  ;;  %v6195_v17 = vmul.f32 %v10250_v11, %v6156_v4  ;;  %v6229_v1 = vadd.f32 %v10255_v57, %v6190_v37 }
 0x2d6   : > { %6420 = vst.msk [vmem:[%s8517_s6 + $0x3c] sm:$0xf] %vm6404_vm8, %v7178_v45  ;;  %v6230_v19 = vadd.f32 %v10255_v57, %v6191_v13  ;;  %v6231_v59 = vadd.f32 %v10255_v57, %v6192_v10  ;;  %v6196_v52 = vmul.f32 %v10250_v11, %v6157_v14  ;;  %v6260_v24 = vmax.f32 %v6228_v9, 0.0 }
 0x2d7   : > { %v6232_v35 = vadd.f32 %v10255_v57, %v6193_v47  ;;  %v6233_v22 = vadd.f32 %v10255_v57, %v6194_v34  ;;  %v6234_v31 = vadd.f32 %v10255_v57, %v6195_v17  ;;  %v6261_v18 = vmax.f32 %v6229_v1, 0.0 }
 0x2d8   : > { %v6262_v63 = vmax.f32 %v6230_v19, 0.0  ;;  %v6263_v50 = vmax.f32 %v6231_v59, 0.0  ;;  %v6235_v29 = vadd.f32 %v10255_v57, %v6196_v52  ;;  %v7179_v49 = vpack.c.bf16 %v6260_v24, %v6260_v24 }
 0x2d9   : > { %v6264_v8 = vmax.f32 %v6232_v35, 0.0  ;;  %v6265_v27 = vmax.f32 %v6233_v22, 0.0  ;;  %v6266_v36 = vmax.f32 %v6234_v31, 0.0  ;;  %v7180_v51 = vpack.c.bf16 %v6261_v18, %v6261_v18 }
 0x2da   : > { %v7181_v42 = vpack.c.bf16 %v6262_v63, %v6262_v63  ;;  %v7182_v53 = vpack.c.bf16 %v6263_v50, %v6263_v50  ;;  %v6267_v41 = vmax.f32 %v6235_v29, 0.0  ;;  %6421 = vst.msk [vmem:[%s8517_s6 + $0x40] sm:$0xf] %vm6404_vm8, %v7179_v49  ;;  %v6197_v6 = vmul.f32 %v10250_v11, %v6158_v58 }
 0x2db   : > { %v7183_v15 = vpack.c.bf16 %v6264_v8, %v6264_v8  ;;  %v7184_v55 = vpack.c.bf16 %v6265_v27, %v6265_v27  ;;  %v7185_v56 = vpack.c.bf16 %v6266_v36, %v6266_v36  ;;  %6422 = vst.msk [vmem:[%s8517_s6 + $0x44] sm:$0xf] %vm6404_vm8, %v7180_v51  ;;  %v6198_v25 = vmul.f32 %v10250_v11, %v6159_v62 }
 0x2dc   : > { %6423 = vst.msk [vmem:[%s8517_s6 + $0x48] sm:$0xf] %vm6404_vm8, %v7181_v42  ;;  %6424 = vst.msk [vmem:[%s8517_s6 + $0x4c] sm:$0xf] %vm6404_vm8, %v7182_v53  ;;  %v7186_v5 = vpack.c.bf16 %v6267_v41, %v6267_v41  ;;  %v6199_v40 = vmul.f32 %v10250_v11, %v6160_v60  ;;  %v6200_v2 = vmul.f32 %v10250_v11, %v6161_v32 }
 0x2dd   : > { %6425 = vst.msk [vmem:[%s8517_s6 + $0x50] sm:$0xf] %vm6404_vm8, %v7183_v15  ;;  %6426 = vst.msk [vmem:[%s8517_s6 + $0x54] sm:$0xf] %vm6404_vm8, %v7184_v55  ;;  %v6236_v30 = vadd.f32 %v10255_v57, %v6197_v6  ;;  %v6201_v61 = vmul.f32 %v10250_v11, %v6162_v7  ;;  %v6202_v46 = vmul.f32 %v10250_v11, %v6163_v39 }
 0x2de   : > { %6427 = vst.msk [vmem:[%s8517_s6 + $0x58] sm:$0xf] %vm6404_vm8, %v7185_v56  ;;  %v6203_v16 = vmul.f32 %v10250_v11, %v6164_v44  ;;  %6428 = vst.msk [vmem:[%s8517_s6 + $0x5c] sm:$0xf] %vm6404_vm8, %v7186_v5  ;;  %v6237_v21 = vadd.f32 %v10255_v57, %v6198_v25  ;;  %v6238_v20 = vadd.f32 %v10255_v57, %v6199_v40 }
 0x2df   : > { %v6239_v54 = vadd.f32 %v10255_v57, %v6200_v2  ;;  %v6204_v23 = vmul.f32 %v10250_v11, %v6165_v28  ;;  %v6268_v48 = vmax.f32 %v6236_v30, 0.0  ;;  %v6240_v12 = vadd.f32 %v10255_v57, %v6201_v61 }
 0x2e0   : > { %v6241_v26 = vadd.f32 %v10255_v57, %v6202_v46  ;;  %v6242_v43 = vadd.f32 %v10255_v57, %v6203_v16  ;;  %v6269_v4 = vmax.f32 %v6237_v21, 0.0  ;;  %v6270_v3 = vmax.f32 %v6238_v20, 0.0 }
 0x2e1   : > { %v6271_v33 = vmax.f32 %v6239_v54, 0.0  ;;  %v6243_v38 = vadd.f32 %v10255_v57, %v6204_v23  ;;  %v7187_v0 = vpack.c.bf16 %v6268_v48, %v6268_v48  ;;  %v6272_v14 = vmax.f32 %v6240_v12, 0.0 }
 0x2e2   : > { %v6273_v11 = vmax.f32 %v6241_v26, 0.0  ;;  %v6274_v45 = vmax.f32 %v6242_v43, 0.0  ;;  %v7188_v37 = vpack.c.bf16 %v6269_v4, %v6269_v4  ;;  %v7189_v13 = vpack.c.bf16 %v6270_v3, %v6270_v3 }
 0x2e3   : > { %v7190_v10 = vpack.c.bf16 %v6271_v33, %v6271_v33  ;;  %v6275_v9 = vmax.f32 %v6243_v38, 0.0  ;;  %6429 = vst.msk [vmem:[%s8517_s6 + $0x60] sm:$0xf] %vm6404_vm8, %v7187_v0  ;;  %v7191_v47 = vpack.c.bf16 %v6272_v14, %v6272_v14 }
 0x2e4   : > { %v7192_v34 = vpack.c.bf16 %v6273_v11, %v6273_v11  ;;  %v7193_v17 = vpack.c.bf16 %v6274_v45, %v6274_v45  ;;  %6430 = vst.msk [vmem:[%s8517_s6 + $0x64] sm:$0xf] %vm6404_vm8, %v7188_v37  ;;  %6431 = vst.msk [vmem:[%s8517_s6 + $0x68] sm:$0xf] %vm6404_vm8, %v7189_v13 }
 0x2e5   : > { %6432 = vst.msk [vmem:[%s8517_s6 + $0x6c] sm:$0xf] %vm6404_vm8, %v7190_v10  ;;  %v7194_v57 = vpack.c.bf16 %v6275_v9, %v6275_v9  ;;  %6433 = vst.msk [vmem:[%s8517_s6 + $0x70] sm:$0xf] %vm6404_vm8, %v7191_v47 }
 0x2e6   : > { %6434 = vst.msk [vmem:[%s8517_s6 + $0x74] sm:$0xf] %vm6404_vm8, %v7192_v34  ;;  %6435 = vst.msk [vmem:[%s8517_s6 + $0x78] sm:$0xf] %vm6404_vm8, %v7193_v17 }
 0x2e7   : > { %6436 = vst.msk [vmem:[%s8517_s6 + $0x7c] sm:$0xf] %vm6404_vm8, %v7194_v57 }
 0x2e8 PF: > { %s14_s23 = sadd.s32 1, %s8127_s23   ;;  %s10501_s15 = smov %s8099_s16 }
 0x2e9   : > { %p11_p2 = scmp.ge.s32.totalorder %s14_s23, 6   ;;  %s10502_s16 = smov %s8220_s29 }
 0x2ea   : > { %s10503_s17 = smov %s8107_s18  ;;  %s10504_s18 = smov %s8230_s8 }
 0x2eb   : > { %s10505_s19 = smov %s8119_s21  ;;  %s10506_s20 = smov %s8123_s22 }
 0x2ec   : > { %s10507_s21 = smov %s10510_s24  ;;  %s10508_s22 = smov %s10514_s25 }
 0x2ed   :  { %13 = sbr.rel (!%p11_p2) target bundleno = 5 (0x5), region = 179 }

</bundles_post_ra>
